<compile_context>
chip_gen: v6e
topology: v6e:2x2x1
jax: 0.10.0
libtpu: 0.0.40
codegen_flags: <defaults>
</compile_context>

<pallas_src>
import functools
import math

import jax
import jax.numpy as jnp
from jax.experimental import pallas as pl
from jax.experimental.pallas import tpu as pltpu


def _round_up(n: int, m: int) -> int:
    return ((n + m - 1) // m) * m


def _num_tensorcores() -> int:
    """Best-effort count of TensorCores sharing one Pallas grid (v7x = 2)."""
    try:
        info = pltpu.get_tpu_info()
        for name in ("num_cores", "core_count", "num_tensorcores",
                     "tensor_cores_per_chip", "cores_per_chip"):
            v = getattr(info, name, None)
            if isinstance(v, int) and v > 0:
                return v
    except Exception:
        pass
    try:
        kind = jax.devices()[0].device_kind.lower()
        if "v7" in kind:
            return 2
    except Exception:
        pass
    return 1


# ----------------------------------------------------------------------------
# Pallas kernel: whole SIREN MLP on one row-tile, feature-major activations.
# omega_0 is already folded into w0 / wsq[0:n_layers] / bcol by the wrapper.
# ----------------------------------------------------------------------------
def siren_kernel(xt_ref, w0_ref, wsq_ref, bcol_ref, bfrow_ref, o_ref,
                 *, n_layers: int, mxu_dtype):
    # Activations are (O, tm): rows live on the 128-wide lane axis, so the
    # sin chain / bias adds run at full lane occupancy.
    def cast(h):
        return h if mxu_dtype is None else h.astype(mxu_dtype)

    x = xt_ref[...].astype(jnp.float32)                              # (K8, tm)

    # Layer 0 on the MXU (K zero-padded to 8 in the wrapper).  Kept fully f32:
    # its pre-activations are the largest (|arg| up to ~omega_0 * 1.6).
    h = jnp.sin(jnp.dot(w0_ref[...], x, preferred_element_type=jnp.float32)
                + bcol_ref[0])                                       # (O, tm)

    # Hidden SineLayers: (O, O) @ (O, tm); n_layers is static -> unrolled.
    for l in range(n_layers):
        h = jnp.sin(jnp.dot(wsq_ref[l], cast(h),
                            preferred_element_type=jnp.float32)
                    + bcol_ref[l + 1])                               # (O, tm)

    # Final plain Linear.  The last weight slice is stored pre-transposed as
    # (in, out), and the dot_general contracts h's leading (feature) axis, so
    # the MXU emits the result directly in row-major (tm, O) layout — no
    # explicit vector transpose is ever materialised.
    # TODO(synk): optional bf16 elementwise sin chain (review item) skipped —
    # with omega_0 folded in the sin arguments reach O(30) and bf16 rounding
    # gives visible phase error; also unsupported on v5e's f32-only VPU.
    y = jax.lax.dot_general(cast(h), wsq_ref[n_layers],
                            (((0,), (0,)), ((), ())),
                            preferred_element_type=jnp.float32)      # (tm, O)
    o_ref[...] = (y + bfrow_ref[...]).astype(o_ref.dtype)


# ----------------------------------------------------------------------------
# Wrapper: flatten leading dims, transpose to feature-major, pack + omega-fold
# the tiny parameters, tile rows with a ragged cdiv grid, call pallas_call.
# ----------------------------------------------------------------------------
def siren_embedding(x, params, *, omega_0: float = 30.0, tm: int = 8192,
                    mxu_dtype=None, out_dtype=None):
    lead = x.shape[:-1]
    I = x.shape[-1]
    O = params["w0"].shape[0]            # PyTorch layout: (out_features, in_features)
    n_layers = params["wh"].shape[0]
    out_dtype = x.dtype if out_dtype is None else out_dtype
    n_rows = int(math.prod(lead)) if lead else 1

    # --- input: flatten rows, transpose to (K, n_rows), pad K up to a sublane
    # multiple so layer 0's MXU contraction is 8-aligned.  The extra rows are
    # exact zeros, so they contribute nothing.
    K8 = max(8, _round_up(I, 8))
    xt = x.reshape(n_rows, I).T                                       # (I, n_rows)
    if K8 != I:
        xt = jnp.pad(xt, ((0, K8 - I), (0, 0)))                       # (K8, n_rows)

    # --- fold omega_0 into the sine-layer weights/biases once (tiny tensors):
    # sin(w*(Wx+b)) == sin((w*W)x + w*b).  Pack into 4 arrays.
    f32 = jnp.float32
    w0 = jnp.pad(params["w0"].astype(f32) * omega_0, ((0, 0), (0, K8 - I)))   # (O, K8)
    wsq = jnp.concatenate([params["wh"].astype(f32) * omega_0,                 # hidden (out,in)
                           params["wf"].astype(f32).T[None]], axis=0)          # final stored (in,out)
    bcol = jnp.concatenate([params["b0"].astype(f32)[None] * omega_0,
                            params["bh"].astype(f32) * omega_0],
                           axis=0)[..., None]                                   # (L+1, O, 1)
    bfrow = params["bf"].astype(f32)[None, :]                                   # (1, O)
    if mxu_dtype is not None:
        # bf16 weights: native MXU operand format on v5e/v6e/v7x, halves the
        # (already tiny) weight DMA.  Biases + layer-0 weight stay f32.
        wsq = wsq.astype(mxu_dtype)

    # --- row tile: large tiles amortize the ~0.35us/grid-step overhead.
    # tm_eff is a multiple of 128 (lane dim of the x block / sublane dim of
    # the output block); the ragged last block is masked by Pallas.
    tm_eff = min(_round_up(tm, 128), _round_up(n_rows, 128))
    num_tc = _num_tensorcores()
    steps = pl.cdiv(n_rows, tm_eff)
    if num_tc > 1 and steps % num_tc != 0:
        # Only multi-TC chips (v7x) benefit from forcing a balanced split.
        target = _round_up(max(steps, num_tc), num_tc)
        cand = _round_up(pl.cdiv(n_rows, target), 128)
        tm_eff = max(128, min(tm_eff, cand))
    grid = (pl.cdiv(n_rows, tm_eff),)

    kernel = functools.partial(siren_kernel, n_layers=n_layers, mxu_dtype=mxu_dtype)

    out = pl.pallas_call(
        kernel,
        out_shape=jax.ShapeDtypeStruct((n_rows, O), out_dtype),
        grid=grid,
        in_specs=[
            pl.BlockSpec((K8, tm_eff), lambda i: (0, i)),                 # x, feature-major
            pl.BlockSpec((O, K8), lambda i: (0, 0)),                      # W0 (omega-folded, K-padded)
            pl.BlockSpec((n_layers + 1, O, O), lambda i: (0, 0, 0)),      # hidden Ws + final W^T
            pl.BlockSpec((n_layers + 1, O, 1), lambda i: (0, 0, 0)),      # column biases (omega-folded)
            pl.BlockSpec((1, O), lambda i: (0, 0)),                       # final row bias
        ],
        out_specs=pl.BlockSpec((tm_eff, O), lambda i: (i, 0)),
        compiler_params=pltpu.CompilerParams(
            dimension_semantics=("parallel",),
            vmem_limit_bytes=32 * 1024 * 1024,
        ),
    )(xt, w0, wsq, bcol, bfrow)

    return out.reshape(*lead, O)


# ----------------------------------------------------------------------------
# Deterministic parameter init matching the PyTorch module's __init__ scheme.
# Weights are stored in PyTorch layout (out_features, in_features).
# ----------------------------------------------------------------------------
def init_siren_params(key, in_features: int, out_features: int, n_layers: int,
                      omega_0: float = 30.0, dtype=jnp.float32):
    ks = jax.random.split(key, 6)
    I, O = in_features, out_features

    # first SineLayer: weight ~ U(-1/I, 1/I); bias = torch default U(-1/sqrt(I), 1/sqrt(I))
    w0 = jax.random.uniform(ks[0], (O, I), dtype, -1.0 / I, 1.0 / I)
    b0 = jax.random.uniform(ks[1], (O,), dtype, -1.0 / math.sqrt(I), 1.0 / math.sqrt(I))

    # hidden SineLayers: weight ~ U(-sqrt(6/O)/omega_0^2, +); bias torch default
    wbh = math.sqrt(6.0 / O) / (omega_0 ** 2)
    wh = jax.random.uniform(ks[2], (n_layers, O, O), dtype, -wbh, wbh)
    bh = jax.random.uniform(ks[3], (n_layers, O), dtype,
                            -1.0 / math.sqrt(O), 1.0 / math.sqrt(O))

    # final nn.Linear: torch default (kaiming_uniform a=sqrt(5)) -> U(-1/sqrt(O), 1/sqrt(O))
    wbf = 1.0 / math.sqrt(O)
    wf = jax.random.uniform(ks[4], (O, O), dtype, -wbf, wbf)
    bf = jax.random.uniform(ks[5], (O,), dtype, -wbf, wbf)

    return dict(w0=w0, b0=b0, wh=wh, bh=bh, wf=wf, bf=bf)


# pure-JAX reference with the original (unfolded) PyTorch semantics
def siren_reference(x, params, omega_0=30.0):
    h = jnp.sin(omega_0 * (x @ params["w0"].T + params["b0"]))
    for l in range(params["wh"].shape[0]):
        h = jnp.sin(omega_0 * (h @ params["wh"][l].T + params["bh"][l]))
    return h @ params["wf"].T + params["bf"]


if __name__ == "__main__":
    in_features, out_features, n_layers, omega_0 = 3, 32, 2, 30.0

    key = jax.random.PRNGKey(0)
    k_x, k_p = jax.random.split(key)
    params = init_siren_params(k_p, in_features, out_features, n_layers, omega_0)

    # (*, I) input — batch of 2, an 8x16 spatial grid of 3-d coordinates
    x = jax.random.uniform(k_x, (2, 8, 16, in_features), jnp.float32, -1.0, 1.0)
    y_ref = siren_reference(x, params, omega_0=omega_0)

    # f32 path. Tolerance absorbs the omega_0 folding and matmul-precision
    # differences between the in-Mosaic dots and XLA's default TPU precision.
    y = siren_embedding(x, params, omega_0=omega_0)
    y = jax.block_until_ready(y)
    assert y.shape == (2, 8, 16, out_features)
    assert jnp.allclose(y, y_ref, atol=1e-2, rtol=1e-2)

    # bf16 MXU operands + bf16 output (native MXU format on all generations,
    # halves writeback); layer 0 and the sin chain stay f32 inside the kernel.
    y_bf16 = siren_embedding(x, params, omega_0=omega_0,
                             mxu_dtype=jnp.bfloat16, out_dtype=jnp.bfloat16)
    y_bf16 = jax.block_until_ready(y_bf16)
    assert jnp.allclose(y_bf16.astype(jnp.float32), y, atol=5e-2, rtol=5e-2)

    print("KERNEL_OK")
</pallas_src>

<mosaic_0001>
module attributes {stable_mosaic.version = 11 : i64} {
  func.func @siren_kernel(%arg0: i32, %arg1: memref<8x256xf32, #tpu.memory_space<vmem>>, %arg2: memref<32x8xf32, #tpu.memory_space<vmem>>, %arg3: memref<3x32x32xf32, #tpu.memory_space<vmem>>, %arg4: memref<3x32x1xf32, #tpu.memory_space<vmem>>, %arg5: memref<1x32xf32, #tpu.memory_space<vmem>>, %arg6: memref<256x32xf32, #tpu.memory_space<vmem>>) attributes {dimension_semantics = [#tpu.dimension_semantics<parallel>], iteration_bounds = array<i64: 1>, scalar_prefetch = 0 : i64, scratch_operands = 0 : i64, tpu.core_type = #tpu.core_type<tc>, window_params = [{transform_indices = @transform_0, window_bounds = array<i64: 8, 256>}, {pipeline_mode = #tpu.pipeline_mode<synchronous>, transform_indices = @transform_1, window_bounds = array<i64: 32, 8>}, {pipeline_mode = #tpu.pipeline_mode<synchronous>, transform_indices = @transform_2, window_bounds = array<i64: 3, 32, 32>}, {pipeline_mode = #tpu.pipeline_mode<synchronous>, transform_indices = @transform_3, window_bounds = array<i64: 3, 32, 1>}, {pipeline_mode = #tpu.pipeline_mode<synchronous>, transform_indices = @transform_4, window_bounds = array<i64: 1, 32>}, {transform_indices = @transform_5, window_bounds = array<i64: 256, 32>}]} {
    %c0 = arith.constant 0 : index
    %c0_0 = arith.constant 0 : index
    %0 = vector.load %arg1[%c0, %c0_0] : memref<8x256xf32, #tpu.memory_space<vmem>>, vector<8x256xf32>
    %c0_1 = arith.constant 0 : index
    %c0_2 = arith.constant 0 : index
    %1 = vector.load %arg2[%c0_1, %c0_2] : memref<32x8xf32, #tpu.memory_space<vmem>>, vector<32x8xf32>
    %cst = arith.constant dense<0.000000e+00> : vector<32x256xf32>
    %2 = tpu.matmul %1, %0, %cst {dimension_numbers = #tpu.dot_dimension_numbers<[1], [0], [0], [1], [0, 0, 1, 1], [], []>} : vector<32x8xf32>, vector<8x256xf32>, vector<32x256xf32> -> vector<32x256xf32>
    %c0_3 = arith.constant 0 : index
    %c0_4 = arith.constant 0 : index
    %c0_5 = arith.constant 0 : index
    %3 = vector.load %arg4[%c0_3, %c0_4, %c0_5] : memref<3x32x1xf32, #tpu.memory_space<vmem>>, vector<1x32x1xf32>
    %4 = vector.shape_cast %3 : vector<1x32x1xf32> to vector<32x1xf32>
    %5 = vector.broadcast %4 : vector<32x1xf32> to vector<32x256xf32>
    %6 = arith.addf %2, %5 : vector<32x256xf32>
    %7 = math.sin %6 : vector<32x256xf32>
    %c0_6 = arith.constant 0 : index
    %c0_7 = arith.constant 0 : index
    %c0_8 = arith.constant 0 : index
    %8 = vector.load %arg3[%c0_6, %c0_7, %c0_8] : memref<3x32x32xf32, #tpu.memory_space<vmem>>, vector<1x32x32xf32>
    %9 = vector.shape_cast %8 : vector<1x32x32xf32> to vector<32x32xf32>
    %cst_9 = arith.constant dense<0.000000e+00> : vector<32x256xf32>
    %10 = tpu.matmul %9, %7, %cst_9 {dimension_numbers = #tpu.dot_dimension_numbers<[1], [0], [0], [1], [0, 0, 1, 1], [], []>} : vector<32x32xf32>, vector<32x256xf32>, vector<32x256xf32> -> vector<32x256xf32>
    %c1 = arith.constant 1 : index
    %c0_10 = arith.constant 0 : index
    %c0_11 = arith.constant 0 : index
    %11 = vector.load %arg4[%c1, %c0_10, %c0_11] : memref<3x32x1xf32, #tpu.memory_space<vmem>>, vector<1x32x1xf32>
    %12 = vector.shape_cast %11 : vector<1x32x1xf32> to vector<32x1xf32>
    %13 = vector.broadcast %12 : vector<32x1xf32> to vector<32x256xf32>
    %14 = arith.addf %10, %13 : vector<32x256xf32>
    %15 = math.sin %14 : vector<32x256xf32>
    %c1_12 = arith.constant 1 : index
    %c0_13 = arith.constant 0 : index
    %c0_14 = arith.constant 0 : index
    %16 = vector.load %arg3[%c1_12, %c0_13, %c0_14] : memref<3x32x32xf32, #tpu.memory_space<vmem>>, vector<1x32x32xf32>
    %17 = vector.shape_cast %16 : vector<1x32x32xf32> to vector<32x32xf32>
    %cst_15 = arith.constant dense<0.000000e+00> : vector<32x256xf32>
    %18 = tpu.matmul %17, %15, %cst_15 {dimension_numbers = #tpu.dot_dimension_numbers<[1], [0], [0], [1], [0, 0, 1, 1], [], []>} : vector<32x32xf32>, vector<32x256xf32>, vector<32x256xf32> -> vector<32x256xf32>
    %c2 = arith.constant 2 : index
    %c0_16 = arith.constant 0 : index
    %c0_17 = arith.constant 0 : index
    %19 = vector.load %arg4[%c2, %c0_16, %c0_17] : memref<3x32x1xf32, #tpu.memory_space<vmem>>, vector<1x32x1xf32>
    %20 = vector.shape_cast %19 : vector<1x32x1xf32> to vector<32x1xf32>
    %21 = vector.broadcast %20 : vector<32x1xf32> to vector<32x256xf32>
    %22 = arith.addf %18, %21 : vector<32x256xf32>
    %23 = math.sin %22 : vector<32x256xf32>
    %c2_18 = arith.constant 2 : index
    %c0_19 = arith.constant 0 : index
    %c0_20 = arith.constant 0 : index
    %24 = vector.load %arg3[%c2_18, %c0_19, %c0_20] : memref<3x32x32xf32, #tpu.memory_space<vmem>>, vector<1x32x32xf32>
    %25 = vector.shape_cast %24 : vector<1x32x32xf32> to vector<32x32xf32>
    %cst_21 = arith.constant dense<0.000000e+00> : vector<256x32xf32>
    %26 = tpu.matmul %23, %25, %cst_21 {dimension_numbers = #tpu.dot_dimension_numbers<[0], [0], [1], [1], [0, 1, 1, 1], [], []>} : vector<32x256xf32>, vector<32x32xf32>, vector<256x32xf32> -> vector<256x32xf32>
    %c0_22 = arith.constant 0 : index
    %c0_23 = arith.constant 0 : index
    %27 = vector.load %arg5[%c0_22, %c0_23] : memref<1x32xf32, #tpu.memory_space<vmem>>, vector<1x32xf32>
    %28 = vector.broadcast %27 : vector<1x32xf32> to vector<256x32xf32>
    %29 = arith.addf %26, %28 : vector<256x32xf32>
    %c0_24 = arith.constant 0 : index
    %c0_25 = arith.constant 0 : index
    %30 = vector.load %arg6[%c0_24, %c0_25] : memref<256x32xf32, #tpu.memory_space<vmem>>, vector<256x32xf32>
    tpu.vector_store %arg6[%c0_24, %c0_25], %29 {strides = array<i32>} : memref<256x32xf32, #tpu.memory_space<vmem>>, vector<256x32xf32>,
    return
  }
  func.func @transform_0(%arg0: i32) -> (i32, i32) {
    %c0_i32 = arith.constant 0 : i32
    %c0_i32_0 = arith.constant 0 : i32
    return %c0_i32, %arg0 : i32, i32
  }
  func.func @transform_1(%arg0: i32) -> (i32, i32) {
    %c0_i32 = arith.constant 0 : i32
    %c0_i32_0 = arith.constant 0 : i32
    %c0_i32_1 = arith.constant 0 : i32
    return %c0_i32, %c0_i32_0 : i32, i32
  }
  func.func @transform_2(%arg0: i32) -> (i32, i32, i32) {
    %c0_i32 = arith.constant 0 : i32
    %c0_i32_0 = arith.constant 0 : i32
    %c0_i32_1 = arith.constant 0 : i32
    %c0_i32_2 = arith.constant 0 : i32
    return %c0_i32, %c0_i32_0, %c0_i32_1 : i32, i32, i32
  }
  func.func @transform_3(%arg0: i32) -> (i32, i32, i32) {
    %c0_i32 = arith.constant 0 : i32
    %c0_i32_0 = arith.constant 0 : i32
    %c0_i32_1 = arith.constant 0 : i32
    %c0_i32_2 = arith.constant 0 : i32
    return %c0_i32, %c0_i32_0, %c0_i32_1 : i32, i32, i32
  }
  func.func @transform_4(%arg0: i32) -> (i32, i32) {
    %c0_i32 = arith.constant 0 : i32
    %c0_i32_0 = arith.constant 0 : i32
    %c0_i32_1 = arith.constant 0 : i32
    return %c0_i32, %c0_i32_0 : i32, i32
  }
  func.func @transform_5(%arg0: i32) -> (i32, i32) {
    %c0_i32 = arith.constant 0 : i32
    %c0_i32_0 = arith.constant 0 : i32
    return %arg0, %c0_i32 : i32, i32
  }
}

</mosaic_0001>

<bundles_post_ra>
// kernel: tpu_custom_call.1
= control target key start
LH: loop header
LB: loop body
LE: loop exit
PB: predicated region body
PF: predicated region fallthrough
CT: control target
= control target key end

     0   :  { %v6445_v2 = vmov 0.0   ;;  %vm50_vm0 = vcmask 64512   ;;  %v3803_v4 = vmov 0   ;;  %v6460_v43 = vmov 683565275   ;;  %s6439_s0 = inlined_call_operand.vmem [shape: f32[8,256], index: 0, kind: input, shape index: {}]   ;;  %s6440_s1 = inlined_call_operand.vmem [shape: f32[32,8], index: 1, kind: input, shape index: {}]   ;;  %s6441_s3 = inlined_call_operand.vmem [shape: f32[3,32,1], index: 3, kind: input, shape index: {}]   ;;  %s6442_s2 = inlined_call_operand.vmem [shape: f32[3,32,32], index: 2, kind: input, shape index: {}]   ;;  %s6443_s4 = inlined_call_operand.vmem [shape: f32[1,32], index: 4, kind: input, shape index: {}]   ;;  %s6444_s5 = inlined_call_operand.vmem [shape: f32[256,32], index: 5, kind: output, shape index: {}]  }
   0x1   :  { %v21_v0 = vld [vmem:[%s6439_s0 + $0x8] sm:$0xff]  ;;  %v20_v1 = vld [vmem:[%s6439_s0] sm:$0xff]  ;;  %127 = vmatprep.mubr.f32.mxu0 %v6445_v2  ;;  %3704 = vset.pattern.permute.xlu0 %v3803_v4  ;;  %v29_v5 = vld [vmem:[%s6441_s3 + $0x18] sm:$0xff]  ;;  %v6464_v45 = vmov 2475754826  }
   0x2   :  { %v22_v3 = vld [vmem:[%s6440_s1] sm:$0xff]  ;;  %93 = vmatprep.subr.mxu0 %v21_v0  ;;  %3705 = vset.pattern.permute.xlu1 %v3803_v4  ;;  %v27_v6 = vld [vmem:[%s6441_s3 + $0x8] sm:$0xff]  ;;  %v28_v8 = vld [vmem:[%s6441_s3 + $0x10] sm:$0xff]  ;;  %v6453_v48 = vmov 2131351028  }
   0x3   :  { %94 = vmatpush1.msra.mxu0 %v20_v1  ;;  %1090 = vmatprep.mubr.f32.mxu1 %v6445_v2  ;;  %v23_v7 = vld [vmem:[%s6440_s1 + $0x8] sm:$0xff]  ;;  %v26_v9 = vld [vmem:[%s6441_s3] sm:$0xff]  ;;  %v24_v10 = vld [vmem:[%s6440_s1 + $0x10] sm:$0xff]  ;;  %v6468_v51 = vmov 2102212464  }
   0x4   :  { %3343 = vmatmul.mubr.msk.f32.vlgmr.msra.gmra.mxu0 %vm50_vm0, %v22_v3  ;;  %47 = vperm.xlu0 %3704, %v29_v5   ;;  %v3382_v11 = vld [vmem:[%s6441_s3 + $0x38] sm:$0xff]  ;;  %v3381_v12 = vld [vmem:[%s6441_s3 + $0x30] sm:$0xff]  ;;  %v3380_v14 = vld [vmem:[%s6441_s3 + $0x28] sm:$0xff]  ;;  %v6458_v54 = vmov 920167782  }
   0x5   :  { %133 = vmatprep.mubr.f32.mxu0 %v6445_v2  ;;  %37 = vperm.xlu1 %3705, %v27_v6   ;;  %v25_v13 = vld [vmem:[%s6440_s1 + $0x18] sm:$0xff]  ;;  %v3379_v15 = vld [vmem:[%s6441_s3 + $0x20] sm:$0xff]  ;;  %v3424_v17 = vld [vmem:[%s6441_s3 + $0x48] sm:$0xff]  ;;  %v6456_v57 = vmov 1326507024  }
   0x6   :  { %v3423_v16 = vld [vmem:[%s6441_s3 + $0x40] sm:$0xff]  ;;  %v3425_v18 = vld [vmem:[%s6441_s3 + $0x50] sm:$0xff]  ;;  %v3426_v19 = vld [vmem:[%s6441_s3 + $0x58] sm:$0xff] }
   0x8   :  { %3344 = vmatmul.mubr.msk.f32.gmra.mxu0 %vm50_vm0, %v23_v7  ;;  %42 = vperm.xlu0 %3704, %v28_v8  }
   0x9   :  { %139 = vmatprep.mubr.f32.mxu0 %v6445_v2  ;;  %32 = vperm.xlu1 %3705, %v26_v9  }
   0xc   :  { %3345 = vmatmul.mubr.msk.f32.gmra.mxu0 %vm50_vm0, %v24_v10  ;;  %1010 = vperm.xlu0 %3704, %v3382_v11  }
   0xd   :  { %145 = vmatprep.mubr.f32.mxu0 %v6445_v2  ;;  %1005 = vperm.xlu1 %3705, %v3381_v12  }
  0x10   :  { %3346 = vmatmul.mubr.msk.f32.gmra.mxu0 %vm50_vm0, %v25_v13  ;;  %1000 = vperm.xlu0 %3704, %v3380_v14  }
  0x11   :  { %995 = vperm.xlu1 %3705, %v3379_v15   ;;  %2053 = vmatprep.mubr.f32.mxu0 %v6445_v2 }
  0x14   :  { %1959 = vperm.xlu0 %3704, %v3423_v16  }
  0x15   :  { %1964 = vperm.xlu1 %3705, %v3424_v17  }
  0x18   :  { %1969 = vperm.xlu0 %3704, %v3425_v18  }
  0x19   :  { %1974 = vperm.xlu1 %3705, %v3426_v19  }
  0x80   :  { %v3904_v20 = vpop.permute.xlu1 %37 }
  0x84   :  { %v33_v21 = vpop.permute.xlu1 %32 }
  0xc4   :  { %v129_v22 = vpop.f32.mrf.mxu0 }
  0xc5   :  { %v3906_v23 = vadd.f32 %v129_v22, %v33_v21 }
  0xc6   :  { %v131_v24 = vpop.f32.mrf.mxu0 }
  0xc7   :  { %v155_v25 = vand.u32 2139095040, %v3906_v23  ;;  %v3909_v26 = vadd.f32 %v131_v24, %v33_v21  ;;  %v6447_v34 = vand.u32 2147483647, %v3906_v23 }
  0xc8   :  { %v135_v31 = vpop.f32.mrf.mxu0 }
  0xc9   :  { %v156_v27 = vshrl.u32 %v155_v25, 23  ;;  %v259_v28 = vand.u32 2139095040, %v3909_v26  ;;  %v3914_v35 = vadd.f32 %v135_v31, %v3904_v20  ;;  %v159_v39 = vand.u32 8388607, %v6447_v34 }
  0xcb   :  { %v3347_v29 = vadd.s32 4294967169, %v156_v27  ;;  %v260_v30 = vshrl.u32 %v259_v28, 23  ;;  %v363_v41 = vand.u32 2139095040, %v3914_v35  ;;  %v160_v1 = vor.u32 8388608, %v159_v39  ;;  %v137_v39 = vpop.f32.mrf.mxu0 }
  0xcc   :  { %v6448_v27 = vand.u32 2147483647, %v3909_v26 }
  0xcd   :  { %v162_v32 = vadd.s32 1, %v3347_v29  ;;  %v3351_v33 = vadd.s32 4294967169, %v260_v30  ;;  %v364_v4 = vshrl.u32 %v363_v41, 23  ;;  %v200_v13 = vshll.u32 %v160_v1, 8 }
  0xcf   :  { %vm163_vm1 = vcmp.gt.s32.totalorder %v162_v32, 0  ;;  %v266_v37 = vadd.s32 1, %v3351_v33  ;;  %v3355_v14 = vadd.s32 4294967169, %v364_v4 }
  0xd0   :  { %v164_v36 = vsel %vm163_vm1, %v162_v32, 0 }
  0xd1   :  { %v166_v38 = vand.u32 31, %v164_v36  ;;  %v3919_v42 = vshrl.u32 %v164_v36, 5  ;;  %vm267_vm2 = vcmp.gt.s32.totalorder %v266_v37, 0  ;;  %v370_v22 = vadd.s32 1, %v3355_v14 }
  0xd2   :  { %v268_v0 = vsel %vm267_vm2, %v266_v37, 0 }
  0xd3   :  { %v167_v40 = vsub.s32 32, %v166_v38  ;;  %v169_v44 = vshll.u32 %v6460_v43, %v166_v38  ;;  %v172_v46 = vshll.u32 %v6464_v45, %v166_v38  ;;  %v175_v50 = vshll.u32 %v6453_v48, %v166_v38 }
  0xd4   :  { %v178_v53 = vshll.u32 %v6468_v51, %v166_v38  ;;  %v181_v56 = vshll.u32 %v6458_v54, %v166_v38  ;;  %vm184_vm3 = vcmp.lt.s32.totalorder %v3919_v42, 1  ;;  %vm187_vm4 = vcmp.lt.s32.totalorder %v3919_v42, 4 }
  0xd5   :  { %v170_v47 = vshrl.u32 %v6464_v45, %v167_v40  ;;  %v173_v49 = vshrl.u32 %v6453_v48, %v167_v40  ;;  %v176_v52 = vshrl.u32 %v6468_v51, %v167_v40  ;;  %v179_v55 = vshrl.u32 %v6458_v54, %v167_v40 }
  0xd6   :  { %v182_v58 = vshrl.u32 %v6456_v57, %v167_v40  ;;  %vm186_vm5 = vcmp.lt.s32.totalorder %v3919_v42, 3  ;;  %vm185_vm6 = vcmp.lt.s32.totalorder %v3919_v42, 2  ;;  %v270_v10 = vand.u32 31, %v268_v0 }
  0xd7   :  { %v171_v59 = vor.u32 %v170_v47, %v169_v44  ;;  %v174_v60 = vor.u32 %v173_v49, %v172_v46  ;;  %v177_v61 = vor.u32 %v176_v52, %v175_v50  ;;  %v180_v62 = vor.u32 %v179_v55, %v178_v53 }
  0xd8   :  { %v183_v63 = vor.u32 %v182_v58, %v181_v56  ;;  %v3956_v17 = vsub.s32 32, %v270_v10  ;;  %v168_v24 = vshrl.u32 %v6460_v43, %v167_v40  ;;  %v3967_v28 = vshrl.u32 %v268_v0, 5 }
  0xd9   :  { %v192_v3 = vsel %vm184_vm3, %v171_v59, %v174_v60  ;;  %v193_v5 = vsel %vm187_vm4, %v180_v62, 920167782  ;;  %v196_v6 = vsel %vm184_vm3, %v174_v60, %v177_v61  ;;  %v189_v21 = vsel %vm187_vm4, %v177_v61, 2102212464 }
  0xda   :  { %v197_v7 = vsel %vm187_vm4, %v183_v63, 1326507024  ;;  %v194_v8 = vsel %vm186_vm5, %v177_v61, %v193_v5  ;;  %v283_v25 = vshrl.u32 %v6458_v54, %v3956_v17  ;;  %v286_v29 = vshrl.u32 %v6456_v57, %v3956_v17 }
  0xdb   :  { %v198_v9 = vsel %vm186_vm5, %v180_v62, %v197_v7  ;;  %v195_v11 = vsel %vm185_vm6, %v192_v3, %v194_v8  ;;  %v188_v30 = vsel %vm184_vm3, %v168_v24, %v171_v59  ;;  %v190_v31 = vsel %vm186_vm5, %v174_v60, %v189_v21 }
  0xdc   :  { %v199_v12 = vsel %vm185_vm6, %v196_v6, %v198_v9  ;;  %v3952_v15 = vmul.u32.u64.low %v200_v13, %v195_v11  ;;  %v3953_v16 = vmul.u32.u64.high %v200_v13, %v195_v11, %v3952_v15  ;;  %v274_v32 = vshrl.u32 %v6464_v45, %v3956_v17 }
  0xdd   :  { %v3958_v18 = vmul.u32.u64.low %v200_v13, %v199_v12  ;;  %v3959_v19 = vmul.u32.u64.high %v200_v13, %v199_v12, %v3958_v18  ;;  %v282_v33 = vshll.u32 %v6468_v51, %v270_v10  ;;  %v277_v36 = vshrl.u32 %v6453_v48, %v3956_v17 }
  0xde   :  { %v280_v37 = vshrl.u32 %v6468_v51, %v3956_v17  ;;  %v285_v38 = vshll.u32 %v6458_v54, %v270_v10  ;;  %vm371_vm7 = vcmp.gt.s32.totalorder %v370_v22, 0  ;;  %v210_v40 = vadd.s32 1, %v3953_v16 }
  0xdf   :  { %v273_v41 = vshll.u32 %v6460_v43, %v270_v10  ;;  %v284_v44 = vor.u32 %v283_v25, %v282_v33  ;;  %vm209_vm8 = vc.u32 %v3959_v19, %v3952_v15  ;;  %v276_v46 = vshll.u32 %v6464_v45, %v270_v10 }
  0xe0   :  { %v279_v47 = vshll.u32 %v6453_v48, %v270_v10  ;;  %v287_v49 = vor.u32 %v286_v29, %v285_v38  ;;  %v191_v50 = vsel %vm185_vm6, %v188_v30, %v190_v31  ;;  %v263_v52 = vand.u32 8388607, %v6448_v27  ;;  %v4039_v31 = vpop.permute.xlu0 %47 }
  0xe1   :  { %v372_v53 = vsel %vm371_vm7, %v370_v22, 0  ;;  %v3994_v55 = vadd.f32 %v137_v39, %v3904_v20  ;;  %v275_v56 = vor.u32 %v274_v32, %v273_v41  ;;  %v278_v58 = vor.u32 %v277_v36, %v276_v46 }
  0xe2   :  { %v281_v59 = vor.u32 %v280_v37, %v279_v47  ;;  %vm291_vm9 = vcmp.lt.s32.totalorder %v3967_v28, 4  ;;  %v211_v60 = vsel %vm209_vm8, %v210_v40, %v3953_v16  ;;  %v207_v62 = vmul.u32 %v200_v13, %v191_v50 }
  0xe3   :  { %v297_v61 = vsel %vm291_vm9, %v284_v44, 920167782  ;;  %v301_v42 = vsel %vm291_vm9, %v287_v49, 1326507024  ;;  %v374_v63 = vand.u32 31, %v372_v53  ;;  %vm288_vm10 = vcmp.lt.s32.totalorder %v3967_v28, 1 }
  0xe4   :  { %vm290_vm11 = vcmp.lt.s32.totalorder %v3967_v28, 3  ;;  %v467_v20 = vand.u32 2139095040, %v3994_v55  ;;  %v212_v0 = vadd.s32 %v211_v60, %v207_v62  ;;  %v264_v1 = vor.u32 8388608, %v263_v52 }
  0xe5   :  { %v296_v3 = vsel %vm288_vm10, %v275_v56, %v278_v58  ;;  %v298_v4 = vsel %vm290_vm11, %v281_v59, %v297_v61  ;;  %v300_v5 = vsel %vm288_vm10, %v278_v58, %v281_v59  ;;  %v302_v6 = vsel %vm290_vm11, %v284_v44, %v301_v42  ;;  %v141_v42 = vpop.f32.mrf.mxu0 }
  0xe6   :  { %vm289_vm12 = vcmp.lt.s32.totalorder %v3967_v28, 2  ;;  %v6449_v7 = vand.u32 2147483647, %v3914_v35  ;;  %v4015_v8 = vsub.s32 32, %v374_v63  ;;  %v468_v10 = vshrl.u32 %v467_v20, 23 }
  0xe7   :  { %v299_v9 = vsel %vm289_vm12, %v296_v3, %v298_v4  ;;  %v213_v11 = vadd.s32 536870912, %v212_v0  ;;  %v303_v12 = vsel %vm289_vm12, %v300_v5, %v302_v6  ;;  %v4021_v13 = vshll.u32 %v264_v1, 8 }
  0xe8   :  { %v6450_v14 = vand.u32 2147483647, %v3994_v55  ;;  %v367_v21 = vand.u32 8388607, %v6449_v7  ;;  %v387_v22 = vshrl.u32 %v6458_v54, %v4015_v8  ;;  %v390_v29 = vshrl.u32 %v6456_v57, %v4015_v8 }
  0xe9   :  { %v4025_v16 = vmul.u32.u64.low %v4021_v13, %v299_v9  ;;  %v4026_v18 = vmul.u32.u64.high %v4021_v13, %v299_v9, %v4025_v16  ;;  %v4034_v24 = vmul.u32.u64.low %v4021_v13, %v303_v12  ;;  %v4035_v25 = vmul.u32.u64.high %v4021_v13, %v303_v12, %v4034_v24 }
  0xea   :  { %v3359_v30 = vadd.s32 4294967169, %v468_v10  ;;  %v4041_v32 = vshrl.u32 %v213_v11, 30  ;;  %v293_v33 = vsel %vm291_vm9, %v281_v59, 2102212464  ;;  %v378_v36 = vshrl.u32 %v6464_v45, %v4015_v8 }
  0xeb   :  { %v386_v37 = vshll.u32 %v6468_v51, %v374_v63  ;;  %v4048_v38 = vshrl.u32 %v372_v53, 5  ;;  %v381_v39 = vshrl.u32 %v6453_v48, %v4015_v8  ;;  %v384_v40 = vshrl.u32 %v6468_v51, %v4015_v8 }
  0xec   :  { %6494 = vst [vmem:[#allocation2_spill] sm:$0xff] %v4041_v32  ;;  %v389_v41 = vshll.u32 %v6458_v54, %v374_v63  ;;  %v272_v44 = vshrl.u32 %v6460_v43, %v3956_v17  ;;  %v377_v46 = vshll.u32 %v6460_v43, %v374_v63  ;;  %v471_v49 = vand.u32 8388607, %v6450_v14 }
  0xed   :  { %v388_v47 = vor.u32 %v387_v22, %v386_v37  ;;  %v380_v50 = vshll.u32 %v6464_v45, %v374_v63  ;;  %v383_v52 = vshll.u32 %v6453_v48, %v374_v63  ;;  %v474_v59 = vadd.s32 1, %v3359_v30  ;;  %v4072_v63 = vpop.permute.xlu0 %42 }
  0xee   :  { %v391_v53 = vor.u32 %v390_v29, %v389_v41  ;;  %v215_v60 = vshll.u32 %v4041_v32, 30  ;;  %v292_v61 = vsel %vm288_vm10, %v272_v44, %v275_v56  ;;  %v294_v17 = vsel %vm290_vm11, %v278_v58, %v293_v33 }
  0xef   :  { %v4067_v62 = vor.u32 %v378_v36, %v377_v46  ;;  %v4069_v20 = vor.u32 %v381_v39, %v380_v50  ;;  %v385_v1 = vor.u32 %v384_v40, %v383_v52  ;;  %vm395_vm13 = vcmp.lt.s32.totalorder %v4048_v38, 4 }
  0xf0   :  { %vm475_vm14 = vcmp.gt.s32.totalorder %v474_v59, 0  ;;  %v314_v3 = vadd.s32 1, %v4026_v18  ;;  %v368_v4 = vor.u32 8388608, %v367_v21  ;;  %v401_v56 = vsel %vm395_vm13, %v388_v47, 920167782 }
  0xf1   :  { %v476_v5 = vsel %vm475_vm14, %v474_v59, 0  ;;  %vm313_vm15 = vc.u32 %v4035_v25, %v4025_v16  ;;  %v405_v58 = vsel %vm395_vm13, %v391_v53, 1326507024  ;;  %v4082_v9 = vadd.f32 %v141_v42, %v4072_v63 }
  0xf2   :  { %v478_v6 = vand.u32 31, %v476_v5  ;;  %v4084_v10 = vsub.s32 %v212_v0, %v215_v60  ;;  %v295_v11 = vsel %vm289_vm12, %v292_v61, %v294_v17  ;;  %vm392_vm0 = vcmp.lt.s32.totalorder %v4048_v38, 1 }
  0xf3   :  { %vm394_vm1 = vcmp.lt.s32.totalorder %v4048_v38, 3  ;;  %v400_v12 = vsel %vm392_vm0, %v4067_v62, %v4069_v20  ;;  %v315_v0 = vsel %vm313_vm15, %v314_v3, %v4026_v18  ;;  %v404_v28 = vsel %vm392_vm0, %v4069_v20, %v385_v1 }
  0xf4   :  { %v402_v21 = vsel %vm394_vm1, %v385_v1, %v401_v56  ;;  %v4096_v22 = vsub.s32 32, %v478_v6  ;;  %v406_v24 = vsel %vm394_vm1, %v388_v47, %v405_v58  ;;  %v311_v29 = vmul.u32 %v4021_v13, %v295_v11 }
  0xf5   :  { %vm393_vm2 = vcmp.lt.s32.totalorder %v4048_v38, 2  ;;  %v4106_v30 = vshll.u32 %v368_v4, 8  ;;  %v472_v33 = vor.u32 8388608, %v471_v49  ;;  %v218_v36 = vsub.s32 0, %v4084_v10 }
  0xf6   :  { %v403_v37 = vsel %vm393_vm2, %v400_v12, %v402_v21  ;;  %v482_v18 = vshrl.u32 %v6464_v45, %v4096_v22  ;;  %v571_v39 = vand.u32 2139095040, %v4082_v9  ;;  %v4114_v40 = vadd.s32 %v315_v0, %v311_v29 }
  0xf7   :  { %v407_v13 = vsel %vm393_vm2, %v404_v28, %v406_v24  ;;  %v485_v41 = vshrl.u32 %v6453_v48, %v4096_v22  ;;  %v488_v44 = vshrl.u32 %v6468_v51, %v4096_v22  ;;  %v481_v46 = vshll.u32 %v6460_v43, %v478_v6 }
  0xf8   :  { %v484_v47 = vshll.u32 %v6464_v45, %v478_v6  ;;  %v490_v49 = vshll.u32 %v6468_v51, %v478_v6  ;;  %v491_v50 = vshrl.u32 %v6458_v54, %v4096_v22  ;;  %v4132_v59 = vshrl.u32 %v476_v5, 5 }
  0xf9   :  { %v4128_v52 = vmul.u32.u64.low %v4106_v30, %v403_v37  ;;  %v4129_v53 = vmul.u32.u64.high %v4106_v30, %v403_v37, %v4128_v52  ;;  %v487_v60 = vshll.u32 %v6453_v48, %v478_v6  ;;  %v483_v61 = vor.u32 %v482_v18, %v481_v46 }
  0xfa   :  { %v486_v17 = vor.u32 %v485_v41, %v484_v47  ;;  %v492_v42 = vor.u32 %v491_v50, %v490_v49  ;;  %v572_v3 = vshrl.u32 %v571_v39, 23  ;;  %v493_v56 = vshll.u32 %v6458_v54, %v478_v6 }
  0xfb   :  { %v489_v4 = vor.u32 %v488_v44, %v487_v60  ;;  %v494_v58 = vshrl.u32 %v6456_v57, %v4096_v22  ;;  %v3348_v11 = vmin.u32 %v218_v36, %v4084_v10  ;;  %v4143_v5 = vshll.u32 %v472_v33, 8 }
  0xfc   :  { %v4140_v12 = vmul.u32.u64.low %v4106_v30, %v407_v13  ;;  %v4141_v21 = vmul.u32.u64.high %v4106_v30, %v407_v13, %v4140_v12  ;;  %v317_v0 = vadd.s32 536870912, %v4114_v40  ;;  %vm496_vm3 = vcmp.lt.s32.totalorder %v4132_v59, 1 }
  0xfd   :  { %v495_v28 = vor.u32 %v494_v58, %v493_v56  ;;  %vm499_vm4 = vcmp.lt.s32.totalorder %v4132_v59, 4  ;;  %vm498_vm5 = vcmp.lt.s32.totalorder %v4132_v59, 3  ;;  %v504_v6 = vsel %vm496_vm3, %v483_v61, %v486_v17 }
  0xfe   :  { %v505_v24 = vsel %vm499_vm4, %v492_v42, 920167782  ;;  %v3363_v29 = vadd.s32 4294967169, %v572_v3  ;;  %v397_v33 = vsel %vm395_vm13, %v385_v1, 2102212464  ;;  %vm497_vm6 = vcmp.lt.s32.totalorder %v4132_v59, 2 }
  0xff   :  { %v506_v36 = vsel %vm498_vm5, %v489_v4, %v505_v24  ;;  %v508_v37 = vsel %vm496_vm3, %v486_v17, %v489_v4  ;;  %v376_v18 = vshrl.u32 %v6460_v43, %v4015_v8  ;;  %v509_v13 = vsel %vm499_vm4, %v495_v28, 1326507024 }
 0x100   :  { %v507_v39 = vsel %vm497_vm6, %v504_v6, %v506_v36  ;;  %v4166_v41 = vshrl.u32 %v317_v0, 30  ;;  %v510_v1 = vsel %vm498_vm5, %v492_v42, %v509_v13  ;;  %v398_v47 = vsel %vm394_vm1, %v4069_v20, %v397_v33  ;;  %v143_v6 = vpop.f32.mrf.mxu0 }
 0x101   :  { %v4171_v44 = vmul.u32.u64.low %v4143_v5, %v507_v39  ;;  %v4172_v46 = vmul.u32.u64.high %v4143_v5, %v507_v39, %v4171_v44  ;;  %v396_v8 = vsel %vm392_vm0, %v376_v18, %v4067_v62  ;;  %v511_v49 = vsel %vm497_vm6, %v508_v37, %v510_v1 }
 0x102   :  { %6495 = vst [vmem:[#allocation3_spill] sm:$0xff] %v4166_v41  ;;  %v578_v50 = vadd.s32 1, %v3363_v29  ;;  %v220_v60 = vclz %v3348_v11  ;;  %v418_v42 = vadd.s32 1, %v4129_v53  ;;  %vm417_vm7 = vc.u32 %v4141_v21, %v4128_v52 }
 0x103   :  { %v4185_v3 = vmul.u32.u64.low %v4143_v5, %v511_v49  ;;  %v4186_v56 = vmul.u32.u64.high %v4143_v5, %v511_v49, %v4185_v3  ;;  %v501_v62 = vsel %vm499_vm4, %v489_v4, 2102212464  ;;  %v6451_v58 = vand.u32 2147483647, %v4082_v9 }
 0x104   :  { %vm579_vm8 = vcmp.gt.s32.totalorder %v578_v50, 0  ;;  %v319_v20 = vshll.u32 %v4166_v41, 30  ;;  %v399_v11 = vsel %vm393_vm2, %v396_v8, %v398_v47  ;;  %v480_v12 = vshrl.u32 %v6460_v43, %v4096_v22 }
 0x105   :  { %v580_v0 = vsel %vm579_vm8, %v578_v50, 0  ;;  %v3349_v24 = vadd.s32 4294967294, %v220_v60  ;;  %v419_v29 = vsel %vm417_vm7, %v418_v42, %v4129_v53  ;;  %v502_v33 = vsel %vm498_vm5, %v486_v17, %v501_v62 }
 0x106   :  { %v582_v28 = vand.u32 31, %v580_v0  ;;  %v500_v4 = vsel %vm496_vm3, %v480_v12, %v483_v61  ;;  %v415_v36 = vmul.u32 %v4106_v30, %v399_v11  ;;  %v522_v38 = vadd.s32 1, %v4172_v46 }
 0x107   :  { %v4206_v18 = vsub.s32 %v4114_v40, %v319_v20  ;;  %vm521_vm9 = vc.u32 %v4186_v56, %v4171_v44  ;;  %v575_v22 = vand.u32 8388607, %v6451_v58  ;;  %v4213_v53 = vadd.f32 %v143_v6, %v4072_v63 }
 0x108   :  { %v583_v37 = vsub.s32 32, %v582_v28  ;;  %v4215_v61 = vadd.s32 %v419_v29, %v415_v36  ;;  %v503_v30 = vsel %vm497_vm6, %v500_v4, %v502_v33  ;;  %vm3350_vm10 = vcmp.lt.s32.totalorder %v3349_v24, 0 }
 0x109   :  { %v585_v40 = vshll.u32 %v6460_v43, %v582_v28  ;;  %v588_v13 = vshll.u32 %v6464_v45, %v582_v28  ;;  %v591_v1 = vshll.u32 %v6453_v48, %v582_v28  ;;  %v523_v63 = vsel %vm521_vm9, %v522_v38, %v4172_v46 }
 0x10a   :  { %v586_v17 = vshrl.u32 %v6464_v45, %v583_v37  ;;  %v589_v39 = vshrl.u32 %v6453_v48, %v583_v37  ;;  %v592_v8 = vshrl.u32 %v6468_v51, %v583_v37  ;;  %v581_v47 = vshrl.u32 %v580_v0, 5 }
 0x10b   :  { %v594_v49 = vshll.u32 %v6468_v51, %v582_v28  ;;  %v595_v59 = vshrl.u32 %v6458_v54, %v583_v37  ;;  %v519_v50 = vmul.u32 %v4143_v5, %v503_v30  ;;  %v576_v62 = vor.u32 8388608, %v575_v22 }
 0x10c   :  { %v587_v60 = vor.u32 %v586_v17, %v585_v40  ;;  %v590_v42 = vor.u32 %v589_v39, %v588_v13  ;;  %v593_v3 = vor.u32 %v592_v8, %v591_v1  ;;  %v597_v11 = vshll.u32 %v6458_v54, %v582_v28 }
 0x10d   :  { %v596_v20 = vor.u32 %v595_v59, %v594_v49  ;;  %v598_v12 = vshrl.u32 %v6456_v57, %v583_v37  ;;  %v322_v6 = vsub.s32 0, %v4206_v18  ;;  %v421_v46 = vadd.s32 536870912, %v4215_v61  ;;  %v147_v49 = vpop.f32.mrf.mxu0 }
 0x10e   :  { %v524_v0 = vadd.s32 %v523_v63, %v519_v50  ;;  %v675_v29 = vand.u32 2139095040, %v4213_v53  ;;  %v584_v4 = vshrl.u32 %v6460_v43, %v583_v37  ;;  %vm600_vm11 = vcmp.lt.s32.totalorder %v581_v47, 1 }
 0x10f   :  { %v599_v33 = vor.u32 %v598_v12, %v597_v11  ;;  %vm603_vm12 = vcmp.lt.s32.totalorder %v581_v47, 4  ;;  %vm602_vm13 = vcmp.lt.s32.totalorder %v581_v47, 3  ;;  %v608_v36 = vsel %vm600_vm11, %v587_v60, %v590_v42 }
 0x110   :  { %v605_v5 = vsel %vm603_vm12, %v593_v3, 2102212464  ;;  %v609_v38 = vsel %vm603_vm12, %v596_v20, 920167782  ;;  %vm601_vm14 = vcmp.lt.s32.totalorder %v581_v47, 2  ;;  %v612_v22 = vsel %vm600_vm11, %v590_v42, %v593_v3 }
 0x111   :  { %v610_v28 = vsel %vm602_vm13, %v593_v3, %v609_v38  ;;  %v616_v30 = vshll.u32 %v576_v62, 8  ;;  %v525_v17 = vadd.s32 536870912, %v524_v0  ;;  %v604_v39 = vsel %vm600_vm11, %v584_v4, %v587_v60 }
 0x112   :  { %v611_v40 = vsel %vm601_vm14, %v608_v36, %v610_v28  ;;  %v613_v13 = vsel %vm603_vm12, %v599_v33, 1326507024  ;;  %v606_v1 = vsel %vm602_vm13, %v590_v42, %v605_v5  ;;  %v3352_v59 = vmin.u32 %v322_v6, %v4206_v18  ;;  %v149_v5 = vpop.f32.mrf.mxu0 }
 0x113   :  { %v614_v8 = vsel %vm602_vm13, %v596_v20, %v613_v13  ;;  %v4236_v63 = vmul.u32.u64.low %v616_v30, %v611_v40  ;;  %v4237_v37 = vmul.u32.u64.high %v616_v30, %v611_v40, %v4236_v63  ;;  %v676_v11 = vshrl.u32 %v675_v29, 23 }
 0x114   :  { %v615_v50 = vsel %vm601_vm14, %v612_v22, %v614_v8  ;;  %v4243_v3 = vsel %vm3350_vm10, 0, %v3349_v24  ;;  %v4245_v62 = vshrl.u32 %v421_v46, 30  ;;  %v4250_v42 = vshrl.u32 %v525_v17, 30 }
 0x115   :  { %v4247_v60 = vmul.u32.u64.low %v616_v30, %v615_v50  ;;  %v4248_v12 = vmul.u32.u64.high %v616_v30, %v615_v50, %v4247_v60  ;;  %v607_v20 = vsel %vm601_vm14, %v604_v39, %v606_v1  ;;  %v3367_v4 = vadd.s32 4294967169, %v676_v11 }
 0x116   :  { %6496 = vst [vmem:[#allocation4_spill] sm:$0xff] %v4245_v62  ;;  %6497 = vst [vmem:[#allocation5_spill] sm:$0xff] %v4250_v42  ;;  %v626_v33 = vadd.s32 1, %v4237_v37  ;;  %v4255_v6 = vadd.f32 %v147_v49, %v4039_v31  ;;  %v228_v29 = vsub.s32 4294967266, %v4243_v3  ;;  %v324_v24 = vclz %v3352_v59 }
 0x117   :  { %v682_v36 = vadd.s32 1, %v3367_v4  ;;  %v423_v46 = vshll.u32 %v4245_v62, 30  ;;  %v623_v38 = vmul.u32 %v616_v30, %v607_v20  ;;  %vm625_vm15 = vc.u32 %v4248_v12, %v4236_v63 }
 0x118   :  { %v6452_v47 = vand.u32 2147483647, %v4213_v53  ;;  %v527_v28 = vshll.u32 %v4250_v42, 30  ;;  %v627_v22 = vsel %vm625_vm15, %v626_v33, %v4237_v37  ;;  %v4265_v17 = vadd.f32 %v149_v5, %v4039_v31 }
 0x119   :  { %vm683_vm0 = vcmp.gt.s32.totalorder %v682_v36, 0  ;;  %v628_v39 = vadd.s32 %v627_v22, %v623_v38  ;;  %v779_v13 = vand.u32 2139095040, %v4255_v6  ;;  %v208_v30 = vadd.s32 %v3952_v15, %v3959_v19 }
 0x11a   :  { %v684_v40 = vsel %vm683_vm0, %v682_v36, 0  ;;  %v224_v1 = vsub.s32 32, %v4243_v3  ;;  %v4271_v49 = vadd.s32 127, %v228_v29  ;;  %v3353_v59 = vadd.s32 4294967294, %v324_v24 }
 0x11b   :  { %v686_v8 = vand.u32 31, %v684_v40  ;;  %v4274_v50 = vsub.s32 %v4215_v61, %v423_v46  ;;  %v629_v37 = vadd.s32 536870912, %v628_v39  ;;  %v4276_v11 = vsub.s32 %v524_v0, %v527_v28 }
 0x11c   :  { %v679_v31 = vand.u32 8388607, %v6452_v47  ;;  %v883_v20 = vand.u32 2139095040, %v4265_v17  ;;  %v780_v33 = vshrl.u32 %v779_v13, 23  ;;  %v685_v36 = vshrl.u32 %v684_v40, 5 }
 0x11d   :  { %v687_v60 = vsub.s32 32, %v686_v8  ;;  %v4281_v4 = vshrl.u32 %v629_v37, 30  ;;  %v689_v15 = vshll.u32 %v6460_v43, %v686_v8  ;;  %v692_v19 = vshll.u32 %v6464_v45, %v686_v8 }
 0x11e   :  { %v695_v0 = vshll.u32 %v6453_v48, %v686_v8  ;;  %v698_v46 = vshll.u32 %v6468_v51, %v686_v8  ;;  %vm3354_vm1 = vcmp.lt.s32.totalorder %v3353_v59, 0  ;;  %v426_v13 = vsub.s32 0, %v4274_v50 }
 0x11f   :  { %v690_v5 = vshrl.u32 %v6464_v45, %v687_v60  ;;  %v693_v61 = vshrl.u32 %v6453_v48, %v687_v60  ;;  %v696_v29 = vshrl.u32 %v6468_v51, %v687_v60  ;;  %v631_v24 = vshll.u32 %v4281_v4, 30 }
 0x120   :  { %v699_v38 = vshrl.u32 %v6458_v54, %v687_v60  ;;  %v530_v2 = vsub.s32 0, %v4276_v11  ;;  %v680_v34 = vor.u32 8388608, %v679_v31  ;;  %v701_v7 = vshll.u32 %v6458_v54, %v686_v8 }
 0x121   :  { %v691_v28 = vor.u32 %v690_v5, %v689_v15  ;;  %v694_v22 = vor.u32 %v693_v61, %v692_v19  ;;  %v697_v37 = vor.u32 %v696_v29, %v695_v0  ;;  %v702_v14 = vshrl.u32 %v6456_v57, %v687_v60 }
 0x122   :  { %v700_v27 = vor.u32 %v699_v38, %v698_v46  ;;  %v3371_v58 = vadd.s32 4294967169, %v780_v33  ;;  %v884_v40 = vshrl.u32 %v883_v20, 23  ;;  %v4296_v47 = vsub.s32 %v628_v39, %v631_v24 }
 0x123   :  { %vm704_vm2 = vcmp.lt.s32.totalorder %v685_v36, 1  ;;  %vm706_vm3 = vcmp.lt.s32.totalorder %v685_v36, 3  ;;  %vm707_vm4 = vcmp.lt.s32.totalorder %v685_v36, 4  ;;  %v703_v15 = vor.u32 %v702_v14, %v701_v7 }
 0x124   :  { %v709_v19 = vsel %vm707_vm4, %v697_v37, 2102212464  ;;  %v712_v5 = vsel %vm704_vm2, %v691_v28, %v694_v22  ;;  %v713_v61 = vsel %vm707_vm4, %v700_v27, 920167782  ;;  %v688_v0 = vshrl.u32 %v6460_v43, %v687_v60 }
 0x125   :  { %vm705_vm5 = vcmp.lt.s32.totalorder %v685_v36, 2  ;;  %v714_v31 = vsel %vm706_vm3, %v697_v37, %v713_v61  ;;  %v720_v8 = vshll.u32 %v680_v34, 8  ;;  %v716_v20 = vsel %vm704_vm2, %v694_v22, %v697_v37 }
 0x126   :  { %v715_v29 = vsel %vm705_vm5, %v712_v5, %v714_v31  ;;  %v717_v39 = vsel %vm707_vm4, %v703_v15, 1326507024  ;;  %v3375_v33 = vadd.s32 4294967169, %v884_v40  ;;  %v634_v24 = vsub.s32 0, %v4296_v47 }
 0x127   :  { %v708_v7 = vsel %vm704_vm2, %v688_v0, %v691_v28  ;;  %v710_v14 = vsel %vm706_vm3, %v694_v22, %v709_v19  ;;  %v718_v46 = vsel %vm706_vm3, %v700_v27, %v717_v39  ;;  %v786_v34 = vadd.s32 1, %v3371_v58 }
 0x128   :  { %v719_v60 = vsel %vm705_vm5, %v716_v20, %v718_v46  ;;  %v4308_v38 = vmul.u32.u64.low %v720_v8, %v715_v29  ;;  %v4309_v48 = vmul.u32.u64.high %v720_v8, %v715_v29, %v4308_v38  ;;  %v230_v5 = vshll.u32 %v4271_v49, 23 }
 0x129   :  { %v4313_v37 = vmul.u32.u64.low %v720_v8, %v719_v60  ;;  %v4314_v15 = vmul.u32.u64.high %v720_v8, %v719_v60, %v4313_v37  ;;  %v226_v40 = vshrl.u32 %v208_v30, %v224_v1  ;;  %v4317_v61 = vsel %vm3354_vm1, 0, %v3353_v59 }
 0x12a   :  { %v3356_v28 = vmin.u32 %v426_v13, %v4274_v50  ;;  %vm787_vm6 = vcmp.gt.s32.totalorder %v786_v34, 0  ;;  %v3360_v27 = vmin.u32 %v530_v2, %v4276_v11  ;;  %v3364_v22 = vmin.u32 %v634_v24, %v4296_v47 }
 0x12b   :  { %v711_v19 = vsel %vm705_vm5, %v708_v7, %v710_v14  ;;  %v788_v0 = vsel %vm787_vm6, %v786_v34, 0  ;;  %v730_v58 = vadd.s32 1, %v4309_v48  ;;  %v890_v31 = vadd.s32 1, %v3375_v33 }
 0x12c   :  { %v4324_v49 = vand.u32 31, %v788_v0  ;;  %v225_v30 = vshll.u32 %v4084_v10, %v4243_v3  ;;  %v4328_v1 = vor.u32 4788187, %v230_v5  ;;  %v4332_v59 = vadd.s32 %v4025_v16, %v4035_v25 }
 0x12d   :  { %v6455_v2 = vand.u32 2147483647, %v4265_v17  ;;  %v332_v36 = vsub.s32 4294967266, %v4317_v61  ;;  %v428_v13 = vclz %v3356_v28  ;;  %v727_v29 = vmul.u32 %v720_v8, %v711_v19 }
 0x12e   :  { %vm729_vm7 = vc.u32 %v4314_v15, %v4308_v38  ;;  %v4338_v20 = vor.u32 %v226_v40, %v225_v30  ;;  %v532_v39 = vclz %v3360_v27  ;;  %v636_v33 = vclz %v3364_v22 }
 0x12f   :  { %v731_v10 = vsel %vm729_vm7, %v730_v58, %v4309_v48  ;;  %v4343_v3 = vadd.s32 %v4128_v52, %v4141_v21  ;;  %v4346_v25 = vsub.s32 32, %v4324_v49  ;;  %vm891_vm8 = vcmp.gt.s32.totalorder %v890_v31, 0 }
 0x130   :  { %v732_v16 = vadd.s32 %v731_v10, %v727_v29  ;;  %v892_v7 = vsel %vm891_vm8, %v890_v31, 0  ;;  %v887_v14 = vand.u32 8388607, %v6455_v2  ;;  %v4354_v46 = vadd.s32 127, %v332_v36 }
 0x131   :  { %v4356_v52 = vadd.s32 4294967294, %v428_v13  ;;  %v4358_v60 = vadd.s32 4294967294, %v532_v39  ;;  %v4360_v34 = vadd.s32 4294967294, %v636_v33  ;;  %v894_v5 = vand.u32 31, %v892_v7 }
 0x132   :  { %v733_v21 = vadd.s32 536870912, %v732_v16  ;;  %v4365_v28 = vshrl.u32 %v788_v0, 5  ;;  %v802_v27 = vshll.u32 %v6468_v51, %v4324_v49  ;;  %v803_v22 = vshrl.u32 %v6458_v54, %v4346_v25 }
 0x133   :  { %v4373_v19 = vshrl.u32 %v6456_v57, %v4346_v25  ;;  %v893_v58 = vshrl.u32 %v892_v7, 5  ;;  %v895_v31 = vsub.s32 32, %v894_v5  ;;  %v888_v30 = vor.u32 8388608, %v887_v14 }
 0x134   :  { %v4363_v40 = vshrl.u32 %v733_v21, 30  ;;  %v906_v13 = vshll.u32 %v6468_v51, %v894_v5  ;;  %v909_v0 = vshll.u32 %v6458_v54, %v894_v5  ;;  %v897_v29 = vshll.u32 %v6460_v43, %v894_v5 }
 0x135   :  { %v907_v39 = vshrl.u32 %v6458_v54, %v895_v31  ;;  %v910_v33 = vshrl.u32 %v6456_v57, %v895_v31  ;;  %v900_v10 = vshll.u32 %v6464_v45, %v894_v5  ;;  %v6498_v21 = vmov 2131351028  }
 0x136   :  { %v735_v36 = vshll.u32 %v4363_v40, 30  ;;  %v903_v2 = vshll.u32 %v6498_v21, %v894_v5  ;;  %v898_v7 = vshrl.u32 %v6464_v45, %v895_v31  ;;  %v901_v14 = vshrl.u32 %v6498_v21, %v895_v31 }
 0x137   :  { %v904_v48 = vshrl.u32 %v6468_v51, %v895_v31  ;;  %vm3358_vm9 = vcmp.lt.s32.totalorder %v4356_v52, 0  ;;  %vm3366_vm10 = vcmp.lt.s32.totalorder %v4360_v34, 0  ;;  %v908_v24 = vor.u32 %v907_v39, %v906_v13 }
 0x138   :  { %v4383_v8 = vsub.s32 %v732_v16, %v735_v36  ;;  %v911_v37 = vor.u32 %v910_v33, %v909_v0  ;;  %vm915_vm11 = vcmp.lt.s32.totalorder %v893_v58, 4  ;;  %v928_v57 = vshll.u32 %v888_v30, 8 }
 0x139   :  { %v899_v43 = vor.u32 %v898_v7, %v897_v29  ;;  %v902_v5 = vor.u32 %v901_v14, %v900_v10  ;;  %v905_v16 = vor.u32 %v904_v48, %v903_v2  ;;  %v921_v36 = vsel %vm915_vm11, %v908_v24, 920167782 }
 0x13a   :  { %v738_v54 = vsub.s32 0, %v4383_v8  ;;  %v925_v32 = vsel %vm915_vm11, %v911_v37, 1326507024  ;;  %v6499_v45 = vmov 683565275   ;;  %vm912_vm12 = vcmp.lt.s32.totalorder %v893_v58, 1 }
 0x13b   :  { %v896_v41 = vshrl.u32 %v6499_v45, %v895_v31  ;;  %vm913_vm13 = vcmp.lt.s32.totalorder %v893_v58, 2  ;;  %vm914_vm14 = vcmp.lt.s32.totalorder %v893_v58, 3  ;;  %v917_v62 = vsel %vm915_vm11, %v905_v16, 2102212464 }
 0x13c   :  { %v3368_v51 = vmin.u32 %v738_v54, %v4383_v8  ;;  %v920_v13 = vsel %vm912_vm12, %v899_v43, %v902_v5  ;;  %v922_v0 = vsel %vm914_vm14, %v905_v16, %v921_v36  ;;  %v924_v39 = vsel %vm912_vm12, %v902_v5, %v905_v16 }
 0x13d   :  { %v916_v42 = vsel %vm912_vm12, %v896_v41, %v899_v43  ;;  %v918_v33 = vsel %vm914_vm14, %v902_v5, %v917_v62  ;;  %v923_v29 = vsel %vm913_vm13, %v920_v13, %v922_v0  ;;  %v926_v10 = vsel %vm914_vm14, %v908_v24, %v925_v32 }
 0x13e   :  { %v740_v30 = vclz %v3368_v51  ;;  %v6500_v2 = vmov 920167782   ;;  %v927_v37 = vsel %vm913_vm13, %v924_v39, %v926_v10  ;;  %v804_v14 = vor.u32 %v803_v22, %v802_v27 }
 0x13f   :  { %v805_v48 = vshll.u32 %v6500_v2, %v4324_v49  ;;  %v4397_v31 = vmul.u32.u64.low %v928_v57, %v923_v29  ;;  %v4398_v7 = vmul.u32.u64.high %v928_v57, %v923_v29, %v4397_v31  ;;  %v919_v62 = vsel %vm913_vm13, %v916_v42, %v918_v33 }
 0x140   :  { %v3369_v54 = vadd.s32 4294967294, %v740_v30  ;;  %v4401_v41 = vmul.u32.u64.low %v928_v57, %v927_v37  ;;  %v4402_v43 = vmul.u32.u64.high %v928_v57, %v927_v37, %v4401_v41  ;;  %v6501_v32 = vand.u32 2147483647, %v4255_v6 }
 0x141   :  { %v807_v51 = vor.u32 %v4373_v19, %v805_v48  ;;  %v6502_v5 = vmov 2475754826   ;;  %v793_v36 = vshll.u32 %v6499_v45, %v4324_v49  ;;  %v797_v22 = vshrl.u32 %v6498_v21, %v4346_v25 }
 0x142   :  { %v783_v24 = vand.u32 8388607, %v6501_v32  ;;  %v794_v16 = vshrl.u32 %v6502_v5, %v4346_v25  ;;  %vm3370_vm15 = vcmp.lt.s32.totalorder %v3369_v54, 0  ;;  %v796_v27 = vshll.u32 %v6502_v5, %v4324_v49 }
 0x143   :  { %v4416_v13 = vsel %vm3370_vm15, 0, %v3369_v54  ;;  %v938_v42 = vadd.s32 1, %v4398_v7  ;;  %v799_v19 = vshll.u32 %v6498_v21, %v4324_v49  ;;  %v6503_v58 = vmov 2102212464  }
 0x144   :  { %v800_v0 = vshrl.u32 %v6503_v58, %v4346_v25  ;;  %v4426_v39 = vsel %vm3358_vm9, 0, %v4356_v52  ;;  %v4431_v30 = vsel %vm3366_vm10, 0, %v4360_v34  ;;  %vm811_vm0 = vcmp.lt.s32.totalorder %v4365_v28, 4 }
 0x145   :  { %v795_v33 = vor.u32 %v794_v16, %v793_v36  ;;  %v935_v29 = vmul.u32 %v928_v57, %v919_v62  ;;  %vm937_vm1 = vc.u32 %v4402_v43, %v4397_v31  ;;  %v798_v49 = vor.u32 %v797_v22, %v796_v27 }
 0x146   :  { %v801_v10 = vor.u32 %v800_v0, %v799_v19  ;;  %vm3362_vm2 = vcmp.lt.s32.totalorder %v4358_v60, 0  ;;  %v748_v48 = vsub.s32 4294967266, %v4416_v13  ;;  %v817_v52 = vsel %vm811_vm0, %v804_v14, 920167782 }
 0x147   :  { %v939_v37 = vsel %vm937_vm1, %v938_v42, %v4398_v7  ;;  %v821_v34 = vsel %vm811_vm0, %v807_v51, 1326507024  ;;  %v784_v41 = vor.u32 8388608, %v783_v24  ;;  %vm808_vm3 = vcmp.lt.s32.totalorder %v4365_v28, 1 }
 0x148   :  { %v940_v54 = vadd.s32 %v939_v37, %v935_v29  ;;  %v436_v57 = vsub.s32 4294967266, %v4426_v39  ;;  %v644_v62 = vsub.s32 4294967266, %v4431_v30  ;;  %vm810_vm4 = vcmp.lt.s32.totalorder %v4365_v28, 3 }
 0x149   :  { %v816_v32 = vsel %vm808_vm3, %v795_v33, %v798_v49  ;;  %v4450_v16 = vsel %vm3362_vm2, 0, %v4358_v60  ;;  %v818_v51 = vsel %vm810_vm4, %v801_v10, %v817_v52  ;;  %v820_v24 = vsel %vm808_vm3, %v798_v49, %v801_v10 }
 0x14a   :  { %v941_v7 = vadd.s32 536870912, %v940_v54  ;;  %v749_v36 = vadd.s32 127, %v748_v48  ;;  %vm809_vm5 = vcmp.lt.s32.totalorder %v4365_v28, 2  ;;  %v813_v27 = vsel %vm811_vm0, %v801_v10, 2102212464 }
 0x14b   :  { %v822_v22 = vsel %vm810_vm4, %v804_v14, %v821_v34  ;;  %v819_v60 = vsel %vm809_vm5, %v816_v32, %v818_v51  ;;  %v824_v0 = vshll.u32 %v784_v41, 8  ;;  %v540_v29 = vsub.s32 4294967266, %v4450_v16 }
 0x14c   :  { %v4461_v42 = vshrl.u32 %v941_v7, 30  ;;  %v823_v19 = vsel %vm809_vm5, %v820_v24, %v822_v22  ;;  %v640_v48 = vsub.s32 32, %v4431_v30  ;;  %v645_v52 = vadd.s32 127, %v644_v62 }
 0x14d   :  { %v792_v10 = vshrl.u32 %v6499_v45, %v4346_v25  ;;  %v744_v37 = vsub.s32 32, %v4416_v13  ;;  %v4473_v34 = vmul.u32.u64.low %v824_v0, %v823_v19  ;;  %v4474_v7 = vmul.u32.u64.high %v824_v0, %v823_v19, %v4473_v34 }
 0x14e   :  { %v943_v14 = vshll.u32 %v4461_v42, 30  ;;  %v814_v41 = vsel %vm810_vm4, %v798_v49, %v813_v27  ;;  %v4480_v51 = vmul.u32.u64.low %v824_v0, %v819_v60  ;;  %v4481_v24 = vmul.u32.u64.high %v824_v0, %v819_v60, %v4480_v51 }
 0x14f   :  { %v812_v32 = vsel %vm808_vm3, %v792_v10, %v795_v33  ;;  %v437_v62 = vadd.s32 127, %v436_v57  ;;  %v728_v25 = vadd.s32 %v4308_v38, %v4314_v15  ;;  %v750_v22 = vshll.u32 %v749_v36, 23 }
 0x150   :  { %v4486_v2 = vsub.s32 %v940_v54, %v943_v14  ;;  %v6504_v19 = vsub.s32 32, %v4317_v61  ;;  %v334_v33 = vshll.u32 %v4354_v46, 23  ;;  %v624_v49 = vadd.s32 %v4236_v63, %v4248_v12 }
 0x151   :  { %v646_v27 = vshll.u32 %v645_v52, 23  ;;  %v746_v60 = vshrl.u32 %v728_v25, %v744_v37  ;;  %v815_v57 = vsel %vm809_vm5, %v812_v32, %v814_v41  ;;  %vm833_vm6 = vc.u32 %v4474_v7, %v4480_v51 }
 0x152   :  { %v330_v34 = vshrl.u32 %v4332_v59, %v6504_v19  ;;  %v946_v10 = vsub.s32 0, %v4486_v2  ;;  %v432_v38 = vsub.s32 32, %v4426_v39  ;;  %v541_v15 = vadd.s32 127, %v540_v29 }
 0x153   :  { %v642_v54 = vshrl.u32 %v624_v49, %v640_v48  ;;  %v834_v59 = vadd.s32 1, %v4481_v24  ;;  %v438_v46 = vshll.u32 %v437_v62, 23  ;;  %v745_v63 = vshll.u32 %v4383_v8, %v4416_v13 }
 0x154   :  { %v751_v12 = vor.u32 4788187, %v750_v22  ;;  %v3376_v36 = vmin.u32 %v946_v10, %v4486_v2  ;;  %v536_v52 = vsub.s32 32, %v4450_v16  ;;  %v641_v28 = vshll.u32 %v4296_v47, %v4431_v30 }
 0x155   :  { %v831_v37 = vmul.u32 %v824_v0, %v815_v57  ;;  %v835_v14 = vsel %vm833_vm6, %v834_v59, %v4481_v24  ;;  %v6505_v29 = vshll.u32 %v4206_v18, %v4317_v61  ;;  %v647_v32 = vor.u32 4788187, %v646_v27 }
 0x156   :  { %v747_v41 = vor.u32 %v746_v60, %v745_v63  ;;  %v948_v62 = vclz %v3376_v36  ;;  %v520_v8 = vadd.s32 %v4171_v44, %v4186_v56  ;;  %v542_v13 = vshll.u32 %v541_v15, 23 }
 0x157   :  { %v331_v48 = vor.u32 %v330_v34, %v6505_v29  ;;  %v643_v25 = vor.u32 %v642_v54, %v641_v28  ;;  %v836_v22 = vadd.s32 %v835_v14, %v831_v37  ;;  %v335_v19 = vor.u32 4788187, %v334_v33 }
 0x158   :  { %v433_v47 = vshll.u32 %v4274_v50, %v4426_v39  ;;  %v752_v30 = vand.u32 2147483647, %v751_v12  ;;  %v3377_v0 = vadd.s32 4294967294, %v948_v62  ;;  %v434_v24 = vshrl.u32 %v4343_v3, %v432_v38 }
 0x159   :  { %v439_v49 = vor.u32 4788187, %v438_v46  ;;  %v538_v18 = vshrl.u32 %v520_v8, %v536_v52  ;;  %v837_v61 = vadd.s32 536870912, %v836_v22  ;;  %v537_v34 = vshll.u32 %v4276_v11, %v4450_v16 }
 0x15a   :  { %v648_v27 = vand.u32 2147483647, %v647_v32  ;;  %v754_v60 = vcvt.s32.f32 %v747_v41  ;;  %vm3378_vm7 = vcmp.lt.s32.totalorder %v3377_v0, 0  ;;  %v543_v44 = vor.u32 4788187, %v542_v13 }
 0x15b   :  { %v650_v56 = vcvt.s32.f32 %v643_v25  ;;  %v951_v10 = vsel %vm3378_vm7, 0, %v3377_v0  ;;  %v4518_v33 = vshrl.u32 %v837_v61, 30  ;;  %v936_v50 = vadd.s32 %v4397_v31, %v4402_v43 }
 0x15c   :  { %v755_v57 = vmul.f32 %v754_v60, %v752_v30  ;;  %v952_v39 = vsub.s32 32, %v951_v10  ;;  %v956_v3 = vsub.s32 4294967266, %v951_v10  ;;  %v336_v38 = vand.u32 2147483647, %v335_v19 }
 0x15d   :  { %v435_v15 = vor.u32 %v434_v24, %v433_v47  ;;  %v539_v54 = vor.u32 %v538_v18, %v537_v34  ;;  %v839_v59 = vshll.u32 %v4518_v33, 30  ;;  %v651_v11 = vmul.f32 %v650_v56, %v648_v27 }
 0x15e   :  { %v953_v16 = vshll.u32 %v4486_v2, %v951_v10  ;;  %v954_v46 = vshrl.u32 %v936_v50, %v952_v39  ;;  %v957_v63 = vadd.s32 127, %v956_v3  ;;  %v234_v12 = vcvt.s32.f32 %v4338_v20 }
 0x15f   :  { %v338_v36 = vcvt.s32.f32 %v331_v48  ;;  %v440_v52 = vand.u32 2147483647, %v439_v49  ;;  %v4525_v28 = vsub.s32 %v836_v22, %v839_v59  ;;  %v544_v37 = vand.u32 2147483647, %v543_v44 }
 0x160   :  { %v756_v31 = vxor.u32 2147483648, %v755_v57  ;;  %v955_v43 = vor.u32 %v954_v46, %v953_v16  ;;  %v958_v14 = vshll.u32 %v957_v63, 23  ;;  %v6506_v29 = vand.u32 2147483647, %v4328_v1 }
 0x161   :  { %v442_v41 = vcvt.s32.f32 %v435_v15  ;;  %v842_v62 = vsub.s32 0, %v4525_v28  ;;  %v339_v2 = vmul.f32 %v338_v36, %v336_v38  ;;  %v546_v8 = vcvt.s32.f32 %v539_v54 }
 0x162   :  { %v4529_v32 = vmul.f32 %v234_v12, %v6506_v29  ;;  %v652_v13 = vxor.u32 2147483648, %v651_v11  ;;  %v959_v25 = vor.u32 4788187, %v958_v14  ;;  %vm466_vm8 = vcmp.lt.s32.totalorder %v3994_v55, 0 }
 0x163   :  { %v443_v20 = vmul.f32 %v442_v41, %v440_v52  ;;  %vm570_vm9 = vcmp.lt.s32.totalorder %v4082_v9, 0  ;;  %vm674_vm10 = vcmp.lt.s32.totalorder %v4213_v53, 0  ;;  %v3372_v48 = vmin.u32 %v842_v62, %v4525_v28 }
 0x164   :  { %v547_v22 = vmul.f32 %v546_v8, %v544_v37  ;;  %v757_v1 = vsel %vm674_vm10, %v756_v31, %v755_v57  ;;  %v960_v19 = vand.u32 2147483647, %v959_v25  ;;  %v962_v47 = vcvt.s32.f32 %v955_v43 }
 0x165   :  { %v236_v30 = vxor.u32 2147483648, %v4529_v32  ;;  %vm362_vm11 = vcmp.lt.s32.totalorder %v3914_v35, 0  ;;  %v966_v0 = vsub.s32 4, %v4461_v42  ;;  %v844_v24 = vclz %v3372_v48 }
 0x166   :  { %v758_v49 = vsub.s32 4, %v4363_v40  ;;  %v340_v18 = vxor.u32 2147483648, %v339_v2  ;;  %v653_v61 = vsel %vm570_vm9, %v652_v13, %v651_v11  ;;  %v963_v34 = vmul.f32 %v962_v47, %v960_v19 }
 0x167   :  { %v6507_v27 = vand.u32 2147483647, %v4213_v53  ;;  %vm154_vm13 = vcmp.lt.s32.totalorder %v3906_v23, 0  ;;  %v444_v44 = vxor.u32 2147483648, %v443_v20  ;;  %vm882_vm14 = vcmp.lt.s32.totalorder %v4265_v17, 0 }
 0x168   :  { %v3373_v56 = vadd.s32 4294967294, %v844_v24  ;;  %v548_v57 = vxor.u32 2147483648, %v547_v22  ;;  %v6510_v50 = vand.u32 2147483647, %v4265_v17  ;;  %v964_v3 = vxor.u32 2147483648, %v963_v34 }
 0x169   :  { %vm4546_vm12 = vcmp.le.f32.partialorder %v6507_v27, 0.7853982  ;;  %v6513_v38 = vand.u32 2147483647, %v4082_v9  ;;  %v967_v54 = vsel %vm882_vm14, %v966_v0, %v4461_v42  ;;  %v759_v59 = vsel %vm674_vm10, %v758_v49, %v4363_v40 }
 0x16a   :  { %v760_v10 = vsel %vm4546_vm12, %v4213_v53, %v757_v1  ;;  %vm4557_vm15 = vcmp.le.f32.partialorder %v6510_v50, 0.7853982  ;;  %vm3374_vm1 = vcmp.lt.s32.totalorder %v3373_v56, 0  ;;  %v965_v16 = vsel %vm882_vm14, %v964_v3, %v963_v34  ;;  %v6519_v1 = vld [vmem:[#allocation5_spill] sm:$0xff] }
 0x16b   :  { %vm4563_vm0 = vcmp.le.f32.partialorder %v6513_v38, 0.7853982  ;;  %v832_v46 = vadd.s32 %v4480_v51, %v4474_v7  ;;  %v847_v63 = vsel %vm3374_vm1, 0, %v3373_v56  ;;  %3706 = vcosq.f32 %v760_v10 }
 0x16c   :  { %v656_v11 = vsel %vm4563_vm0, %v4082_v9, %v653_v61  ;;  %v968_v12 = vsel %vm4557_vm15, %v4265_v17, %v965_v16  ;;  %v848_v42 = vsub.s32 32, %v847_v63  ;;  %v852_v36 = vsub.s32 4294967266, %v847_v63 }
 0x16d   :  { %3708 = vsinq.f32 %v760_v10  ;;  %v549_v40 = vsel %vm466_vm8, %v548_v57, %v547_v22  ;;  %v969_v52 = vsel %vm4557_vm15, 0, %v967_v54  ;;  %v654_v37 = vsub.s32 4, %v4281_v4 }
 0x16e   :  { %3710 = vcosq.f32 %v968_v12  ;;  %v849_v7 = vshll.u32 %v4525_v28, %v847_v63  ;;  %v850_v51 = vshrl.u32 %v832_v46, %v848_v42  ;;  %v853_v31 = vadd.s32 127, %v852_v36  ;;  %v6533_v36 = vld [vmem:[#allocation3_spill] sm:$0xff] }
 0x16f   :  { %3712 = vsinq.f32 %v968_v12  ;;  %vm258_vm2 = vcmp.lt.s32.totalorder %v3909_v26, 0  ;;  %v445_v43 = vsel %vm362_vm11, %v444_v44, %v443_v20  ;;  %v761_v14 = vsel %vm4546_vm12, 0, %v759_v59  ;;  %v6532_v59 = vld [vmem:[#allocation4_spill] sm:$0xff] }
 0x170   :  { %3714 = vcosq.f32 %v656_v11  ;;  %v851_v29 = vor.u32 %v850_v51, %v849_v7  ;;  %v854_v41 = vshll.u32 %v853_v31, 23  ;;  %v6516_v62 = vand.u32 2147483647, %v3994_v55  ;;  %v6534_v51 = vld [vmem:[#allocation2_spill] sm:$0xff] }
 0x171   :  { %3716 = vsinq.f32 %v656_v11  ;;  %v237_v28 = vsel %vm154_vm13, %v236_v30, %v4529_v32  ;;  %v341_v13 = vsel %vm258_vm2, %v340_v18, %v339_v2  ;;  %v973_v25 = vadd.s32 3, %v969_v52 }
 0x172   :  { %vm4592_vm3 = vcmp.le.f32.partialorder %v6516_v62, 0.7853982  ;;  %v855_v48 = vor.u32 4788187, %v854_v41  ;;  %v655_v22 = vsel %vm570_vm9, %v654_v37, %v4281_v4  ;;  %v550_v19 = vsub.s32 4, %v6519_v1 }
 0x173   :  { %v552_v20 = vsel %vm4592_vm3, %v3994_v55, %v549_v40  ;;  %v6520_v47 = vand.u32 2147483647, %v3914_v35  ;;  %vm778_vm5 = vcmp.lt.s32.totalorder %v4255_v6, 0  ;;  %v862_v32 = vsub.s32 4, %v4518_v33 }
 0x174   :  { %v765_v2 = vadd.s32 3, %v761_v14  ;;  %v856_v24 = vand.u32 2147483647, %v855_v48  ;;  %v858_v49 = vcvt.s32.f32 %v851_v29  ;;  %3718 = vcosq.f32 %v552_v20 }
 0x175   :  { %vm4610_vm4 = vcmp.le.f32.partialorder %v6520_v47, 0.7853982  ;;  %v6523_v4 = vand.u32 2147483647, %v3909_v26  ;;  %v974_v61 = vand.u32 3, %v973_v25  ;;  %v657_v34 = vsel %vm4563_vm0, 0, %v655_v22 }
 0x176   :  { %v448_v30 = vsel %vm4610_vm4, %v3914_v35, %v445_v43  ;;  %3720 = vsinq.f32 %v552_v20  ;;  %v859_v60 = vmul.f32 %v858_v49, %v856_v24  ;;  %v551_v44 = vsel %vm466_vm8, %v550_v19, %v6519_v1 }
 0x177   :  { %vm4621_vm6 = vcmp.le.f32.partialorder %v6523_v4, 0.7853982  ;;  %3722 = vcosq.f32 %v448_v30  ;;  %v6526_v56 = vand.u32 2147483647, %v3906_v23  ;;  %vm972_vm9 = vweird.f32 %v4265_v17 }
 0x178   :  { %v344_v27 = vsel %vm4621_vm6, %v3909_v26, %v341_v13  ;;  %v6529_v57 = vand.u32 2147483647, %v4255_v6  ;;  %v863_v39 = vsel %vm778_vm5, %v862_v32, %v4518_v33  ;;  %3724 = vsinq.f32 %v448_v30  ;;  %v3707_v38 = vpop.eup %3706 }
 0x179   :  { %vm4635_vm7 = vcmp.le.f32.partialorder %v6526_v56, 0.7853982  ;;  %v860_v15 = vxor.u32 2147483648, %v859_v60  ;;  %v4652_v54 = vand.u32 3, %v765_v2  ;;  %v446_v11 = vsub.s32 4, %v6532_v59 }
 0x17a   :  { %vm4642_vm10 = vcmp.le.f32.partialorder %v6529_v57, 0.7853982  ;;  %v240_v3 = vsel %vm4635_vm7, %v3906_v23, %v237_v28  ;;  %3726 = vcosq.f32 %v344_v27  ;;  %v3709_v16 = vpop.eup %3708  ;;  %vm975_vm8 = vcmp.lt.s32.totalorder %v974_v61, 2 }
 0x17b   :  { %v661_v46 = vadd.s32 3, %v657_v34  ;;  %v553_v63 = vsel %vm4592_vm3, 0, %v551_v44  ;;  %3728 = vsinq.f32 %v344_v27  ;;  %v3711_v33 = vpop.eup %3710  ;;  %v861_v12 = vsel %vm778_vm5, %v860_v15, %v859_v60 }
 0x17c   :  { %v865_v42 = vsel %vm4642_vm10, 0, %v863_v39  ;;  %v342_v40 = vsub.s32 4, %v6533_v36  ;;  %3730 = vcosq.f32 %v240_v3  ;;  %v3713_v52 = vpop.eup %3712  ;;  %v980_v37 = vxor.u32 2147483648, %v3711_v33 }
 0x17d   :  { %v864_v7 = vsel %vm4642_vm10, %v4255_v6, %v861_v12  ;;  %v238_v31 = vsub.s32 4, %v6534_v51  ;;  %3732 = vsinq.f32 %v240_v3  ;;  %v3715_v43 = vpop.eup %3714  ;;  %v977_v14 = vxor.u32 2147483648, %v3713_v52 }
 0x17e   :  { %vm979_vm12 = vcmp.eq.s32.totalorder %v974_v61, 2  ;;  %3734 = vcosq.f32 %v864_v7  ;;  %v447_v29 = vsel %vm362_vm11, %v446_v11, %v6532_v59  ;;  %v3717_v41 = vpop.eup %3716  ;;  %vm976_vm14 = vcmp.eq.s32.totalorder %v974_v61, 0 }
 0x17f   :  { %v981_v62 = vsel %vm979_vm12, %v980_v37, %v3713_v52  ;;  %3736 = vsinq.f32 %v864_v7  ;;  %v662_v8 = vand.u32 3, %v661_v46  ;;  %v978_v28 = vsel %vm976_vm14, %v3711_v33, %v977_v14 }
 0x180   :  { %v869_v13 = vadd.s32 3, %v865_v42  ;;  %v772_v25 = vxor.u32 2147483648, %v3707_v38  ;;  %v557_v20 = vadd.s32 3, %v553_v63  ;;  %v982_v48 = vsel %vm975_vm8, %v978_v28, %v981_v62 }
 0x181   :  { %v449_v22 = vsel %vm4610_vm4, 0, %v447_v29  ;;  %v343_v1 = vsel %vm258_vm2, %v342_v40, %v6533_v36  ;;  %v239_v19 = vsel %vm154_vm13, %v238_v31, %v6534_v51  ;;  %v983_v47 = vsel %vm972_vm9, nan, %v982_v48  ;;  %v3719_v24 = vpop.eup %3718 }
 0x182   :  { %v769_v32 = vxor.u32 2147483648, %v3709_v16  ;;  %v665_v2 = vxor.u32 2147483648, %v3717_v41  ;;  %v668_v30 = vxor.u32 2147483648, %v3715_v43  ;;  %1050 = vmatprep.subr.mxu1 %v983_v47  ;;  %vm767_vm11 = vcmp.lt.s32.totalorder %v4652_v54, 2 }
 0x183   :  { %vm768_vm15 = vcmp.eq.s32.totalorder %v4652_v54, 0  ;;  %v3721_v0 = vpop.eup %3720  ;;  %v558_v49 = vand.u32 3, %v557_v20  ;;  %v453_v4 = vadd.s32 3, %v449_v22  ;;  %v345_v61 = vsel %vm4621_vm6, 0, %v343_v1 }
 0x184   :  { %v241_v34 = vsel %vm4635_vm7, 0, %v239_v19  ;;  %v3723_v17 = vpop.eup %3722  ;;  %v870_v27 = vand.u32 3, %v869_v13  ;;  %vm771_vm13 = vcmp.eq.s32.totalorder %v4652_v54, 2  ;;  %vm664_vm0 = vcmp.eq.s32.totalorder %v662_v8, 0 }
 0x185   :  { %vm667_vm1 = vcmp.eq.s32.totalorder %v662_v8, 2  ;;  %v3725_v60 = vpop.eup %3724  ;;  %v770_v44 = vsel %vm768_vm15, %v3707_v38, %v769_v32  ;;  %v773_v56 = vsel %vm771_vm13, %v772_v25, %v3709_v16  ;;  %v666_v57 = vsel %vm664_vm0, %v3715_v43, %v665_v2 }
 0x186   :  { %v669_v50 = vsel %vm667_vm1, %v668_v30, %v3717_v41  ;;  %v561_v3 = vxor.u32 2147483648, %v3721_v0  ;;  %v564_v15 = vxor.u32 2147483648, %v3719_v24  ;;  %v349_v59 = vadd.s32 3, %v345_v61 }
 0x187   :  { %v3727_v39 = vpop.eup %3726  ;;  %v245_v18 = vadd.s32 3, %v241_v34  ;;  %vm868_vm2 = vweird.f32 %v4255_v6  ;;  %vm663_vm3 = vcmp.lt.s32.totalorder %v662_v8, 2  ;;  %vm559_vm4 = vcmp.lt.s32.totalorder %v558_v49, 2 }
 0x188   :  { %v3729_v11 = vpop.eup %3728  ;;  %vm560_vm5 = vcmp.eq.s32.totalorder %v558_v49, 0  ;;  %v454_v10 = vand.u32 3, %v453_v4  ;;  %vm871_vm6 = vcmp.lt.s32.totalorder %v870_v27, 2  ;;  %vm872_vm7 = vcmp.eq.s32.totalorder %v870_v27, 0  ;;  %v4723_v4 = vpop.permute.xlu1 %1005 }
 0x189   :  { %v3731_v46 = vpop.eup %3730  ;;  %vm875_vm9 = vcmp.eq.s32.totalorder %v870_v27, 2  ;;  %vm764_vm10 = vweird.f32 %v4213_v53  ;;  %vm563_vm8 = vcmp.eq.s32.totalorder %v558_v49, 2  ;;  %v774_v16 = vsel %vm767_vm11, %v770_v44, %v773_v56  ;;  %v987_v49 = vld [vmem:[%s6442_s2 + $0x18] sm:$0xff] }
 0x18a   :  { %v3733_v38 = vpop.eup %3732  ;;  %v670_v63 = vsel %vm663_vm3, %v666_v57, %v669_v50  ;;  %v457_v33 = vxor.u32 2147483648, %v3725_v60  ;;  %v460_v12 = vxor.u32 2147483648, %v3723_v17  ;;  %v562_v36 = vsel %vm560_vm5, %v3719_v24, %v561_v3 }
 0x18b   :  { %v3735_v42 = vpop.eup %3734  ;;  %v565_v40 = vsel %vm563_vm8, %v564_v15, %v3721_v0  ;;  %v350_v52 = vand.u32 3, %v349_v59  ;;  %v246_v37 = vand.u32 3, %v245_v18  ;;  %vm456_vm12 = vcmp.eq.s32.totalorder %v454_v10, 0 }
 0x18c   :  { %v3737_v7 = vpop.eup %3736  ;;  %v876_v51 = vxor.u32 2147483648, %v3735_v42  ;;  %v353_v31 = vxor.u32 2147483648, %v3729_v11  ;;  %v356_v43 = vxor.u32 2147483648, %v3727_v39  ;;  %vm459_vm14 = vcmp.eq.s32.totalorder %v454_v10, 2  ;;  %v996_v61 = vpop.permute.xlu1 %995 }
 0x18d   :  { %v873_v14 = vxor.u32 2147483648, %v3737_v7  ;;  %v249_v29 = vxor.u32 2147483648, %v3733_v38  ;;  %v252_v41 = vxor.u32 2147483648, %v3731_v46  ;;  %v566_v62 = vsel %vm559_vm4, %v562_v36, %v565_v40 }
 0x18e   :  { %v877_v54 = vsel %vm875_vm9, %v876_v51, %v3737_v7  ;;  %v458_v8 = vsel %vm456_vm12, %v3723_v17, %v457_v33  ;;  %v461_v28 = vsel %vm459_vm14, %v460_v12, %v3725_v60  ;;  %vm352_vm11 = vcmp.eq.s32.totalorder %v350_v52, 0 }
 0x18f   :  { %v874_v13 = vsel %vm872_vm7, %v3735_v42, %v873_v14  ;;  %vm355_vm15 = vcmp.eq.s32.totalorder %v350_v52, 2  ;;  %vm248_vm13 = vcmp.eq.s32.totalorder %v246_v37, 0  ;;  %v354_v20 = vsel %vm352_vm11, %v3727_v39, %v353_v31  ;;  %v4731_v39 = vpop.permute.xlu0 %1010 }
 0x190   :  { %v878_v25 = vsel %vm871_vm6, %v874_v13, %v877_v54  ;;  %v357_v48 = vsel %vm355_vm15, %v356_v43, %v3729_v11  ;;  %vm251_vm0 = vcmp.eq.s32.totalorder %v246_v37, 2  ;;  %vm455_vm1 = vcmp.lt.s32.totalorder %v454_v10, 2 }
 0x191   :  { %v879_v22 = vsel %vm868_vm2, nan, %v878_v25  ;;  %v250_v1 = vsel %vm248_vm13, %v3731_v46, %v249_v29  ;;  %v253_v19 = vsel %vm251_vm0, %v252_v41, %v3733_v38  ;;  %v775_v47 = vsel %vm764_vm10, nan, %v774_v16 }
 0x192   :  { %1051 = vmatpush1.msra.mxu1 %v879_v22  ;;  %vm660_vm3 = vweird.f32 %v4082_v9  ;;  %v462_v32 = vsel %vm455_vm1, %v458_v8, %v461_v28  ;;  %vm351_vm4 = vcmp.lt.s32.totalorder %v350_v52, 2  ;;  %vm556_vm5 = vweird.f32 %v3994_v55  ;;  %v984_v9 = vld [vmem:[%s6442_s2] sm:$0xff] }
 0x193   :  { %1052 = vmatprep.subr.mxu1 %v775_v47  ;;  %v671_v2 = vsel %vm660_vm3, nan, %v670_v63  ;;  %v358_v30 = vsel %vm351_vm4, %v354_v20, %v357_v48  ;;  %vm247_vm6 = vcmp.lt.s32.totalorder %v246_v37, 2  ;;  %v567_v6 = vsel %vm556_vm5, nan, %v566_v62  ;;  %v1001_v16 = vpop.permute.xlu0 %1000 }
 0x194   :  { %1053 = vmatpush1.msra.mxu1 %v671_v2  ;;  %vm452_vm2 = vweird.f32 %v3914_v35  ;;  %v254_v24 = vsel %vm247_vm6, %v250_v1, %v253_v19  ;;  %vm348_vm7 = vweird.f32 %v3909_v26  ;;  %vm244_vm9 = vweird.f32 %v3906_v23  ;;  %v985_v26 = vld [vmem:[%s6442_s2 + $0x8] sm:$0xff]  ;;  %v986_v23 = vld [vmem:[%s6442_s2 + $0x10] sm:$0xff] }
 0x195   :  { %1054 = vmatprep.subr.mxu1 %v567_v6  ;;  %v463_v0 = vsel %vm452_vm2, nan, %v462_v32  ;;  %v359_v53 = vsel %vm348_vm7, nan, %v358_v30  ;;  %vm6493_vm10 = vcmask 261120   ;;  %v255_v55 = vsel %vm244_vm9, nan, %v254_v24 }
 0x196   :  { %1055 = vmatpush1.msra.mxu1 %v463_v0  ;;  %v6535_v35 = vmov 0.0   ;;  %v6536_v43 = vmov 920167782   ;;  %v6537_v41 = vmov 1326507024  }
 0x197   :  { %1056 = vmatprep.subr.mxu1 %v359_v53 }
 0x198   :  { %1057 = vmatpush1.msra.mxu1 %v255_v55 }
 0x199   :  { %3383 = vmatmul.mubr.msk.f32.vlgmr.msra.gmra.mxu1 %vm6493_vm10, %v984_v9 }
 0x19a   :  { %1096 = vmatprep.mubr.f32.mxu1 %v6535_v35 }
 0x19d   :  { %3384 = vmatmul.mubr.msk.f32.gmra.mxu1 %vm6493_vm10, %v985_v26 }
 0x19e   :  { %1102 = vmatprep.mubr.f32.mxu1 %v6535_v35 }
 0x1a1   :  { %3385 = vmatmul.mubr.msk.f32.gmra.mxu1 %vm6493_vm10, %v986_v23 }
 0x1a2   :  { %1108 = vmatprep.mubr.f32.mxu1 %v6535_v35 }
 0x1a5   :  { %3386 = vmatmul.mubr.msk.f32.gmra.mxu1 %vm6493_vm10, %v987_v49 }
 0x259   :  { %v1092_v34 = vpop.f32.mrf.mxu1 }
 0x25a   :  { %v4725_v17 = vadd.f32 %v1092_v34, %v996_v61 }
 0x25b   :  { %v1094_v27 = vpop.f32.mrf.mxu1 }
 0x25c   :  { %v1118_v60 = vand.u32 2139095040, %v4725_v17  ;;  %v4728_v44 = vadd.f32 %v1094_v27, %v996_v61  ;;  %v6479_v18 = vand.u32 2147483647, %v4725_v17 }
 0x25d   :  { %v1098_v46 = vpop.f32.mrf.mxu1 }
 0x25e   :  { %v1119_v56 = vshrl.u32 %v1118_v60, 23  ;;  %v1222_v57 = vand.u32 2139095040, %v4728_v44  ;;  %v1122_v63 = vand.u32 8388607, %v6479_v18  ;;  %v4736_v12 = vadd.f32 %v1098_v46, %v1001_v16 }
 0x25f   :  { %v1100_v34 = vpop.f32.mrf.mxu1  ;;  %v6474_v27 = vand.u32 2147483647, %v4728_v44 }
 0x260   :  { %v3387_v50 = vadd.s32 4294967169, %v1119_v56  ;;  %v1223_v3 = vshrl.u32 %v1222_v57, 23  ;;  %v1123_v25 = vor.u32 8388608, %v1122_v63  ;;  %v1326_v1 = vand.u32 2139095040, %v4736_v12 }
 0x262   :  { %v1125_v15 = vadd.s32 1, %v3387_v50  ;;  %v3391_v59 = vadd.s32 4294967169, %v1223_v3  ;;  %v1163_v53 = vshll.u32 %v1123_v25, 8  ;;  %v1327_v9 = vshrl.u32 %v1326_v1, 23 }
 0x264   :  { %vm1126_vm8 = vcmp.gt.s32.totalorder %v1125_v15, 0  ;;  %v1229_v10 = vadd.s32 1, %v3391_v59  ;;  %v3395_v60 = vadd.s32 4294967169, %v1327_v9  ;;  %v4790_v59 = vadd.f32 %v1100_v34, %v1001_v16 }
 0x265   :  { %v1127_v11 = vsel %vm1126_vm8, %v1125_v15, 0  ;;  %v6477_v34 = vand.u32 2147483647, %v4736_v12 }
 0x266   :  { %v1129_v38 = vand.u32 31, %v1127_v11  ;;  %v4738_v42 = vshrl.u32 %v1127_v11, 5  ;;  %vm1230_vm12 = vcmp.gt.s32.totalorder %v1229_v10, 0 }
 0x267   :  { %v1231_v13 = vsel %vm1230_vm12, %v1229_v10, 0 }
 0x268   :  { %v1130_v33 = vsub.s32 32, %v1129_v38  ;;  %v1132_v36 = vshll.u32 %v6499_v45, %v1129_v38  ;;  %v1135_v40 = vshll.u32 %v6502_v5, %v1129_v38  ;;  %v1138_v7 = vshll.u32 %v6498_v21, %v1129_v38 }
 0x269   :  { %v1141_v31 = vshll.u32 %v6503_v58, %v1129_v38  ;;  %v1144_v29 = vshll.u32 %v6536_v43, %v1129_v38  ;;  %vm1147_vm14 = vcmp.lt.s32.totalorder %v4738_v42, 1  ;;  %vm1149_vm11 = vcmp.lt.s32.totalorder %v4738_v42, 3 }
 0x26a   :  { %v1133_v52 = vshrl.u32 %v6502_v5, %v1130_v33  ;;  %v1136_v37 = vshrl.u32 %v6498_v21, %v1130_v33  ;;  %v1139_v51 = vshrl.u32 %v6503_v58, %v1130_v33  ;;  %v1142_v14 = vshrl.u32 %v6536_v43, %v1130_v33 }
 0x26b   :  { %v1145_v54 = vshrl.u32 %v6537_v41, %v1130_v33  ;;  %vm1150_vm15 = vcmp.lt.s32.totalorder %v4738_v42, 4  ;;  %v1233_v2 = vand.u32 31, %v1231_v13  ;;  %vm1148_vm13 = vcmp.lt.s32.totalorder %v4738_v42, 2 }
 0x26c   :  { %v1134_v62 = vor.u32 %v1133_v52, %v1132_v36  ;;  %v1137_v8 = vor.u32 %v1136_v37, %v1135_v40  ;;  %v1140_v28 = vor.u32 %v1139_v51, %v1138_v7  ;;  %v1143_v20 = vor.u32 %v1142_v14, %v1141_v31 }
 0x26d   :  { %v1146_v48 = vor.u32 %v1145_v54, %v1144_v29  ;;  %v4771_v55 = vsub.s32 32, %v1233_v2  ;;  %v1131_v56 = vshrl.u32 %v6499_v45, %v1130_v33  ;;  %v4788_v15 = vshrl.u32 %v1231_v13, 5 }
 0x26e   :  { %v1155_v22 = vsel %vm1147_vm14, %v1134_v62, %v1137_v8  ;;  %v1156_v19 = vsel %vm1150_vm15, %v1143_v20, 920167782  ;;  %v1159_v47 = vsel %vm1147_vm14, %v1137_v8, %v1140_v28  ;;  %v1152_v57 = vsel %vm1150_vm15, %v1140_v28, 2102212464 }
 0x26f   :  { %v1160_v32 = vsel %vm1150_vm15, %v1146_v48, 1326507024  ;;  %v1157_v30 = vsel %vm1149_vm11, %v1140_v28, %v1156_v19  ;;  %v1246_v50 = vshrl.u32 %v6536_v43, %v4771_v55  ;;  %v1249_v3 = vshrl.u32 %v6537_v41, %v4771_v55 }
 0x270   :  { %v1161_v6 = vsel %vm1149_vm11, %v1143_v20, %v1160_v32  ;;  %v1158_v24 = vsel %vm1148_vm13, %v1155_v22, %v1157_v30  ;;  %v1151_v11 = vsel %vm1147_vm14, %v1131_v56, %v1134_v62  ;;  %v1237_v10 = vshrl.u32 %v6502_v5, %v4771_v55 }
 0x271   :  { %v1162_v0 = vsel %vm1148_vm13, %v1159_v47, %v1161_v6  ;;  %v4773_v26 = vmul.u32.u64.low %v1163_v53, %v1158_v24  ;;  %v4774_v23 = vmul.u32.u64.high %v1163_v53, %v1158_v24, %v4773_v26  ;;  %v1245_v46 = vshll.u32 %v6503_v58, %v1233_v2 }
 0x272   :  { %v4777_v49 = vmul.u32.u64.low %v1163_v53, %v1162_v0  ;;  %v4778_v61 = vmul.u32.u64.high %v1163_v53, %v1162_v0, %v4777_v49  ;;  %v1248_v38 = vshll.u32 %v6536_v43, %v1233_v2  ;;  %v1153_v63 = vsel %vm1149_vm11, %v1137_v8, %v1152_v57 }
 0x273   :  { %v1240_v33 = vshrl.u32 %v6498_v21, %v4771_v55  ;;  %v1243_v16 = vshrl.u32 %v6503_v58, %v4771_v55  ;;  %v1333_v36 = vadd.s32 1, %v3395_v60  ;;  %v1226_v40 = vand.u32 8388607, %v6474_v27 }
 0x274   :  { %v1236_v52 = vshll.u32 %v6499_v45, %v1233_v2  ;;  %v1247_v37 = vor.u32 %v1246_v50, %v1245_v46  ;;  %v1250_v7 = vor.u32 %v1249_v3, %v1248_v38  ;;  %v1173_v51 = vadd.s32 1, %v4774_v23 }
 0x275   :  { %v1239_v31 = vshll.u32 %v6502_v5, %v1233_v2  ;;  %v1242_v14 = vshll.u32 %v6498_v21, %v1233_v2  ;;  %v1430_v29 = vand.u32 2139095040, %v4790_v59  ;;  %v1154_v54 = vsel %vm1148_vm13, %v1151_v11, %v1153_v63 }
 0x276   :  { %vm1172_vm0 = vc.u32 %v4778_v61, %v4773_v26  ;;  %v1238_v62 = vor.u32 %v1237_v10, %v1236_v52  ;;  %vm1334_vm1 = vcmp.gt.s32.totalorder %v1333_v36, 0  ;;  %vm1254_vm3 = vcmp.lt.s32.totalorder %v4788_v15, 4 }
 0x277   :  { %v1241_v8 = vor.u32 %v1240_v33, %v1239_v31  ;;  %v1244_v28 = vor.u32 %v1243_v16, %v1242_v14  ;;  %v1335_v13 = vsel %vm1334_vm1, %v1333_v36, 0  ;;  %v1260_v25 = vsel %vm1254_vm3, %v1247_v37, 920167782 }
 0x278   :  { %v1264_v20 = vsel %vm1254_vm3, %v1250_v7, 1326507024  ;;  %v1337_v48 = vand.u32 31, %v1335_v13  ;;  %v1174_v42 = vsel %vm1172_vm0, %v1173_v51, %v4774_v23  ;;  %v1227_v22 = vor.u32 8388608, %v1226_v40 }
 0x279   :  { %v1170_v1 = vmul.u32 %v1163_v53, %v1154_v54  ;;  %vm1251_vm4 = vcmp.lt.s32.totalorder %v4788_v15, 1  ;;  %vm1253_vm5 = vcmp.lt.s32.totalorder %v4788_v15, 3  ;;  %v1431_v19 = vshrl.u32 %v1430_v29, 23 }
 0x27a   :  { %v1259_v47 = vsel %vm1251_vm4, %v1238_v62, %v1241_v8  ;;  %v1261_v32 = vsel %vm1253_vm5, %v1244_v28, %v1260_v25  ;;  %v1263_v2 = vsel %vm1251_vm4, %v1241_v8, %v1244_v28  ;;  %v1265_v30 = vsel %vm1253_vm5, %v1247_v37, %v1264_v20 }
 0x27b   :  { %v1175_v6 = vadd.s32 %v1174_v42, %v1170_v1  ;;  %v4831_v24 = vsub.s32 32, %v1337_v48  ;;  %vm1252_vm6 = vcmp.lt.s32.totalorder %v4788_v15, 2  ;;  %v1267_v9 = vshll.u32 %v1227_v22, 8 }
 0x27c   :  { %v1262_v0 = vsel %vm1252_vm6, %v1259_v47, %v1261_v32  ;;  %v1266_v53 = vsel %vm1252_vm6, %v1263_v2, %v1265_v30  ;;  %v3399_v23 = vadd.s32 4294967169, %v1431_v19  ;;  %v1235_v11 = vshrl.u32 %v6499_v45, %v4771_v55 }
 0x27d   :  { %v1176_v49 = vadd.s32 536870912, %v1175_v6  ;;  %v1350_v60 = vshrl.u32 %v6536_v43, %v4831_v24  ;;  %v4841_v56 = vmul.u32.u64.low %v1267_v9, %v1266_v53  ;;  %v4842_v57 = vmul.u32.u64.high %v1267_v9, %v1266_v53, %v4841_v56 }
 0x27e   :  { %v4844_v50 = vmul.u32.u64.low %v1267_v9, %v1262_v0  ;;  %v4845_v3 = vmul.u32.u64.high %v1267_v9, %v1262_v0, %v4844_v50  ;;  %v1341_v10 = vshrl.u32 %v6502_v5, %v4831_v24  ;;  %v1344_v46 = vshrl.u32 %v6498_v21, %v4831_v24 }
 0x27f   :  { %v1349_v38 = vshll.u32 %v6503_v58, %v1337_v48  ;;  %v4855_v63 = vshrl.u32 %v1335_v13, 5  ;;  %v1347_v33 = vshrl.u32 %v6503_v58, %v4831_v24  ;;  %v1353_v16 = vshrl.u32 %v6537_v41, %v4831_v24 }
 0x280   :  { %v1437_v36 = vadd.s32 1, %v3399_v23  ;;  %v4861_v40 = vshrl.u32 %v1176_v49, 30  ;;  %v1340_v55 = vshll.u32 %v6499_v45, %v1337_v48  ;;  %v1343_v52 = vshll.u32 %v6502_v5, %v1337_v48 }
 0x281   :  { %v1351_v37 = vor.u32 %v1350_v60, %v1349_v38  ;;  %v1256_v7 = vsel %vm1254_vm3, %v1244_v28, 2102212464  ;;  %v1346_v51 = vshll.u32 %v6498_v21, %v1337_v48  ;;  %v1352_v31 = vshll.u32 %v6536_v43, %v1337_v48 }
 0x282   :  { %6538 = vst [vmem:[#allocation5_spill] sm:$0xff] %v4861_v40  ;;  %v1255_v14 = vsel %vm1251_vm4, %v1235_v11, %v1238_v62  ;;  %v1330_v29 = vand.u32 8388607, %v6477_v34  ;;  %v4873_v54 = vor.u32 %v1341_v10, %v1340_v55  ;;  %v4875_v13 = vor.u32 %v1344_v46, %v1343_v52 }
 0x283   :  { %v1348_v25 = vor.u32 %v1347_v33, %v1346_v51  ;;  %v1354_v20 = vor.u32 %v1353_v16, %v1352_v31  ;;  %vm1358_vm2 = vcmp.lt.s32.totalorder %v4855_v63, 4  ;;  %vm1438_vm7 = vcmp.gt.s32.totalorder %v1437_v36, 0 }
 0x284   :  { %v1178_v28 = vshll.u32 %v4861_v40, 30  ;;  %v1257_v48 = vsel %vm1253_vm5, %v1241_v8, %v1256_v7  ;;  %v1364_v62 = vsel %vm1358_vm2, %v1351_v37, 920167782  ;;  %v1439_v42 = vsel %vm1438_vm7, %v1437_v36, 0 }
 0x285   :  { %v1277_v22 = vadd.s32 1, %v4845_v3  ;;  %v1441_v1 = vand.u32 31, %v1439_v42  ;;  %vm1276_vm9 = vc.u32 %v4842_v57, %v4844_v50  ;;  %v1331_v19 = vor.u32 8388608, %v1330_v29 }
 0x286   :  { %vm1355_vm8 = vcmp.lt.s32.totalorder %v4855_v63, 1  ;;  %vm1357_vm12 = vcmp.lt.s32.totalorder %v4855_v63, 3  ;;  %v1258_v47 = vsel %vm1252_vm6, %v1255_v14, %v1257_v48  ;;  %v1368_v2 = vsel %vm1358_vm2, %v1354_v20, 1326507024 }
 0x287   :  { %v1363_v8 = vsel %vm1355_vm8, %v4873_v54, %v4875_v13  ;;  %v1365_v32 = vsel %vm1357_vm12, %v1348_v25, %v1364_v62  ;;  %v4898_v30 = vsub.s32 %v1175_v6, %v1178_v28  ;;  %v6475_v0 = vand.u32 2147483647, %v4790_v59 }
 0x288   :  { %v1278_v53 = vsel %vm1276_vm9, %v1277_v22, %v4845_v3  ;;  %vm1356_vm14 = vcmp.lt.s32.totalorder %v4855_v63, 2  ;;  %v4903_v15 = vsub.s32 32, %v1441_v1  ;;  %v1274_v23 = vmul.u32 %v1267_v9, %v1258_v47  ;;  %v1104_v9 = vpop.f32.mrf.mxu1 }
 0x289   :  { %v1366_v49 = vsel %vm1356_vm14, %v1363_v8, %v1365_v32  ;;  %v1367_v60 = vsel %vm1355_vm8, %v4875_v13, %v1348_v25  ;;  %v1369_v6 = vsel %vm1357_vm12, %v1351_v37, %v1368_v2  ;;  %v4912_v56 = vshll.u32 %v1331_v19, 8 }
 0x28a   :  { %v1181_v11 = vsub.s32 0, %v4898_v30  ;;  %v4915_v3 = vadd.s32 %v1278_v53, %v1274_v23  ;;  %v1434_v10 = vand.u32 8388607, %v6475_v0  ;;  %v1370_v46 = vsel %vm1356_vm14, %v1367_v60, %v1369_v6 }
 0x28b   :  { %v4922_v38 = vmul.u32.u64.low %v4912_v56, %v1366_v49  ;;  %v4923_v33 = vmul.u32.u64.high %v4912_v56, %v1366_v49, %v4922_v38  ;;  %v1445_v16 = vshrl.u32 %v6502_v5, %v4903_v15  ;;  %v1448_v36 = vshrl.u32 %v6498_v21, %v4903_v15 }
 0x28c   :  { %v1451_v55 = vshrl.u32 %v6503_v58, %v4903_v15  ;;  %v1453_v52 = vshll.u32 %v6503_v58, %v1441_v1  ;;  %v1454_v37 = vshrl.u32 %v6536_v43, %v4903_v15  ;;  %v4935_v7 = vshrl.u32 %v1439_v42, 5 }
 0x28d   :  { %v1444_v51 = vshll.u32 %v6499_v45, %v1441_v1  ;;  %v1457_v31 = vshrl.u32 %v6537_v41, %v4903_v15  ;;  %v4941_v14 = vadd.f32 %v1104_v9, %v4723_v4  ;;  %v1447_v29 = vshll.u32 %v6502_v5, %v1441_v1 }
 0x28e   :  { %v1450_v20 = vshll.u32 %v6498_v21, %v1441_v1  ;;  %v1455_v28 = vor.u32 %v1454_v37, %v1453_v52  ;;  %v1456_v48 = vshll.u32 %v6536_v43, %v1441_v1  ;;  %v3388_v62 = vmin.u32 %v1181_v11, %v4898_v30  ;;  %v1106_v37 = vpop.f32.mrf.mxu1 }
 0x28f   :  { %v1280_v42 = vadd.s32 536870912, %v4915_v3  ;;  %v4949_v22 = vmul.u32.u64.low %v4912_v56, %v1370_v46  ;;  %v4950_v19 = vmul.u32.u64.high %v4912_v56, %v1370_v46, %v4949_v22  ;;  %v1446_v47 = vor.u32 %v1445_v16, %v1444_v51 }
 0x290   :  { %v1449_v8 = vor.u32 %v1448_v36, %v1447_v29  ;;  %v1452_v32 = vor.u32 %v1451_v55, %v1450_v20  ;;  %v1458_v2 = vor.u32 %v1457_v31, %v1456_v48  ;;  %vm1462_vm11 = vcmp.lt.s32.totalorder %v4935_v7, 4 }
 0x291   :  { %v1360_v53 = vsel %vm1358_vm2, %v1348_v25, 2102212464  ;;  %v1435_v23 = vor.u32 8388608, %v1434_v10  ;;  %v1468_v1 = vsel %vm1462_vm11, %v1455_v28, 920167782  ;;  %v1534_v49 = vand.u32 2139095040, %v4941_v14 }
 0x292   :  { %v1183_v60 = vclz %v3388_v62  ;;  %v1339_v6 = vshrl.u32 %v6499_v45, %v4831_v24  ;;  %vm1459_vm15 = vcmp.lt.s32.totalorder %v4935_v7, 1  ;;  %vm1461_vm13 = vcmp.lt.s32.totalorder %v4935_v7, 3 }
 0x293   :  { %v4962_v11 = vshrl.u32 %v1280_v42, 30  ;;  %v1467_v9 = vsel %vm1459_vm15, %v1446_v47, %v1449_v8  ;;  %v1469_v25 = vsel %vm1461_vm13, %v1452_v32, %v1468_v1  ;;  %v1472_v10 = vsel %vm1462_vm11, %v1458_v2, 1326507024 }
 0x294   :  { %v1359_v46 = vsel %vm1355_vm8, %v1339_v6, %v4873_v54  ;;  %v1361_v24 = vsel %vm1357_vm12, %v4875_v13, %v1360_v53  ;;  %v1471_v16 = vsel %vm1459_vm15, %v1449_v8, %v1452_v32  ;;  %v1473_v36 = vsel %vm1461_vm13, %v1455_v28, %v1472_v10 }
 0x295   :  { %6539 = vst [vmem:[#allocation4_spill] sm:$0xff] %v4962_v11  ;;  %v1381_v55 = vadd.s32 1, %v4923_v33  ;;  %vm1460_vm0 = vcmp.lt.s32.totalorder %v4935_v7, 2  ;;  %v1535_v52 = vshrl.u32 %v1534_v49, 23  ;;  %v3389_v51 = vadd.s32 4294967294, %v1183_v60 }
 0x296   :  { %vm1380_vm1 = vc.u32 %v4950_v19, %v4922_v38  ;;  %v1470_v54 = vsel %vm1460_vm0, %v1467_v9, %v1469_v25  ;;  %v1362_v13 = vsel %vm1356_vm14, %v1359_v46, %v1361_v24  ;;  %v1474_v31 = vsel %vm1460_vm0, %v1471_v16, %v1473_v36 }
 0x297   :  { %v4990_v29 = vshll.u32 %v1435_v23, 8  ;;  %v3403_v20 = vadd.s32 4294967169, %v1535_v52  ;;  %v1282_v28 = vshll.u32 %v4962_v11, 30  ;;  %v4994_v48 = vadd.f32 %v1106_v37, %v4723_v4 }
 0x298   :  { %v1382_v62 = vsel %vm1380_vm1, %v1381_v55, %v4923_v33  ;;  %vm3390_vm3 = vcmp.lt.s32.totalorder %v3389_v51, 0  ;;  %v1378_v2 = vmul.u32 %v4912_v56, %v1362_v13  ;;  %v1464_v1 = vsel %vm1462_vm11, %v1452_v32, 2102212464 }
 0x299   :  { %v4998_v42 = vmul.u32.u64.low %v4990_v29, %v1470_v54  ;;  %v4999_v22 = vmul.u32.u64.high %v4990_v29, %v1470_v54, %v4998_v42  ;;  %v1541_v63 = vadd.s32 1, %v3403_v20  ;;  %v5010_v4 = vsub.s32 %v4915_v3, %v1282_v28 }
 0x29a   :  { %v5004_v53 = vmul.u32.u64.low %v4990_v29, %v1474_v31  ;;  %v5005_v23 = vmul.u32.u64.high %v4990_v29, %v1474_v31, %v5004_v53  ;;  %v5012_v33 = vadd.s32 %v1382_v62, %v1378_v2  ;;  %v1443_v49 = vshrl.u32 %v6499_v45, %v4903_v15 }
 0x29b   :  { %vm1542_vm4 = vcmp.gt.s32.totalorder %v1541_v63, 0  ;;  %v1638_v60 = vand.u32 2139095040, %v4994_v48  ;;  %v5017_v6 = vsel %vm3390_vm3, 0, %v3389_v51  ;;  %v6478_v56 = vand.u32 2147483647, %v4941_v14 }
 0x29c   :  { %v1543_v9 = vsel %vm1542_vm4, %v1541_v63, 0  ;;  %v1463_v25 = vsel %vm1459_vm15, %v1443_v49, %v1446_v47  ;;  %v1465_v32 = vsel %vm1461_vm13, %v1449_v8, %v1464_v1  ;;  %v1191_v10 = vsub.s32 4294967266, %v5017_v6 }
 0x29d   :  { %v1545_v3 = vand.u32 31, %v1543_v9  ;;  %v1285_v46 = vsub.s32 0, %v5010_v4  ;;  %v1384_v15 = vadd.s32 536870912, %v5012_v33  ;;  %v1639_v24 = vshrl.u32 %v1638_v60, 23 }
 0x29e   :  { %v1466_v16 = vsel %vm1460_vm0, %v1463_v25, %v1465_v32  ;;  %v1485_v36 = vadd.s32 1, %v4999_v22  ;;  %v1538_v55 = vand.u32 8388607, %v6478_v56  ;;  %vm1484_vm5 = vc.u32 %v5005_v23, %v4998_v42 }
 0x29f   :  { %v1546_v47 = vsub.s32 32, %v1545_v3  ;;  %v1544_v8 = vshrl.u32 %v1543_v9, 5  ;;  %v1548_v52 = vshll.u32 %v6499_v45, %v1545_v3  ;;  %v1551_v37 = vshll.u32 %v6502_v5, %v1545_v3 }
 0x2a0   :  { %v1554_v7 = vshll.u32 %v6498_v21, %v1545_v3  ;;  %v1557_v31 = vshll.u32 %v6503_v58, %v1545_v3  ;;  %v1560_v28 = vshll.u32 %v6536_v43, %v1545_v3  ;;  %v3407_v62 = vadd.s32 4294967169, %v1639_v24 }
 0x2a1   :  { %v1549_v51 = vshrl.u32 %v6502_v5, %v1546_v47  ;;  %v1552_v54 = vshrl.u32 %v6498_v21, %v1546_v47  ;;  %v1555_v13 = vshrl.u32 %v6503_v58, %v1546_v47  ;;  %v1558_v20 = vshrl.u32 %v6536_v43, %v1546_v47 }
 0x2a2   :  { %v1561_v1 = vshrl.u32 %v6537_v41, %v1546_v47  ;;  %v5044_v49 = vshrl.u32 %v1384_v15, 30  ;;  %v1482_v60 = vmul.u32 %v4990_v29, %v1466_v16  ;;  %v1539_v9 = vor.u32 8388608, %v1538_v55 }
 0x2a3   :  { %v1550_v63 = vor.u32 %v1549_v51, %v1548_v52  ;;  %v1553_v2 = vor.u32 %v1552_v54, %v1551_v37  ;;  %v1556_v53 = vor.u32 %v1555_v13, %v1554_v7  ;;  %v1559_v25 = vor.u32 %v1558_v20, %v1557_v31 }
 0x2a4   :  { %v1486_v32 = vsel %vm1484_vm5, %v1485_v36, %v4999_v22  ;;  %v1562_v27 = vor.u32 %v1561_v1, %v1560_v28  ;;  %vm1563_vm6 = vcmp.lt.s32.totalorder %v1544_v8, 1  ;;  %v6476_v3 = vand.u32 2147483647, %v4994_v48 }
 0x2a5   :  { %vm1565_vm2 = vcmp.lt.s32.totalorder %v1544_v8, 3  ;;  %vm1566_vm7 = vcmp.lt.s32.totalorder %v1544_v8, 4  ;;  %v1571_v24 = vsel %vm1563_vm6, %v1550_v63, %v1553_v2  ;;  %v1645_v52 = vadd.s32 1, %v3407_v62 }
 0x2a6   :  { %v1568_v15 = vsel %vm1566_vm7, %v1556_v53, 2102212464  ;;  %v1572_v37 = vsel %vm1566_vm7, %v1559_v25, 920167782  ;;  %v1575_v29 = vsel %vm1563_vm6, %v1553_v2, %v1556_v53  ;;  %v1576_v16 = vsel %vm1566_vm7, %v1562_v27, 1326507024 }
 0x2a7   :  { %v5054_v55 = vadd.s32 %v1486_v32, %v1482_v60  ;;  %v1547_v51 = vshrl.u32 %v6499_v45, %v1546_v47  ;;  %vm1564_vm9 = vcmp.lt.s32.totalorder %v1544_v8, 2  ;;  %v1573_v22 = vsel %vm1565_vm2, %v1556_v53, %v1572_v37 }
 0x2a8   :  { %v3392_v36 = vmin.u32 %v1285_v46, %v5010_v4  ;;  %v1574_v54 = vsel %vm1564_vm9, %v1571_v24, %v1573_v22  ;;  %v1577_v7 = vsel %vm1565_vm2, %v1559_v25, %v1576_v16  ;;  %v1579_v13 = vshll.u32 %v1539_v9, 8 }
 0x2a9   :  { %v1567_v31 = vsel %vm1563_vm6, %v1547_v51, %v1550_v63  ;;  %v1569_v20 = vsel %vm1565_vm2, %v1553_v2, %v1568_v15  ;;  %v1578_v27 = vsel %vm1564_vm9, %v1575_v29, %v1577_v7  ;;  %vm1646_vm8 = vcmp.gt.s32.totalorder %v1645_v52, 0 }
 0x2aa   :  { %v1386_v28 = vshll.u32 %v5044_v49, 30  ;;  %v5065_v47 = vmul.u32.u64.low %v1579_v13, %v1578_v27  ;;  %v5066_v62 = vmul.u32.u64.high %v1579_v13, %v1578_v27, %v5065_v47  ;;  %v1647_v53 = vsel %vm1646_vm8, %v1645_v52, 0 }
 0x2ab   :  { %v1488_v46 = vadd.s32 536870912, %v5054_v55  ;;  %v5069_v1 = vmul.u32.u64.low %v1579_v13, %v1574_v54  ;;  %v5070_v60 = vmul.u32.u64.high %v1579_v13, %v1574_v54, %v5069_v1  ;;  %v1642_v63 = vand.u32 8388607, %v6476_v3 }
 0x2ac   :  { %v1570_v2 = vsel %vm1564_vm9, %v1567_v31, %v1569_v20  ;;  %v1649_v9 = vand.u32 31, %v1647_v53  ;;  %v5078_v25 = vadd.s32 %v4773_v26, %v4778_v61  ;;  %v5081_v24 = vadd.s32 127, %v1191_v10  ;;  %v1110_v31 = vpop.f32.mrf.mxu1 }
 0x2ad   :  { %v1287_v52 = vclz %v3392_v36  ;;  %v5084_v15 = vsub.s32 %v5012_v33, %v1386_v28  ;;  %vm1588_vm12 = vc.u32 %v5066_v62, %v5069_v1  ;;  %v5088_v29 = vshrl.u32 %v1488_v46, 30 }
 0x2ae   :  { %v1650_v37 = vsub.s32 32, %v1649_v9  ;;  %v1586_v8 = vmul.u32 %v1579_v13, %v1570_v2  ;;  %v1589_v16 = vadd.s32 1, %v5070_v60  ;;  %v1643_v51 = vor.u32 8388608, %v1642_v63 }
 0x2af   :  { %v1648_v26 = vshrl.u32 %v1647_v53, 5  ;;  %v1652_v61 = vshll.u32 %v6499_v45, %v1649_v9  ;;  %v1655_v36 = vshll.u32 %v6502_v5, %v1649_v9  ;;  %v1658_v54 = vshll.u32 %v6498_v21, %v1649_v9 }
 0x2b0   :  { %v1653_v10 = vshrl.u32 %v6502_v5, %v1650_v37  ;;  %v1656_v22 = vshrl.u32 %v6498_v21, %v1650_v37  ;;  %v1590_v33 = vsel %vm1588_vm12, %v1589_v16, %v5070_v60  ;;  %v1659_v7 = vshrl.u32 %v6503_v58, %v1650_v37 }
 0x2b1   :  { %v3393_v13 = vadd.s32 4294967294, %v1287_v52  ;;  %v1389_v20 = vsub.s32 0, %v5084_v15  ;;  %v1591_v27 = vadd.s32 %v1590_v33, %v1586_v8  ;;  %v1661_v46 = vshll.u32 %v6503_v58, %v1649_v9  ;;  %v1112_v33 = vpop.f32.mrf.mxu1 }
 0x2b2   :  { %v1654_v28 = vor.u32 %v1653_v10, %v1652_v61  ;;  %v1657_v47 = vor.u32 %v1656_v22, %v1655_v36  ;;  %v1660_v53 = vor.u32 %v1659_v7, %v1658_v54  ;;  %v1662_v63 = vshrl.u32 %v6536_v43, %v1650_v37 }
 0x2b3   :  { %v1592_v2 = vadd.s32 536870912, %v1591_v27  ;;  %v1664_v60 = vshll.u32 %v6536_v43, %v1649_v9  ;;  %v1665_v16 = vshrl.u32 %v6537_v41, %v1650_v37  ;;  %v5104_v0 = vadd.f32 %v1110_v31, %v4731_v39 }
 0x2b4   :  { %v1490_v52 = vshll.u32 %v5088_v29, 30  ;;  %v1663_v3 = vor.u32 %v1662_v63, %v1661_v46  ;;  %vm1667_vm14 = vcmp.lt.s32.totalorder %v1648_v26, 1  ;;  %v1683_v8 = vshll.u32 %v1643_v51, 8 }
 0x2b5   :  { %v5107_v61 = vshrl.u32 %v1592_v2, 30  ;;  %v1651_v10 = vshrl.u32 %v6499_v45, %v1650_v37  ;;  %v1666_v22 = vor.u32 %v1665_v16, %v1664_v60  ;;  %vm1670_vm11 = vcmp.lt.s32.totalorder %v1648_v26, 4 }
 0x2b6   :  { %vm1669_vm15 = vcmp.lt.s32.totalorder %v1648_v26, 3  ;;  %v1672_v36 = vsel %vm1670_vm11, %v1660_v53, 2102212464  ;;  %v1675_v9 = vsel %vm1667_vm14, %v1654_v28, %v1657_v47  ;;  %v1676_v54 = vsel %vm1670_vm11, %v1663_v3, 920167782 }
 0x2b7   :  { %v1594_v7 = vshll.u32 %v5107_v61, 30  ;;  %vm1668_vm13 = vcmp.lt.s32.totalorder %v1648_v26, 2  ;;  %v1677_v31 = vsel %vm1669_vm15, %v1660_v53, %v1676_v54  ;;  %v1679_v34 = vsel %vm1667_vm14, %v1657_v47, %v1660_v53 }
 0x2b8   :  { %v1671_v56 = vsel %vm1667_vm14, %v1651_v10, %v1654_v28  ;;  %v1678_v46 = vsel %vm1668_vm13, %v1675_v9, %v1677_v31  ;;  %v1680_v51 = vsel %vm1670_vm11, %v1666_v22, 1326507024  ;;  %v5113_v63 = vadd.f32 %v1112_v33, %v4731_v39 }
 0x2b9   :  { %v1673_v37 = vsel %vm1669_vm15, %v1657_v47, %v1672_v36  ;;  %v1681_v2 = vsel %vm1669_vm15, %v1663_v3, %v1680_v51  ;;  %v5115_v60 = vmul.u32.u64.low %v1683_v8, %v1678_v46  ;;  %v5116_v16 = vmul.u32.u64.high %v1683_v8, %v1678_v46, %v5115_v60 }
 0x2ba   :  { %v5120_v18 = vsub.s32 %v5054_v55, %v1490_v52  ;;  %v5122_v32 = vsub.s32 %v1591_v27, %v1594_v7  ;;  %v1682_v53 = vsel %vm1668_vm13, %v1679_v34, %v1681_v2  ;;  %v1742_v28 = vand.u32 2139095040, %v5104_v0 }
 0x2bb   :  { %v5126_v10 = vmul.u32.u64.low %v1683_v8, %v1682_v53  ;;  %v5127_v22 = vmul.u32.u64.high %v1683_v8, %v1682_v53, %v5126_v10  ;;  %v6540_v39 = vsub.s32 32, %v5017_v6  ;;  %v1674_v47 = vsel %vm1668_vm13, %v1671_v56, %v1673_v37 }
 0x2bc   :  { %v1743_v33 = vshrl.u32 %v1742_v28, 23  ;;  %v1846_v36 = vand.u32 2139095040, %v5113_v63  ;;  %v1188_v55 = vshll.u32 %v4898_v30, %v5017_v6  ;;  %v1193_v27 = vshll.u32 %v5081_v24, 23 }
 0x2bd   :  { %v1189_v3 = vshrl.u32 %v5078_v25, %v6540_v39  ;;  %v3396_v34 = vmin.u32 %v1389_v20, %v5084_v15  ;;  %v1693_v52 = vadd.s32 1, %v5116_v16  ;;  %vm3394_vm0 = vcmp.lt.s32.totalorder %v3393_v13, 0 }
 0x2be   :  { %v1493_v9 = vsub.s32 0, %v5120_v18  ;;  %v1597_v54 = vsub.s32 0, %v5122_v32  ;;  %v3411_v25 = vadd.s32 4294967169, %v1743_v33  ;;  %v1690_v26 = vmul.u32 %v1683_v8, %v1674_v47 }
 0x2bf   :  { %vm1692_vm1 = vc.u32 %v5127_v22, %v5115_v60  ;;  %v1847_v56 = vshrl.u32 %v1846_v36, 23  ;;  %v5143_v7 = vor.u32 %v1189_v3, %v1188_v55  ;;  %v5146_v24 = vor.u32 4788187, %v1193_v27 }
 0x2c0   :  { %v1694_v30 = vsel %vm1692_vm1, %v1693_v52, %v5116_v16  ;;  %v1749_v6 = vadd.s32 1, %v3411_v25  ;;  %v5148_v20 = vsel %vm3394_vm0, 0, %v3393_v13  ;;  %v1391_v31 = vclz %v3396_v34 }
 0x2c1   :  { %v1695_v46 = vadd.s32 %v1694_v30, %v1690_v26  ;;  %v3400_v51 = vmin.u32 %v1493_v9, %v5120_v18  ;;  %v3404_v37 = vmin.u32 %v1597_v54, %v5122_v32  ;;  %v6480_v8 = vand.u32 2147483647, %v5104_v0 }
 0x2c2   :  { %vm1750_vm3 = vcmp.gt.s32.totalorder %v1749_v6, 0  ;;  %v3415_v28 = vadd.s32 4294967169, %v1847_v56  ;;  %v5156_v16 = vadd.s32 %v4844_v50, %v4842_v57  ;;  %v5160_v47 = vadd.s32 4294967294, %v1391_v31 }
 0x2c3   :  { %v1696_v2 = vadd.s32 536870912, %v1695_v46  ;;  %v1751_v53 = vsel %vm1750_vm3, %v1749_v6, 0  ;;  %v1495_v36 = vclz %v3400_v51  ;;  %v1599_v55 = vclz %v3404_v37 }
 0x2c4   :  { %v1753_v13 = vand.u32 31, %v1751_v53  ;;  %v1746_v27 = vand.u32 8388607, %v6480_v8  ;;  %v1853_v9 = vadd.s32 1, %v3415_v28  ;;  %v1752_v6 = vshrl.u32 %v1751_v53, 5 }
 0x2c5   :  { %v5162_v33 = vshrl.u32 %v1696_v2, 30  ;;  %v3401_v37 = vadd.s32 4294967294, %v1495_v36  ;;  %v6486_v35 = vand.u32 2147483647, %v5113_v63  ;;  %v3405_v40 = vadd.s32 4294967294, %v1599_v55 }
 0x2c6   :  { %v1754_v34 = vsub.s32 32, %v1753_v13  ;;  %v1756_v57 = vshll.u32 %v6499_v45, %v1753_v13  ;;  %v1759_v50 = vshll.u32 %v6502_v5, %v1753_v13  ;;  %v1762_v26 = vshll.u32 %v6498_v21, %v1753_v13 }
 0x2c7   :  { %v1698_v52 = vshll.u32 %v5162_v33, 30  ;;  %v1765_v31 = vshll.u32 %v6503_v58, %v1753_v13  ;;  %v1747_v10 = vor.u32 8388608, %v1746_v27  ;;  %v1768_v11 = vshll.u32 %v6536_v43, %v1753_v13 }
 0x2c8   :  { %v1757_v54 = vshrl.u32 %v6502_v5, %v1754_v34  ;;  %v1760_v25 = vshrl.u32 %v6498_v21, %v1754_v34  ;;  %v1763_v56 = vshrl.u32 %v6503_v58, %v1754_v34  ;;  %v1766_v51 = vshrl.u32 %v6536_v43, %v1754_v34 }
 0x2c9   :  { %v5173_v30 = vsub.s32 %v1695_v46, %v1698_v52  ;;  %v1769_v46 = vshrl.u32 %v6537_v41, %v1754_v34  ;;  %vm1854_vm4 = vcmp.gt.s32.totalorder %v1853_v9, 0  ;;  %vm1771_vm5 = vcmp.lt.s32.totalorder %v1752_v6, 1 }
 0x2ca   :  { %v1758_v2 = vor.u32 %v1757_v54, %v1756_v57  ;;  %v1761_v8 = vor.u32 %v1760_v25, %v1759_v50  ;;  %v1764_v3 = vor.u32 %v1763_v56, %v1762_v26  ;;  %v1767_v39 = vor.u32 %v1766_v51, %v1765_v31 }
 0x2cb   :  { %v1701_v28 = vsub.s32 0, %v5173_v30  ;;  %vm1773_vm6 = vcmp.lt.s32.totalorder %v1752_v6, 3  ;;  %vm1774_vm2 = vcmp.lt.s32.totalorder %v1752_v6, 4  ;;  %v1770_v36 = vor.u32 %v1769_v46, %v1768_v11 }
 0x2cc   :  { %v1776_v52 = vsel %vm1774_vm2, %v1764_v3, 2102212464  ;;  %v1779_v57 = vsel %vm1771_vm5, %v1758_v2, %v1761_v8  ;;  %v1780_v50 = vsel %vm1774_vm2, %v1767_v39, 920167782  ;;  %v1755_v54 = vshrl.u32 %v6499_v45, %v1754_v34 }
 0x2cd   :  { %v3408_v53 = vmin.u32 %v1701_v28, %v5173_v30  ;;  %vm1772_vm7 = vcmp.lt.s32.totalorder %v1752_v6, 2  ;;  %v1781_v55 = vsel %vm1773_vm6, %v1764_v3, %v1780_v50  ;;  %v1783_v25 = vsel %vm1771_vm5, %v1761_v8, %v1764_v3 }
 0x2ce   :  { %v1782_v13 = vsel %vm1772_vm7, %v1779_v57, %v1781_v55  ;;  %v1784_v26 = vsel %vm1774_vm2, %v1770_v36, 1326507024  ;;  %v1787_v56 = vshll.u32 %v1747_v10, 8  ;;  %vm3406_vm9 = vcmp.lt.s32.totalorder %v3405_v40, 0 }
 0x2cf   :  { %v1703_v27 = vclz %v3408_v53  ;;  %v1775_v31 = vsel %vm1771_vm5, %v1755_v54, %v1758_v2  ;;  %v1777_v11 = vsel %vm1773_vm6, %v1761_v8, %v1776_v52  ;;  %v1785_v51 = vsel %vm1773_vm6, %v1767_v39, %v1784_v26 }
 0x2d0   :  { %v1786_v28 = vsel %vm1772_vm7, %v1783_v25, %v1785_v51  ;;  %v5191_v46 = vmul.u32.u64.low %v1787_v56, %v1782_v13  ;;  %v5192_v34 = vmul.u32.u64.high %v1787_v56, %v1782_v13, %v5191_v46  ;;  %v1855_v53 = vsel %vm1854_vm4, %v1853_v9, 0 }
 0x2d1   :  { %vm3398_vm8 = vcmp.lt.s32.totalorder %v5160_v47, 0  ;;  %v3409_v3 = vadd.s32 4294967294, %v1703_v27  ;;  %v5197_v36 = vmul.u32.u64.low %v1787_v56, %v1786_v28  ;;  %v5198_v10 = vmul.u32.u64.high %v1787_v56, %v1786_v28, %v5197_v36 }
 0x2d2   :  { %vm3402_vm12 = vcmp.lt.s32.totalorder %v3401_v37, 0  ;;  %v1778_v2 = vsel %vm1772_vm7, %v1775_v31, %v1777_v11  ;;  %v1850_v8 = vand.u32 8388607, %v6486_v35  ;;  %v1857_v39 = vand.u32 31, %v1855_v53 }
 0x2d3   :  { %v6541_v52 = vand.u32 2147483647, %v5146_v24  ;;  %v6542_v57 = vcvt.s32.f32 %v5143_v7  ;;  %v5212_v27 = vadd.s32 %v4922_v38, %v4950_v19  ;;  %v5215_v54 = vsel %vm3406_vm9, 0, %v3405_v40 }
 0x2d4   :  { %v6543_v6 = vsub.s32 4294967266, %v5148_v20  ;;  %v5222_v13 = vsel %vm3398_vm8, 0, %v5160_v47  ;;  %v1797_v7 = vadd.s32 1, %v5192_v34  ;;  %v1858_v24 = vsub.s32 32, %v1857_v39 }
 0x2d5   :  { %v5207_v50 = vmul.f32 %v6542_v57, %v6541_v52  ;;  %v5225_v25 = vsel %vm3402_vm12, 0, %v3401_v37  ;;  %vm3410_vm14 = vcmp.lt.s32.totalorder %v3409_v3, 0  ;;  %v1794_v26 = vmul.u32 %v1787_v56, %v1778_v2 }
 0x2d6   :  { %v5219_v55 = vadd.s32 127, %v6543_v6  ;;  %vm1796_vm11 = vc.u32 %v5198_v10, %v5191_v46  ;;  %v1607_v40 = vsub.s32 4294967266, %v5215_v54  ;;  %v1851_v19 = vor.u32 8388608, %v1850_v8 }
 0x2d7   :  { %v1798_v38 = vsel %vm1796_vm11, %v1797_v7, %v5192_v34  ;;  %v1861_v31 = vshrl.u32 %v6502_v5, %v1858_v24  ;;  %v1860_v47 = vshll.u32 %v6499_v45, %v1857_v39  ;;  %v1863_v51 = vshll.u32 %v6502_v5, %v1857_v39 }
 0x2d8   :  { %v1799_v11 = vadd.s32 %v1798_v38, %v1794_v26  ;;  %v1864_v37 = vshrl.u32 %v6498_v21, %v1858_v24  ;;  %v5235_v28 = vsel %vm3410_vm14, 0, %v3409_v3  ;;  %v1856_v56 = vshrl.u32 %v1855_v53, 5 }
 0x2d9   :  { %v1866_v36 = vshll.u32 %v6498_v21, %v1857_v39  ;;  %v1867_v2 = vshrl.u32 %v6503_v58, %v1858_v24  ;;  %v1862_v57 = vor.u32 %v1861_v31, %v1860_v47  ;;  %v1869_v8 = vshll.u32 %v6503_v58, %v1857_v39 }
 0x2da   :  { %v1800_v52 = vadd.s32 536870912, %v1799_v11  ;;  %v1865_v34 = vor.u32 %v1864_v37, %v1863_v51  ;;  %v1870_v7 = vshrl.u32 %v6536_v43, %v1858_v24  ;;  %v1872_v26 = vshll.u32 %v6536_v43, %v1857_v39 }
 0x2db   :  { %v1868_v6 = vor.u32 %v1867_v2, %v1866_v36  ;;  %v1873_v38 = vshrl.u32 %v6537_v41, %v1858_v24  ;;  %v1503_v3 = vsub.s32 4294967266, %v5225_v25  ;;  %v1587_v53 = vadd.s32 %v5069_v1, %v5066_v62 }
 0x2dc   :  { %v5246_v35 = vshrl.u32 %v1800_v52, 30  ;;  %v1891_v9 = vshll.u32 %v1851_v19, 8  ;;  %v1608_v21 = vadd.s32 127, %v1607_v40  ;;  %v1711_v31 = vsub.s32 4294967266, %v5235_v28 }
 0x2dd   :  { %v1871_v47 = vor.u32 %v1870_v7, %v1869_v8  ;;  %v1874_v51 = vor.u32 %v1873_v38, %v1872_v26  ;;  %v1859_v36 = vshrl.u32 %v6499_v45, %v1858_v24  ;;  %vm1875_vm15 = vcmp.lt.s32.totalorder %v1856_v56, 1 }
 0x2de   :  { %v1802_v37 = vshll.u32 %v5246_v35, 30  ;;  %vm1878_vm13 = vcmp.lt.s32.totalorder %v1856_v56, 4  ;;  %vm1877_vm0 = vcmp.lt.s32.totalorder %v1856_v56, 3  ;;  %v1883_v2 = vsel %vm1875_vm15, %v1862_v57, %v1865_v34 }
 0x2df   :  { %v1880_v39 = vsel %vm1878_vm13, %v1868_v6, 2102212464  ;;  %v1884_v41 = vsel %vm1878_vm13, %v1871_v47, 920167782  ;;  %vm1876_vm1 = vcmp.lt.s32.totalorder %v1856_v56, 2  ;;  %v1887_v1 = vsel %vm1875_vm15, %v1865_v34, %v1868_v6 }
 0x2e0   :  { %v5251_v43 = vsub.s32 %v1799_v11, %v1802_v37  ;;  %v1885_v62 = vsel %vm1877_vm0, %v1868_v6, %v1884_v41  ;;  %v1603_v40 = vsub.s32 32, %v5215_v54  ;;  %v1609_v19 = vshll.u32 %v1608_v21, 23 }
 0x2e1   :  { %v1886_v52 = vsel %vm1876_vm1, %v1883_v2, %v1885_v62  ;;  %v1888_v8 = vsel %vm1878_vm13, %v1874_v51, 1326507024  ;;  %v1879_v24 = vsel %vm1875_vm15, %v1859_v36, %v1862_v57  ;;  %v1881_v26 = vsel %vm1877_vm0, %v1865_v34, %v1880_v39 }
 0x2e2   :  { %v1805_v7 = vsub.s32 0, %v5251_v43  ;;  %v1889_v38 = vsel %vm1877_vm0, %v1871_v47, %v1888_v8  ;;  %v1712_v58 = vadd.s32 127, %v1711_v31  ;;  %v1399_v41 = vsub.s32 4294967266, %v5222_v13 }
 0x2e3   :  { %v1890_v5 = vsel %vm1876_vm1, %v1887_v1, %v1889_v38  ;;  %v5257_v45 = vmul.u32.u64.low %v1891_v9, %v1886_v52  ;;  %v5258_v11 = vmul.u32.u64.high %v1891_v9, %v1886_v52, %v5257_v45  ;;  %v1297_v51 = vshll.u32 %v5219_v55, 23 }
 0x2e4   :  { %v3412_v6 = vmin.u32 %v1805_v7, %v5251_v43  ;;  %v5263_v21 = vmul.u32.u64.low %v1891_v9, %v1890_v5  ;;  %v5264_v37 = vmul.u32.u64.high %v1891_v9, %v1890_v5, %v5263_v21  ;;  %v1605_v2 = vshrl.u32 %v1587_v53, %v1603_v40 }
 0x2e5   :  { %v1707_v57 = vsub.s32 32, %v5235_v28  ;;  %v1882_v34 = vsel %vm1876_vm1, %v1879_v24, %v1881_v26  ;;  %v1483_v31 = vadd.s32 %v4998_v42, %v5005_v23  ;;  %v1504_v47 = vadd.s32 127, %v1503_v3 }
 0x2e6   :  { %v1691_v36 = vadd.s32 %v5115_v60, %v5127_v22  ;;  %v1807_v39 = vclz %v3412_v6  ;;  %v1604_v62 = vshll.u32 %v5122_v32, %v5215_v54  ;;  %v1610_v5 = vor.u32 4788187, %v1609_v19 }
 0x2e7   :  { %v1713_v1 = vshll.u32 %v1712_v58, 23  ;;  %v1901_v52 = vadd.s32 1, %v5258_v11  ;;  %v1400_v53 = vadd.s32 127, %v1399_v41  ;;  %v1898_v8 = vmul.u32 %v1891_v9, %v1882_v34 }
 0x2e8   :  { %v3413_v40 = vadd.s32 4294967294, %v1807_v39  ;;  %vm1900_vm3 = vc.u32 %v5264_v37, %v5257_v45  ;;  %v1499_v42 = vsub.s32 32, %v5225_v25  ;;  %v1606_v23 = vor.u32 %v1605_v2, %v1604_v62 }
 0x2e9   :  { %v1709_v56 = vshrl.u32 %v1691_v36, %v1707_v57  ;;  %v1902_v60 = vsel %vm1900_vm3, %v1901_v52, %v5258_v11  ;;  %v1395_v22 = vsub.s32 32, %v5222_v13  ;;  %v1505_v3 = vshll.u32 %v1504_v47, 23 }
 0x2ea   :  { %vm3414_vm4 = vcmp.lt.s32.totalorder %v3413_v40, 0  ;;  %v1903_v32 = vadd.s32 %v1902_v60, %v1898_v8  ;;  %v1611_v58 = vand.u32 2147483647, %v1610_v5  ;;  %v1708_v54 = vshll.u32 %v5173_v30, %v5235_v28 }
 0x2eb   :  { %v1714_v19 = vor.u32 4788187, %v1713_v1  ;;  %v1810_v9 = vsel %vm3414_vm4, 0, %v3413_v40  ;;  %vm1117_vm5 = vcmp.lt.s32.totalorder %v4725_v17, 0  ;;  %v1401_v7 = vshll.u32 %v1400_v53, 23 }
 0x2ec   :  { %v1811_v24 = vsub.s32 32, %v1810_v9  ;;  %v1815_v26 = vsub.s32 4294967266, %v1810_v9  ;;  %v1904_v38 = vadd.s32 536870912, %v1903_v32  ;;  %v1501_v41 = vshrl.u32 %v1483_v31, %v1499_v42 }
 0x2ed   :  { %v1613_v6 = vcvt.s32.f32 %v1606_v23  ;;  %v1710_v11 = vor.u32 %v1709_v56, %v1708_v54  ;;  %v1795_v21 = vadd.s32 %v5191_v46, %v5198_v10  ;;  %v1397_v2 = vshrl.u32 %v5212_v27, %v1395_v22 }
 0x2ee   :  { %v1500_v57 = vshll.u32 %v5120_v18, %v5225_v25  ;;  %v1816_v30 = vadd.s32 127, %v1815_v26  ;;  %v5289_v28 = vshrl.u32 %v1904_v38, 30  ;;  %v1506_v34 = vor.u32 4788187, %v1505_v3 }
 0x2ef   :  { %v1614_v47 = vmul.f32 %v1613_v6, %v1611_v58  ;;  %v1715_v36 = vand.u32 2147483647, %v1714_v19  ;;  %v1813_v39 = vshrl.u32 %v1795_v21, %v1811_v24  ;;  %v1396_v31 = vshll.u32 %v5084_v15, %v5222_v13 }
 0x2f0   :  { %v1402_v62 = vor.u32 4788187, %v1401_v7  ;;  %v1817_v5 = vshll.u32 %v1816_v30, 23  ;;  %v1906_v1 = vshll.u32 %v5289_v28, 30  ;;  %v1199_v46 = vxor.u32 2147483648, %v5207_v50 }
 0x2f1   :  { %v1502_v10 = vor.u32 %v1501_v41, %v1500_v57  ;;  %v1717_v27 = vcvt.s32.f32 %v1710_v11  ;;  %v1812_v18 = vshll.u32 %v5251_v43, %v1810_v9  ;;  %v6544_v25 = vsub.s32 32, %v5148_v20 }
 0x2f2   :  { %v1398_v53 = vor.u32 %v1397_v2, %v1396_v31  ;;  %v1818_v40 = vor.u32 4788187, %v1817_v5  ;;  %v5299_v8 = vsub.s32 %v1903_v32, %v1906_v1  ;;  %v1507_v42 = vand.u32 2147483647, %v1506_v34 }
 0x2f3   :  { %v1293_v52 = vshrl.u32 %v5156_v16, %v6544_v25  ;;  %v1615_v15 = vxor.u32 2147483648, %v1614_v47  ;;  %v1718_v13 = vmul.f32 %v1717_v27, %v1715_v36  ;;  %v1814_v23 = vor.u32 %v1813_v39, %v1812_v18 }
 0x2f4   :  { %v1292_v56 = vshll.u32 %v5010_v4, %v5148_v20  ;;  %v1298_v60 = vor.u32 4788187, %v1297_v51  ;;  %v1403_v22 = vand.u32 2147483647, %v1402_v62  ;;  %v1909_v43 = vsub.s32 0, %v5299_v8 }
 0x2f5   :  { %v6545_v3 = vand.u32 2147483647, %v4725_v17  ;;  %v1200_v32 = vsel %vm1117_vm5, %v1199_v46, %v5207_v50  ;;  %v1509_v58 = vcvt.s32.f32 %v1502_v10  ;;  %v1819_v54 = vand.u32 2147483647, %v1818_v40 }
 0x2f6   :  { %v1294_v19 = vor.u32 %v1293_v52, %v1292_v56  ;;  %v1405_v4 = vcvt.s32.f32 %v1398_v53  ;;  %vm1533_vm2 = vcmp.lt.s32.totalorder %v4941_v14, 0  ;;  %v3416_v20 = vmin.u32 %v1909_v43, %v5299_v8 }
 0x2f7   :  { %vm5308_vm6 = vcmp.le.f32.partialorder %v6545_v3, 0.7853982  ;;  %v1510_v55 = vmul.f32 %v1509_v58, %v1507_v42  ;;  %v1616_v51 = vsel %vm1533_vm2, %v1615_v15, %v1614_v47  ;;  %v1719_v9 = vxor.u32 2147483648, %v1718_v13 }
 0x2f8   :  { %v1821_v7 = vcvt.s32.f32 %v1814_v23  ;;  %v1203_v24 = vsel %vm5308_vm6, %v4725_v17, %v1200_v32  ;;  %v1299_v26 = vand.u32 2147483647, %v1298_v60  ;;  %v1406_v50 = vmul.f32 %v1405_v4, %v1403_v22 }
 0x2f9   :  { %v1911_v38 = vclz %v3416_v20  ;;  %vm1325_vm7 = vcmp.lt.s32.totalorder %v4736_v12, 0  ;;  %v6548_v41 = vand.u32 2147483647, %v4941_v14  ;;  %v1301_v21 = vcvt.s32.f32 %v1294_v19 }
 0x2fa   :  { %v1822_v11 = vmul.f32 %v1821_v7, %v1819_v54  ;;  %vm1637_vm8 = vcmp.lt.s32.totalorder %v4994_v48, 0  ;;  %3738 = vcosq.f32 %v1203_v24  ;;  %vm1429_vm12 = vcmp.lt.s32.totalorder %v4790_v59, 0 }
 0x2fb   :  { %vm5325_vm9 = vcmp.le.f32.partialorder %v6548_v41, 0.7853982  ;;  %v3417_v57 = vadd.s32 4294967294, %v1911_v38  ;;  %v1511_v30 = vxor.u32 2147483648, %v1510_v55  ;;  %v1720_v34 = vsel %vm1637_vm8, %v1719_v9, %v1718_v13 }
 0x2fc   :  { %v1619_v2 = vsel %vm5325_vm9, %v4941_v14, %v1616_v51  ;;  %vm1221_vm14 = vcmp.lt.s32.totalorder %v4728_v44, 0  ;;  %v1302_v47 = vmul.f32 %v1301_v21, %v1299_v26  ;;  %v6551_v36 = vand.u32 2147483647, %v4736_v12 }
 0x2fd   :  { %v1407_v31 = vxor.u32 2147483648, %v1406_v50  ;;  %vm1741_vm15 = vcmp.lt.s32.totalorder %v5104_v0, 0  ;;  %vm3418_vm13 = vcmp.lt.s32.totalorder %v3417_v57, 0  ;;  %3740 = vcosq.f32 %v1619_v2 }
 0x2fe   :  { %vm5339_vm11 = vcmp.le.f32.partialorder %v6551_v36, 0.7853982  ;;  %v1823_v62 = vxor.u32 2147483648, %v1822_v11  ;;  %v1914_v5 = vsel %vm3418_vm13, 0, %v3417_v57  ;;  %v6554_v1 = vand.u32 2147483647, %v4994_v48 }
 0x2ff   :  { %v1899_v10 = vadd.s32 %v5257_v45, %v5264_v37  ;;  %v1915_v27 = vsub.s32 32, %v1914_v5  ;;  %v1919_v18 = vsub.s32 4294967266, %v1914_v5  ;;  %v1512_v52 = vsel %vm1429_vm12, %v1511_v30, %v1510_v55 }
 0x300   :  { %vm5346_vm0 = vcmp.le.f32.partialorder %v6554_v1, 0.7853982  ;;  %3742 = vsinq.f32 %v1619_v2  ;;  %v1825_v53 = vsub.s32 4, %v5246_v35  ;;  %v1617_v40 = vsub.s32 4, %v5107_v61 }
 0x301   :  { %v1723_v25 = vsel %vm5346_vm0, %v4994_v48, %v1720_v34  ;;  %v1916_v42 = vshll.u32 %v5299_v8, %v1914_v5  ;;  %v1917_v15 = vshrl.u32 %v1899_v10, %v1915_v27  ;;  %v1920_v13 = vadd.s32 127, %v1919_v18 }
 0x302   :  { %v1721_v45 = vsub.s32 4, %v5162_v33  ;;  %v1303_v37 = vxor.u32 2147483648, %v1302_v47  ;;  %v1408_v23 = vsel %vm1325_vm7, %v1407_v31, %v1406_v50  ;;  %v1824_v56 = vsel %vm1741_vm15, %v1823_v62, %v1822_v11 }
 0x303   :  { %3744 = vcosq.f32 %v1723_v25  ;;  %v1918_v60 = vor.u32 %v1917_v15, %v1916_v42  ;;  %v1921_v22 = vshll.u32 %v1920_v13, 23  ;;  %v6557_v43 = vand.u32 2147483647, %v4790_v59  ;;  %v6570_v42 = vld [vmem:[#allocation5_spill] sm:$0xff] }
 0x304   :  { %3746 = vsinq.f32 %v1723_v25  ;;  %v6560_v8 = vand.u32 2147483647, %v5104_v0  ;;  %v1826_v58 = vsel %vm1741_vm15, %v1825_v53, %v5246_v35  ;;  %v1722_v20 = vsel %vm1637_vm8, %v1721_v45, %v5162_v33  ;;  %v6569_v25 = vld [vmem:[#allocation4_spill] sm:$0xff] }
 0x305   :  { %vm5367_vm1 = vcmp.le.f32.partialorder %v6557_v43, 0.7853982  ;;  %3748 = vsinq.f32 %v1203_v24  ;;  %v1922_v4 = vor.u32 4788187, %v1921_v22  ;;  %v1618_v55 = vsel %vm1533_vm2, %v1617_v40, %v5107_v61 }
 0x306   :  { %vm5373_vm3 = vcmp.le.f32.partialorder %v6560_v8, 0.7853982  ;;  %v1515_v54 = vsel %vm5367_vm1, %v4790_v59, %v1512_v52  ;;  %v1304_v35 = vsel %vm1221_vm14, %v1303_v37, %v1302_v47  ;;  %v1411_v51 = vsel %vm5339_vm11, %v4736_v12, %v1408_v23 }
 0x307   :  { %v1827_v19 = vsel %vm5373_vm3, %v5104_v0, %v1824_v56  ;;  %vm1845_vm4 = vcmp.lt.s32.totalorder %v5113_v63, 0  ;;  %v1929_v9 = vsub.s32 4, %v5289_v28  ;;  %v1923_v7 = vand.u32 2147483647, %v1922_v4  ;;  %v5406_v38 = vpop.eup %3738 }
 0x308   :  { %v1925_v24 = vcvt.s32.f32 %v1918_v60  ;;  %v1828_v33 = vsel %vm5373_vm3, 0, %v1826_v58  ;;  %3750 = vcosq.f32 %v1515_v54  ;;  %v1724_v61 = vsel %vm5346_vm0, 0, %v1722_v20 }
 0x309   :  { %3752 = vcosq.f32 %v1827_v19  ;;  %v1620_v26 = vsel %vm5325_vm9, 0, %v1618_v55  ;;  %v1513_v50 = vsub.s32 4, %v5088_v29  ;;  %v1409_v11 = vsub.s32 4, %v5044_v49 }
 0x30a   :  { %3754 = vsinq.f32 %v1827_v19  ;;  %v1926_v41 = vmul.f32 %v1925_v24, %v1923_v7  ;;  %v6563_v21 = vand.u32 2147483647, %v4728_v44  ;;  %v1930_v6 = vsel %vm1845_vm4, %v1929_v9, %v5289_v28  ;;  %v3741_v30 = vpop.eup %3740 }
 0x30b   :  { %3756 = vsinq.f32 %v1411_v51  ;;  %v6566_v47 = vand.u32 2147483647, %v5113_v63  ;;  %v1832_v31 = vadd.s32 3, %v1828_v33  ;;  %v1728_v62 = vadd.s32 3, %v1724_v61 }
 0x30c   :  { %vm5411_vm2 = vcmp.le.f32.partialorder %v6563_v21, 0.7853982  ;;  %3758 = vcosq.f32 %v1411_v51  ;;  %v1927_v34 = vxor.u32 2147483648, %v1926_v41  ;;  %v1624_v5 = vadd.s32 3, %v1620_v26 }
 0x30d   :  { %v1307_v57 = vsel %vm5411_vm2, %v4728_v44, %v1304_v35  ;;  %vm5423_vm9 = vcmp.le.f32.partialorder %v6566_v47, 0.7853982  ;;  %v1514_v28 = vsel %vm1429_vm12, %v1513_v50, %v5088_v29  ;;  %3760 = vsinq.f32 %v1515_v54  ;;  %v3743_v1 = vpop.eup %3742 }
 0x30e   :  { %v1928_v46 = vsel %vm1845_vm4, %v1927_v34, %v1926_v41  ;;  %v1932_v10 = vsel %vm5423_vm9, 0, %v1930_v6  ;;  %v1410_v27 = vsel %vm1325_vm7, %v1409_v11, %v5044_v49  ;;  %3762 = vcosq.f32 %v1307_v57 }
 0x30f   :  { %v1931_v18 = vsel %vm5423_vm9, %v5113_v63, %v1928_v46  ;;  %v1305_v52 = vsub.s32 4, %v6569_v25  ;;  %3764 = vsinq.f32 %v1307_v57  ;;  %v5441_v53 = vand.u32 3, %v1832_v31 }
 0x310   :  { %v3745_v29 = vpop.eup %3744  ;;  %3766 = vcosq.f32 %v1931_v18  ;;  %v1516_v40 = vsel %vm5367_vm1, 0, %v1514_v28  ;;  %v1201_v15 = vsub.s32 4, %v6570_v42  ;;  %v1936_v49 = vadd.s32 3, %v1932_v10 }
 0x311   :  { %v3747_v13 = vpop.eup %3746  ;;  %3768 = vsinq.f32 %v1931_v18  ;;  %v1625_v45 = vand.u32 3, %v1624_v5  ;;  %v1412_v37 = vsel %vm5339_vm11, 0, %v1410_v27  ;;  %v1729_v56 = vand.u32 3, %v1728_v62 }
 0x312   :  { %v5448_v23 = vpop.eup %3748  ;;  %v1628_v60 = vxor.u32 2147483648, %v3743_v1  ;;  %v1631_v22 = vxor.u32 2147483648, %v3741_v30  ;;  %v1520_v43 = vadd.s32 3, %v1516_v40  ;;  %v1306_v3 = vsel %vm1221_vm14, %v1305_v52, %v6569_v25 }
 0x313   :  { %v1732_v8 = vxor.u32 2147483648, %v3747_v13  ;;  %v1735_v32 = vxor.u32 2147483648, %v3745_v29  ;;  %v1416_v58 = vadd.s32 3, %v1412_v37  ;;  %v1202_v54 = vsel %vm1117_vm5, %v1201_v15, %v6570_v42 }
 0x314   :  { %v5458_v39 = vand.u32 3, %v1936_v49  ;;  %vm1835_vm7 = vcmp.eq.s32.totalorder %v5441_v53, 0  ;;  %vm1838_vm8 = vcmp.eq.s32.totalorder %v5441_v53, 2  ;;  %vm1627_vm12 = vcmp.eq.s32.totalorder %v1625_v45, 0 }
 0x315   :  { %v5456_v19 = vpop.eup %3750  ;;  %vm1630_vm11 = vcmp.eq.s32.totalorder %v1625_v45, 2  ;;  %vm1730_vm15 = vcmp.lt.s32.totalorder %v1729_v56, 2  ;;  %v1629_v20 = vsel %vm1627_vm12, %v3741_v30, %v1628_v60  ;;  %v1308_v35 = vsel %vm5411_vm2, 0, %v1306_v3 }
 0x316   :  { %v3753_v4 = vpop.eup %3752  ;;  %v1632_v55 = vsel %vm1630_vm11, %v1631_v22, %v3743_v1  ;;  %vm1731_vm14 = vcmp.eq.s32.totalorder %v1729_v56, 0  ;;  %vm1734_vm5 = vcmp.eq.s32.totalorder %v1729_v56, 2  ;;  %v5464_v9 = vand.u32 3, %v1520_v43 }
 0x317   :  { %v3755_v51 = vpop.eup %3754  ;;  %v1204_v7 = vsel %vm5308_vm6, 0, %v1202_v54  ;;  %vm1834_vm13 = vcmp.lt.s32.totalorder %v5441_v53, 2  ;;  %v1733_v33 = vsel %vm1731_vm14, %v3745_v29, %v1732_v8  ;;  %v1736_v61 = vsel %vm1734_vm5, %v1735_v32, %v3747_v13 }
 0x318   :  { %v3757_v24 = vpop.eup %3756  ;;  %vm1626_vm0 = vcmp.lt.s32.totalorder %v1625_v45, 2  ;;  %v5469_v26 = vand.u32 3, %v1416_v58  ;;  %vm1938_vm1 = vcmp.lt.s32.totalorder %v5458_v39, 2  ;;  %v1527_v11 = vxor.u32 2147483648, %v5456_v19 }
 0x319   :  { %v3759_v50 = vpop.eup %3758  ;;  %v1633_v41 = vsel %vm1626_vm0, %v1629_v20, %v1632_v55  ;;  %v1312_v21 = vadd.s32 3, %v1308_v35  ;;  %vm1935_vm3 = vweird.f32 %v5113_v63  ;;  %vm1939_vm6 = vcmp.eq.s32.totalorder %v5458_v39, 0  ;;  %v1960_v55 = vpop.permute.xlu0 %1959 }
 0x31a   :  { %v3761_v2 = vpop.eup %3760  ;;  %v1836_v16 = vxor.u32 2147483648, %v3755_v51  ;;  %v1839_v6 = vxor.u32 2147483648, %v3753_v4  ;;  %v1208_v57 = vadd.s32 3, %v1204_v7  ;;  %vm1942_vm4 = vcmp.eq.s32.totalorder %v5458_v39, 2 }
 0x31b   :  { %v3763_v30 = vpop.eup %3762  ;;  %vm1831_vm2 = vweird.f32 %v5104_v0  ;;  %v1737_v34 = vsel %vm1730_vm15, %v1733_v33, %v1736_v61  ;;  %vm1522_vm9 = vcmp.lt.s32.totalorder %v5464_v9, 2  ;;  %v1420_v47 = vxor.u32 2147483648, %v3757_v24 }
 0x31c   :  { %v3765_v36 = vpop.eup %3764  ;;  %vm1727_vm12 = vweird.f32 %v4994_v48  ;;  %vm1523_vm11 = vcmp.eq.s32.totalorder %v5464_v9, 0  ;;  %vm1526_vm14 = vcmp.eq.s32.totalorder %v5464_v9, 2  ;;  %vm1418_vm5 = vcmp.lt.s32.totalorder %v5469_v26, 2 }
 0x31d   :  { %v1423_v31 = vxor.u32 2147483648, %v3759_v50  ;;  %v3767_v62 = vpop.eup %3766  ;;  %v1524_v5 = vxor.u32 2147483648, %v3761_v2  ;;  %v1528_v28 = vsel %vm1526_vm14, %v1527_v11, %v3761_v2  ;;  %vm1419_vm0 = vcmp.eq.s32.totalorder %v5469_v26, 0 }
 0x31e   :  { %v1313_v1 = vand.u32 3, %v1312_v21  ;;  %v3769_v46 = vpop.eup %3768  ;;  %v1943_v10 = vxor.u32 2147483648, %v3767_v62  ;;  %v1837_v27 = vsel %vm1835_vm7, %v3753_v4, %v1836_v16  ;;  %v1840_v18 = vsel %vm1838_vm8, %v1839_v6, %v3755_v51  ;;  %v3419_v4 = vld [vmem:[%s6442_s2 + $0x20] sm:$0xff] }
 0x31f   :  { %v1209_v25 = vand.u32 3, %v1208_v57  ;;  %v1940_v52 = vxor.u32 2147483648, %v3769_v46  ;;  %v1421_v29 = vsel %vm1419_vm0, %v3759_v50, %v1420_v47  ;;  %v1316_v40 = vxor.u32 2147483648, %v3765_v36 }
 0x320   :  { %v1319_v42 = vxor.u32 2147483648, %v3763_v30  ;;  %v1944_v15 = vsel %vm1942_vm4, %v1943_v10, %v3769_v46  ;;  %vm1422_vm15 = vcmp.eq.s32.totalorder %v5469_v26, 2  ;;  %v1212_v13 = vxor.u32 2147483648, %v5448_v23  ;;  %v1965_v26 = vpop.permute.xlu1 %1964 }
 0x321   :  { %v1215_v49 = vxor.u32 2147483648, %v5406_v38  ;;  %v1941_v45 = vsel %vm1939_vm6, %v3767_v62, %v1940_v52  ;;  %v1841_v37 = vsel %vm1834_vm13, %v1837_v27, %v1840_v18  ;;  %v1525_v56 = vsel %vm1523_vm11, %v5456_v19, %v1524_v5 }
 0x322   :  { %v1424_v60 = vsel %vm1422_vm15, %v1423_v31, %v3757_v24  ;;  %v1945_v22 = vsel %vm1938_vm1, %v1941_v45, %v1944_v15  ;;  %vm1315_vm7 = vcmp.eq.s32.totalorder %v1313_v1, 0  ;;  %vm1318_vm8 = vcmp.eq.s32.totalorder %v1313_v1, 2 }
 0x323   :  { %vm1211_vm4 = vcmp.eq.s32.totalorder %v1209_v25, 0  ;;  %v1946_v43 = vsel %vm1935_vm3, nan, %v1945_v22  ;;  %v1317_v3 = vsel %vm1315_vm7, %v3763_v30, %v1316_v40  ;;  %v1320_v8 = vsel %vm1318_vm8, %v1319_v42, %v3765_v36 }
 0x324   :  { %vm1214_vm6 = vcmp.eq.s32.totalorder %v1209_v25, 2  ;;  %2013 = vmatprep.subr.mxu0 %v1946_v43  ;;  %v1842_v53 = vsel %vm1831_vm2, nan, %v1841_v37  ;;  %v1529_v32 = vsel %vm1522_vm9, %v1525_v56, %v1528_v28  ;;  %v1213_v58 = vsel %vm1211_vm4, %v5406_v38, %v1212_v13 }
 0x325   :  { %v1216_v54 = vsel %vm1214_vm6, %v1215_v49, %v5448_v23  ;;  %2014 = vmatpush1.msra.mxu0 %v1842_v53  ;;  %v1738_v19 = vsel %vm1727_vm12, nan, %v1737_v34  ;;  %vm1623_vm13 = vweird.f32 %v4941_v14  ;;  %v1425_v63 = vsel %vm1418_vm5, %v1421_v29, %v1424_v60 }
 0x326   :  { %vm1314_vm1 = vcmp.lt.s32.totalorder %v1313_v1, 2  ;;  %2015 = vmatprep.subr.mxu0 %v1738_v19  ;;  %v1634_v0 = vsel %vm1623_vm13, nan, %v1633_v41  ;;  %vm1519_vm3 = vweird.f32 %v4790_v59  ;;  %vm1210_vm2 = vcmp.lt.s32.totalorder %v1209_v25, 2 }
 0x327   :  { %v1321_v39 = vsel %vm1314_vm1, %v1317_v3, %v1320_v8  ;;  %2016 = vmatpush1.msra.mxu0 %v1634_v0  ;;  %v1530_v38 = vsel %vm1519_vm3, nan, %v1529_v32  ;;  %vm1415_vm9 = vweird.f32 %v4736_v12  ;;  %v1217_v23 = vsel %vm1210_vm2, %v1213_v58, %v1216_v54  ;;  %v3420_v12 = vld [vmem:[%s6442_s2 + $0x28] sm:$0xff] }
 0x328   :  { %2017 = vmatprep.subr.mxu0 %v1530_v38  ;;  %v1426_v48 = vsel %vm1415_vm9, nan, %v1425_v63  ;;  %vm1311_vm12 = vweird.f32 %v4728_v44  ;;  %vm1207_vm11 = vweird.f32 %v4725_v17  ;;  %v6571_v20 = vmov 0.0   ;;  %v3421_v17 = vld [vmem:[%s6442_s2 + $0x30] sm:$0xff]  ;;  %v3422_v44 = vld [vmem:[%s6442_s2 + $0x38] sm:$0xff] }
 0x329   :  { %2018 = vmatpush1.msra.mxu0 %v1426_v48  ;;  %v1322_v14 = vsel %vm1311_vm12, nan, %v1321_v39  ;;  %v1218_v59 = vsel %vm1207_vm11, nan, %v1217_v23  ;;  %v6572_v49 = vmov 683565275   ;;  %v6573_v37 = vmov 2475754826  }
 0x32a   :  { %2019 = vmatprep.subr.mxu0 %v1322_v14  ;;  %v6574_v22 = vmov 2131351028   ;;  %v6575_v3 = vmov 2102212464   ;;  %v6576_v53 = vmov 920167782  }
 0x32b   :  { %2020 = vmatpush1.msra.mxu0 %v1218_v59  ;;  %v6577_v39 = vmov 1326507024  }
 0x32c   :  { %3427 = vmatmul.mubr.msk.f32.vlgmr.msra.gmra.mxu0 %vm6493_vm10, %v3419_v4 }
 0x32d   :  { %2059 = vmatprep.mubr.f32.mxu0 %v6571_v20 }
 0x330   :  { %3428 = vmatmul.mubr.msk.f32.gmra.mxu0 %vm6493_vm10, %v3420_v12 }
 0x331   :  { %2065 = vmatprep.mubr.f32.mxu0 %v6571_v20 }
 0x334   :  { %3429 = vmatmul.mubr.msk.f32.gmra.mxu0 %vm6493_vm10, %v3421_v17 }
 0x335   :  { %2071 = vmatprep.mubr.f32.mxu0 %v6571_v20 }
 0x338   :  { %3430 = vmatmul.mubr.msk.f32.gmra.mxu0 %vm6493_vm10, %v3422_v44 }
 0x3ec   :  { %v2055_v35 = vpop.f32.mrf.mxu0 }
 0x3ed   :  { %v5538_v51 = vadd.f32 %v2055_v35, %v1960_v55 }
 0x3ee   :  { %v2057_v9 = vpop.f32.mrf.mxu0 }
 0x3ef   :  { %v2078_v7 = vand.u32 2147483647, %v5538_v51  ;;  %v2081_v24 = vand.u32 2139095040, %v5538_v51  ;;  %v5542_v33 = vadd.f32 %v2057_v9, %v1960_v55 }
 0x3f0   :  { %v2061_v61 = vpop.f32.mrf.mxu0 }
 0x3f1   :  { %v2082_v50 = vshrl.u32 %v2081_v24, 23  ;;  %v2085_v41 = vand.u32 8388607, %v2078_v7  ;;  %v2182_v11 = vand.u32 2147483647, %v5542_v33  ;;  %v2185_v21 = vand.u32 2139095040, %v5542_v33 }
 0x3f2   :  { %v5548_v2 = vadd.f32 %v2061_v61, %v1965_v26  ;;  %v2063_v16 = vpop.f32.mrf.mxu0  ;;  %vm2274_vm10 = vweird.f32 %v5542_v33 }
 0x3f3   :  { %v3431_v6 = vadd.s32 4294967169, %v2082_v50  ;;  %v2189_v57 = vand.u32 8388607, %v2182_v11  ;;  %v2186_v30 = vshrl.u32 %v2185_v21, 23  ;;  %v2086_v36 = vor.u32 8388608, %v2085_v41 }
 0x3f4   :  { %v2286_v34 = vand.u32 2147483647, %v5548_v2  ;;  %v2289_v47 = vand.u32 2139095040, %v5548_v2  ;;  %v5554_v62 = vadd.f32 %v2063_v16, %v1965_v26 }
 0x3f5   :  { %v2088_v31 = vadd.s32 1, %v3431_v6  ;;  %v3435_v5 = vadd.s32 4294967169, %v2186_v30  ;;  %v2190_v28 = vor.u32 8388608, %v2189_v57  ;;  %v5560_v29 = vshll.u32 %v2086_v36, 8 }
 0x3f6   :  { %v2290_v1 = vshrl.u32 %v2289_v47, 23  ;;  %v5558_v46 = vand.u32 8388607, %v2286_v34  ;;  %v2390_v15 = vand.u32 2147483647, %v5554_v62 }
 0x3f7   :  { %vm2089_vm14 = vcmp.gt.s32.totalorder %v2088_v31, 0  ;;  %v2192_v27 = vadd.s32 1, %v3435_v5  ;;  %v5562_v40 = vshll.u32 %v2190_v28, 8 }
 0x3f8   :  { %v2090_v10 = vsel %vm2089_vm14, %v2088_v31, 0  ;;  %v3439_v18 = vadd.s32 4294967169, %v2290_v1  ;;  %v2294_v42 = vor.u32 8388608, %v5558_v46 }
 0x3f9   :  { %v2091_v25 = vshrl.u32 %v2090_v10, 5  ;;  %v2092_v52 = vand.u32 31, %v2090_v10  ;;  %vm2193_vm5 = vcmp.gt.s32.totalorder %v2192_v27, 0 }
 0x3fa   :  { %v5568_v60 = vadd.s32 1, %v3439_v18  ;;  %v2194_v4 = vsel %vm2193_vm5, %v2192_v27, 0 }
 0x3fb   :  { %v2093_v13 = vsub.s32 32, %v2092_v52  ;;  %v2095_v45 = vshll.u32 %v6572_v49, %v2092_v52  ;;  %v2098_v56 = vshll.u32 %v6573_v37, %v2092_v52  ;;  %v2101_v43 = vshll.u32 %v6574_v22, %v2092_v52 }
 0x3fc   :  { %v2104_v8 = vshll.u32 %v6575_v3, %v2092_v52  ;;  %v2107_v32 = vshll.u32 %v6576_v53, %v2092_v52  ;;  %vm2110_vm0 = vcmp.lt.s32.totalorder %v2091_v25, 1  ;;  %vm2111_vm15 = vcmp.lt.s32.totalorder %v2091_v25, 2 }
 0x3fd   :  { %v2096_v58 = vshrl.u32 %v6573_v37, %v2093_v13  ;;  %v2099_v54 = vshrl.u32 %v6574_v22, %v2093_v13  ;;  %v2102_v19 = vshrl.u32 %v6575_v3, %v2093_v13  ;;  %v2094_v63 = vshrl.u32 %v6572_v49, %v2093_v13 }
 0x3fe   :  { %v2105_v0 = vshrl.u32 %v6576_v53, %v2093_v13  ;;  %v2108_v38 = vshrl.u32 %v6577_v39, %v2093_v13  ;;  %vm2112_vm7 = vcmp.lt.s32.totalorder %v2091_v25, 3  ;;  %vm2113_vm8 = vcmp.lt.s32.totalorder %v2091_v25, 4 }
 0x3ff   :  { %v2097_v23 = vor.u32 %v2096_v58, %v2095_v45  ;;  %v2100_v48 = vor.u32 %v2099_v54, %v2098_v56  ;;  %v2103_v14 = vor.u32 %v2102_v19, %v2101_v43  ;;  %v2196_v12 = vand.u32 31, %v2194_v4 }
 0x400   :  { %v2106_v59 = vor.u32 %v2105_v0, %v2104_v8  ;;  %v2109_v20 = vor.u32 %v2108_v38, %v2107_v32  ;;  %v2195_v16 = vshrl.u32 %v2194_v4, 5  ;;  %vm2297_vm2 = vcmp.gt.s32.totalorder %v5568_v60, 0 }
 0x401   :  { %v2114_v17 = vsel %vm2110_vm0, %v2094_v63, %v2097_v23  ;;  %v2115_v44 = vsel %vm2113_vm8, %v2103_v14, 2102212464  ;;  %v2118_v55 = vsel %vm2110_vm0, %v2097_v23, %v2100_v48  ;;  %v2122_v35 = vsel %vm2110_vm0, %v2100_v48, %v2103_v14 }
 0x402   :  { %v2116_v9 = vsel %vm2112_vm7, %v2100_v48, %v2115_v44  ;;  %v2119_v24 = vsel %vm2113_vm8, %v2106_v59, 920167782  ;;  %v2123_v61 = vsel %vm2113_vm8, %v2109_v20, 1326507024  ;;  %v2197_v26 = vsub.s32 32, %v2196_v12 }
 0x403   :  { %v2117_v50 = vsel %vm2111_vm15, %v2114_v17, %v2116_v9  ;;  %v2120_v41 = vsel %vm2112_vm7, %v2103_v14, %v2119_v24  ;;  %v2124_v21 = vsel %vm2112_vm7, %v2106_v59, %v2123_v61  ;;  %v2199_v47 = vshll.u32 %v6572_v49, %v2196_v12 }
 0x404   :  { %v2121_v6 = vsel %vm2111_vm15, %v2118_v55, %v2120_v41  ;;  %v2125_v57 = vsel %vm2111_vm15, %v2122_v35, %v2124_v21  ;;  %v2133_v30 = vmul.u32 %v5560_v29, %v2117_v50  ;;  %v2198_v1 = vshrl.u32 %v6572_v49, %v2197_v26  ;;  %v2067_v50 = vpop.f32.mrf.mxu0 }
 0x405   :  { %v5592_v36 = vmul.u32.u64.low %v5560_v29, %v2125_v57  ;;  %v5593_v31 = vmul.u32.u64.high %v5560_v29, %v2125_v57, %v5592_v36  ;;  %v5596_v5 = vmul.u32.u64.low %v5560_v29, %v2121_v6  ;;  %v5597_v28 = vmul.u32.u64.high %v5560_v29, %v2121_v6, %v5596_v5 }
 0x406   :  { %v2200_v10 = vshrl.u32 %v6573_v37, %v2197_v26  ;;  %v2202_v27 = vshll.u32 %v6573_v37, %v2196_v12  ;;  %v2203_v18 = vshrl.u32 %v6574_v22, %v2197_v26  ;;  %v2205_v25 = vshll.u32 %v6574_v22, %v2196_v12 }
 0x407   :  { %v2206_v52 = vshrl.u32 %v6575_v3, %v2197_v26  ;;  %v2208_v13 = vshll.u32 %v6575_v3, %v2196_v12  ;;  %v2209_v45 = vshrl.u32 %v6576_v53, %v2197_v26  ;;  %v2211_v43 = vshll.u32 %v6576_v53, %v2196_v12 }
 0x408   :  { %v2201_v56 = vor.u32 %v2200_v10, %v2199_v47  ;;  %v2204_v29 = vor.u32 %v2203_v18, %v2202_v27  ;;  %v2212_v8 = vshrl.u32 %v6577_v39, %v2197_v26  ;;  %vm2135_vm4 = vc.u32 %v5593_v31, %v5596_v5 }
 0x409   :  { %v2136_v32 = vadd.s32 1, %v5597_v28  ;;  %v2207_v58 = vor.u32 %v2206_v52, %v2205_v25  ;;  %vm2214_vm6 = vcmp.lt.s32.totalorder %v2195_v16, 1  ;;  %v2210_v54 = vor.u32 %v2209_v45, %v2208_v13 }
 0x40a   :  { %v2213_v19 = vor.u32 %v2212_v8, %v2211_v43  ;;  %vm2215_vm13 = vcmp.lt.s32.totalorder %v2195_v16, 2  ;;  %vm2216_vm1 = vcmp.lt.s32.totalorder %v2195_v16, 3  ;;  %vm2217_vm3 = vcmp.lt.s32.totalorder %v2195_v16, 4 }
 0x40b   :  { %v2137_v63 = vsel %vm2135_vm4, %v2136_v32, %v5597_v28  ;;  %v2218_v0 = vsel %vm2214_vm6, %v2198_v1, %v2201_v56  ;;  %v2222_v38 = vsel %vm2214_vm6, %v2201_v56, %v2204_v29  ;;  %v2219_v48 = vsel %vm2217_vm3, %v2207_v58, 2102212464 }
 0x40c   :  { %v2138_v23 = vadd.s32 %v2137_v63, %v2133_v30  ;;  %v2223_v14 = vsel %vm2217_vm3, %v2210_v54, 920167782  ;;  %v2226_v4 = vsel %vm2214_vm6, %v2204_v29, %v2207_v58  ;;  %v2220_v59 = vsel %vm2216_vm1, %v2204_v29, %v2219_v48  ;;  %v5631_v30 = vpop.permute.xlu0 %1969 }
 0x40d   :  { %v2224_v20 = vsel %vm2216_vm1, %v2207_v58, %v2223_v14  ;;  %v2227_v12 = vsel %vm2217_vm3, %v2213_v19, 1326507024  ;;  %v2393_v35 = vand.u32 2139095040, %v5554_v62  ;;  %v2221_v9 = vsel %vm2215_vm13, %v2218_v0, %v2220_v59 }
 0x40e   :  { %v2139_v17 = vadd.s32 536870912, %v2138_v23  ;;  %v2225_v44 = vsel %vm2215_vm13, %v2222_v38, %v2224_v20  ;;  %v2228_v55 = vsel %vm2216_vm1, %v2210_v54, %v2227_v12  ;;  %v2298_v57 = vsel %vm2297_vm2, %v5568_v60, 0 }
 0x40f   :  { %v2229_v24 = vsel %vm2215_vm13, %v2226_v4, %v2228_v55  ;;  %v5620_v61 = vmul.u32.u64.low %v5562_v40, %v2225_v44  ;;  %v5621_v26 = vmul.u32.u64.high %v5562_v40, %v2225_v44, %v5620_v61  ;;  %v2300_v47 = vand.u32 31, %v2298_v57 }
 0x410   :  { %v5624_v41 = vshrl.u32 %v2139_v17, 30  ;;  %v5627_v21 = vmul.u32.u64.low %v5562_v40, %v2229_v24  ;;  %v5628_v6 = vmul.u32.u64.high %v5562_v40, %v2229_v24, %v5627_v21  ;;  %v5635_v16 = vand.u32 8388607, %v2390_v15 }
 0x411   :  { %v2237_v28 = vmul.u32 %v5562_v40, %v2221_v9  ;;  %v5641_v1 = vshll.u32 %v2294_v42, 8  ;;  %v5644_v10 = vadd.f32 %v2067_v50, %v5631_v30  ;;  %v2240_v60 = vadd.s32 1, %v5621_v26 }
 0x412   :  { %v2141_v36 = vshll.u32 %v5624_v41, 30  ;;  %v2299_v27 = vshrl.u32 %v2298_v57, 5  ;;  %v2301_v18 = vsub.s32 32, %v2300_v47  ;;  %v2394_v25 = vshrl.u32 %v2393_v35, 23 }
 0x413   :  { %vm2239_vm9 = vc.u32 %v5628_v6, %v5620_v61  ;;  %v2303_v13 = vshll.u32 %v6572_v49, %v2300_v47  ;;  %v2306_v40 = vshll.u32 %v6573_v37, %v2300_v47  ;;  %v2309_v56 = vshll.u32 %v6574_v22, %v2300_v47 }
 0x414   :  { %v5647_v52 = vsub.s32 %v2138_v23, %v2141_v36  ;;  %v2241_v46 = vsel %vm2239_vm9, %v2240_v60, %v5621_v26  ;;  %v2304_v42 = vshrl.u32 %v6573_v37, %v2301_v18  ;;  %v2307_v45 = vshrl.u32 %v6574_v22, %v2301_v18 }
 0x415   :  { %v2242_v43 = vadd.s32 %v2241_v46, %v2237_v28  ;;  %v2310_v8 = vshrl.u32 %v6575_v3, %v2301_v18  ;;  %v2312_v32 = vshll.u32 %v6575_v3, %v2300_v47  ;;  %v2313_v19 = vshrl.u32 %v6576_v53, %v2301_v18 }
 0x416   :  { %v2144_v29 = vsub.s32 0, %v5647_v52  ;;  %v2305_v58 = vor.u32 %v2304_v42, %v2303_v13  ;;  %v2308_v54 = vor.u32 %v2307_v45, %v2306_v40  ;;  %v2315_v63 = vshll.u32 %v6576_v53, %v2300_v47 }
 0x417   :  { %v2243_v38 = vadd.s32 536870912, %v2242_v43  ;;  %v2311_v23 = vor.u32 %v2310_v8, %v2309_v56  ;;  %v2316_v48 = vshrl.u32 %v6577_v39, %v2301_v18  ;;  %v2302_v14 = vshrl.u32 %v6572_v49, %v2301_v18 }
 0x418   :  { %v3432_v0 = vmin.u32 %v2144_v29, %v5647_v52  ;;  %v2314_v4 = vor.u32 %v2313_v19, %v2312_v32  ;;  %vm2318_vm12 = vcmp.lt.s32.totalorder %v2299_v27, 1  ;;  %v2497_v59 = vand.u32 2139095040, %v5644_v10 }
 0x419   :  { %v5666_v12 = vshrl.u32 %v2243_v38, 30  ;;  %v2317_v17 = vor.u32 %v2316_v48, %v2315_v63  ;;  %vm2321_vm11 = vcmp.lt.s32.totalorder %v2299_v27, 4  ;;  %vm2320_vm14 = vcmp.lt.s32.totalorder %v2299_v27, 3 }
 0x41a   :  { %v2146_v20 = vclz %v3432_v0  ;;  %v2323_v44 = vsel %vm2321_vm11, %v2311_v23, 2102212464  ;;  %v2326_v55 = vsel %vm2318_vm12, %v2305_v58, %v2308_v54  ;;  %v2327_v35 = vsel %vm2321_vm11, %v2314_v4, 920167782 }
 0x41b   :  { %v2245_v24 = vshll.u32 %v5666_v12, 30  ;;  %vm2319_vm5 = vcmp.lt.s32.totalorder %v2299_v27, 2  ;;  %v2328_v26 = vsel %vm2320_vm14, %v2311_v23, %v2327_v35  ;;  %v2322_v50 = vsel %vm2318_vm12, %v2302_v14, %v2305_v58 }
 0x41c   :  { %v3433_v9 = vadd.s32 4294967294, %v2146_v20  ;;  %v2329_v21 = vsel %vm2319_vm5, %v2326_v55, %v2328_v26  ;;  %v2330_v57 = vsel %vm2318_vm12, %v2308_v54, %v2311_v23  ;;  %v2331_v47 = vsel %vm2321_vm11, %v2317_v17, 1326507024 }
 0x41d   :  { %v5673_v36 = vsub.s32 %v2242_v43, %v2245_v24  ;;  %v2324_v28 = vsel %vm2320_vm14, %v2308_v54, %v2323_v44  ;;  %v2332_v60 = vsel %vm2320_vm14, %v2314_v4, %v2331_v47  ;;  %v2134_v42 = vadd.s32 %v5596_v5, %v5593_v31  ;;  %v2069_v24 = vpop.f32.mrf.mxu0 }
 0x41e   :  { %vm3434_vm0 = vcmp.lt.s32.totalorder %v3433_v9, 0  ;;  %v2333_v13 = vsel %vm2319_vm5, %v2330_v57, %v2332_v60  ;;  %v5677_v40 = vmul.u32.u64.low %v5641_v1, %v2329_v21  ;;  %v5678_v46 = vmul.u32.u64.high %v5641_v1, %v2329_v21, %v5677_v40 }
 0x41f   :  { %v2149_v18 = vsel %vm3434_vm0, 0, %v3433_v9  ;;  %v2248_v29 = vsub.s32 0, %v5673_v36  ;;  %v5684_v8 = vmul.u32.u64.low %v5641_v1, %v2333_v13  ;;  %v5685_v43 = vmul.u32.u64.high %v5641_v1, %v2333_v13, %v5684_v8 }
 0x420   :  { %v2150_v45 = vsub.s32 32, %v2149_v18  ;;  %v2154_v56 = vsub.s32 4294967266, %v2149_v18  ;;  %v3443_v32 = vadd.s32 4294967169, %v2394_v25  ;;  %v2325_v63 = vsel %vm2319_vm5, %v2322_v50, %v2324_v28 }
 0x421   :  { %v3436_v19 = vmin.u32 %v2248_v29, %v5673_v36  ;;  %v2344_v0 = vadd.s32 1, %v5678_v46  ;;  %v2398_v38 = vor.u32 8388608, %v5635_v16  ;;  %v2498_v5 = vshrl.u32 %v2497_v59, 23 }
 0x422   :  { %v2152_v58 = vshrl.u32 %v2134_v42, %v2150_v45  ;;  %v2155_v54 = vadd.s32 127, %v2154_v56  ;;  %v2400_v31 = vadd.s32 1, %v3443_v32  ;;  %v2151_v23 = vshll.u32 %v5647_v52, %v2149_v18 }
 0x423   :  { %v2250_v14 = vclz %v3436_v19  ;;  %v2494_v4 = vand.u32 2147483647, %v5644_v10  ;;  %v2341_v25 = vmul.u32 %v5641_v1, %v2325_v63  ;;  %vm2343_vm15 = vc.u32 %v5685_v43, %v5677_v40 }
 0x424   :  { %v2156_v48 = vshll.u32 %v2155_v54, 23  ;;  %vm2401_vm7 = vcmp.gt.s32.totalorder %v2400_v31, 0  ;;  %v3447_v20 = vadd.s32 4294967169, %v2498_v5  ;;  %v2153_v27 = vor.u32 %v2152_v58, %v2151_v23 }
 0x425   :  { %v3437_v44 = vadd.s32 4294967294, %v2250_v14  ;;  %v2345_v55 = vsel %vm2343_vm15, %v2344_v0, %v5678_v46  ;;  %v2402_v35 = vsel %vm2401_vm7, %v2400_v31, 0  ;;  %v5698_v9 = vand.u32 8388607, %v2494_v4 }
 0x426   :  { %v2157_v17 = vor.u32 4788187, %v2156_v48  ;;  %v2346_v16 = vadd.s32 %v2345_v55, %v2341_v25  ;;  %v2404_v52 = vand.u32 31, %v2402_v35  ;;  %v2504_v50 = vadd.s32 1, %v3447_v20 }
 0x427   :  { %vm3438_vm8 = vcmp.lt.s32.totalorder %v3437_v44, 0  ;;  %v2160_v21 = vcvt.s32.f32 %v2153_v27  ;;  %v2238_v57 = vadd.s32 %v5620_v61, %v5628_v6  ;;  %v5702_v28 = vshll.u32 %v2398_v38, 8 }
 0x428   :  { %v2158_v59 = vand.u32 2147483647, %v2157_v17  ;;  %v2253_v1 = vsel %vm3438_vm8, 0, %v3437_v44  ;;  %v2347_v26 = vadd.s32 536870912, %v2346_v16  ;;  %v2405_v13 = vsub.s32 32, %v2404_v52 }
 0x429   :  { %v2258_v47 = vsub.s32 4294967266, %v2253_v1  ;;  %v2254_v60 = vsub.s32 32, %v2253_v1  ;;  %v5707_v46 = vadd.f32 %v2069_v24, %v5631_v30  ;;  %v5712_v45 = vadd.s32 %v5677_v40, %v5685_v43 }
 0x42a   :  { %v5704_v18 = vshrl.u32 %v2347_v26, 30  ;;  %v5709_v42 = vmul.f32 %v2160_v21, %v2158_v59  ;;  %v2403_v56 = vshrl.u32 %v2402_v35, 5  ;;  %v2502_v29 = vor.u32 8388608, %v5698_v9 }
 0x42b   :  { %v2407_v6 = vshll.u32 %v6572_v49, %v2404_v52  ;;  %v2408_v8 = vshrl.u32 %v6573_v37, %v2405_v13  ;;  %v2411_v32 = vshrl.u32 %v6574_v22, %v2405_v13  ;;  %vm2505_vm4 = vcmp.gt.s32.totalorder %v2504_v50, 0 }
 0x42c   :  { %v2349_v61 = vshll.u32 %v5704_v18, 30  ;;  %v2259_v58 = vadd.s32 127, %v2258_v47  ;;  %v2410_v30 = vshll.u32 %v6573_v37, %v2404_v52  ;;  %v2413_v54 = vshll.u32 %v6574_v22, %v2404_v52 }
 0x42d   :  { %v2414_v40 = vshrl.u32 %v6575_v3, %v2405_v13  ;;  %v2255_v43 = vshll.u32 %v5673_v36, %v2253_v1  ;;  %v2256_v19 = vshrl.u32 %v2238_v57, %v2254_v60  ;;  %v2409_v0 = vor.u32 %v2408_v8, %v2407_v6 }
 0x42e   :  { %v5723_v63 = vsub.s32 %v2346_v16, %v2349_v61  ;;  %v2412_v38 = vor.u32 %v2411_v32, %v2410_v30  ;;  %v2416_v5 = vshll.u32 %v6575_v3, %v2404_v52  ;;  %v2417_v23 = vshrl.u32 %v6576_v53, %v2405_v13 }
 0x42f   :  { %v2415_v31 = vor.u32 %v2414_v40, %v2413_v54  ;;  %v2406_v14 = vshrl.u32 %v6572_v49, %v2405_v13  ;;  %v2419_v25 = vshll.u32 %v6576_v53, %v2404_v52  ;;  %v2420_v20 = vshrl.u32 %v6577_v39, %v2405_v13 }
 0x430   :  { %v2352_v48 = vsub.s32 0, %v5723_v63  ;;  %v2260_v27 = vshll.u32 %v2259_v58, 23  ;;  %v2418_v36 = vor.u32 %v2417_v23, %v2416_v5  ;;  %vm2422_vm6 = vcmp.lt.s32.totalorder %v2403_v56, 1 }
 0x431   :  { %vm2423_vm13 = vcmp.lt.s32.totalorder %v2403_v56, 2  ;;  %v2421_v44 = vor.u32 %v2420_v20, %v2419_v25  ;;  %vm2424_vm1 = vcmp.lt.s32.totalorder %v2403_v56, 3  ;;  %vm2425_vm3 = vcmp.lt.s32.totalorder %v2403_v56, 4 }
 0x432   :  { %v3440_v17 = vmin.u32 %v2352_v48, %v5723_v63  ;;  %v2426_v55 = vsel %vm2422_vm6, %v2406_v14, %v2409_v0  ;;  %v2427_v16 = vsel %vm2425_vm3, %v2415_v31, 2102212464  ;;  %v2430_v35 = vsel %vm2422_vm6, %v2409_v0, %v2412_v38 }
 0x433   :  { %v2431_v59 = vsel %vm2425_vm3, %v2418_v36, 920167782  ;;  %v2428_v24 = vsel %vm2424_vm1, %v2412_v38, %v2427_v16  ;;  %v2434_v26 = vsel %vm2422_vm6, %v2412_v38, %v2415_v31  ;;  %v5732_v52 = vor.u32 %v2256_v19, %v2255_v43 }
 0x434   :  { %v2354_v9 = vclz %v3440_v17  ;;  %v2432_v1 = vsel %vm2424_vm1, %v2415_v31, %v2431_v59  ;;  %v5734_v21 = vor.u32 4788187, %v2260_v27  ;;  %v2435_v47 = vsel %vm2425_vm3, %v2421_v44, 1326507024 }
 0x435   :  { %v2433_v57 = vsel %vm2423_vm13, %v2430_v35, %v2432_v1  ;;  %v2436_v13 = vsel %vm2424_vm1, %v2418_v36, %v2435_v47  ;;  %v2429_v8 = vsel %vm2423_vm13, %v2426_v55, %v2428_v24  ;;  %v2506_v58 = vsel %vm2505_vm4, %v2504_v50, 0 }
 0x436   :  { %v3441_v60 = vadd.s32 4294967294, %v2354_v9  ;;  %v5738_v61 = vmul.u32.u64.low %v5702_v28, %v2433_v57  ;;  %v5739_v6 = vmul.u32.u64.high %v5702_v28, %v2433_v57, %v5738_v61  ;;  %v2437_v32 = vsel %vm2423_vm13, %v2434_v26, %v2436_v13 }
 0x437   :  { %v5745_v30 = vshll.u32 %v2502_v29, 8  ;;  %v2162_v54 = vxor.u32 2147483648, %v5709_v42  ;;  %v5749_v40 = vmul.u32.u64.low %v5702_v28, %v2437_v32  ;;  %v5750_v43 = vmul.u32.u64.high %v5702_v28, %v2437_v32, %v5749_v40 }
 0x438   :  { %vm3442_vm2 = vcmp.lt.s32.totalorder %v3441_v60, 0  ;;  %v2262_v19 = vand.u32 2147483647, %v5734_v21  ;;  %v2264_v0 = vcvt.s32.f32 %v5732_v52  ;;  %v2508_v31 = vand.u32 31, %v2506_v58 }
 0x439   :  { %v2357_v38 = vsel %vm3442_vm2, 0, %v3441_v60  ;;  %v2445_v23 = vmul.u32 %v5702_v28, %v2429_v8  ;;  %v2448_v50 = vadd.s32 1, %v5739_v6  ;;  %v5757_v48 = vshrl.u32 %v2506_v58, 5 }
 0x43a   :  { %v2358_v5 = vsub.s32 32, %v2357_v38  ;;  %v2362_v56 = vsub.s32 4294967266, %v2357_v38  ;;  %v2359_v29 = vshll.u32 %v5723_v63, %v2357_v38  ;;  %v2509_v14 = vsub.s32 32, %v2508_v31 }
 0x43b   :  { %v2511_v25 = vshll.u32 %v6572_v49, %v2508_v31  ;;  %vm2447_vm9 = vc.u32 %v5750_v43, %v5738_v61  ;;  %v2514_v36 = vshll.u32 %v6573_v37, %v2508_v31  ;;  %v2517_v63 = vshll.u32 %v6574_v22, %v2508_v31 }
 0x43c   :  { %v2360_v20 = vshrl.u32 %v5712_v45, %v2358_v5  ;;  %v2363_v27 = vadd.s32 127, %v2362_v56  ;;  %v2449_v17 = vsel %vm2447_vm9, %v2448_v50, %v5739_v6  ;;  %v2512_v28 = vshrl.u32 %v6573_v37, %v2509_v14 }
 0x43d   :  { %v2515_v44 = vshrl.u32 %v6574_v22, %v2509_v14  ;;  %v2450_v35 = vadd.s32 %v2449_v17, %v2445_v23  ;;  %v2518_v59 = vshrl.u32 %v6575_v3, %v2509_v14  ;;  %vm2288_vm12 = vcmp.lt.s32.totalorder %v5548_v2, 0 }
 0x43e   :  { %v2361_v55 = vor.u32 %v2360_v20, %v2359_v29  ;;  %v2364_v16 = vshll.u32 %v2363_v27, 23  ;;  %v2513_v45 = vor.u32 %v2512_v28, %v2511_v25  ;;  %v2520_v24 = vshll.u32 %v6575_v3, %v2508_v31 }
 0x43f   :  { %v2516_v9 = vor.u32 %v2515_v44, %v2514_v36  ;;  %v2521_v1 = vshrl.u32 %v6576_v53, %v2509_v14  ;;  %v2451_v52 = vadd.s32 536870912, %v2450_v35  ;;  %v2519_v21 = vor.u32 %v2518_v59, %v2517_v63 }
 0x440   :  { %v2365_v26 = vor.u32 4788187, %v2364_v16  ;;  %v2598_v57 = vand.u32 2147483647, %v5707_v46  ;;  %v2510_v47 = vshrl.u32 %v6572_v49, %v2509_v14  ;;  %v2523_v13 = vshll.u32 %v6576_v53, %v2508_v31 }
 0x441   :  { %v2522_v60 = vor.u32 %v2521_v1, %v2520_v24  ;;  %v2524_v6 = vshrl.u32 %v6577_v39, %v2509_v14  ;;  %v2368_v32 = vcvt.s32.f32 %v2361_v55  ;;  %v5776_v58 = vshrl.u32 %v2451_v52, 30  ;;  %v2073_v55 = vpop.f32.mrf.mxu0 }
 0x442   :  { %v2366_v8 = vand.u32 2147483647, %v2365_v26  ;;  %vm2526_vm11 = vcmp.lt.s32.totalorder %v5757_v48, 1  ;;  %vm2528_vm14 = vcmp.lt.s32.totalorder %v5757_v48, 3  ;;  %vm2529_vm5 = vcmp.lt.s32.totalorder %v5757_v48, 4 }
 0x443   :  { %v2525_v40 = vor.u32 %v2524_v6, %v2523_v13  ;;  %v2534_v38 = vsel %vm2526_vm11, %v2513_v45, %v2516_v9  ;;  %v2453_v56 = vshll.u32 %v5776_v58, 30  ;;  %v2531_v23 = vsel %vm2529_vm5, %v2519_v21, 2102212464 }
 0x444   :  { %v2369_v5 = vmul.f32 %v2368_v32, %v2366_v8  ;;  %v2535_v50 = vsel %vm2529_vm5, %v2522_v60, 920167782  ;;  %vm2527_vm0 = vcmp.lt.s32.totalorder %v5757_v48, 2  ;;  %v2538_v29 = vsel %vm2526_vm11, %v2516_v9, %v2519_v21 }
 0x445   :  { %v2536_v31 = vsel %vm2528_vm14, %v2519_v21, %v2535_v50  ;;  %v2539_v14 = vsel %vm2529_vm5, %v2525_v40, 1326507024  ;;  %v5785_v20 = vsub.s32 %v2450_v35, %v2453_v56  ;;  %v2530_v27 = vsel %vm2526_vm11, %v2510_v47, %v2513_v45  ;;  %v2075_v40 = vpop.f32.mrf.mxu0 }
 0x446   :  { %v2370_v25 = vxor.u32 2147483648, %v2369_v5  ;;  %v2537_v36 = vsel %vm2527_vm0, %v2534_v38, %v2536_v31  ;;  %v2532_v17 = vsel %vm2528_vm14, %v2516_v9, %v2531_v23  ;;  %v2540_v28 = vsel %vm2528_vm14, %v2522_v60, %v2539_v14  ;;  %v1975_v9 = vpop.permute.xlu1 %1974 }
 0x447   :  { %v5794_v44 = vmul.u32.u64.low %v5745_v30, %v2537_v36  ;;  %v5795_v63 = vmul.u32.u64.high %v5745_v30, %v2537_v36, %v5794_v44  ;;  %v5798_v16 = vmul.f32 %v2264_v0, %v2262_v19  ;;  %v2456_v59 = vsub.s32 0, %v5785_v20 }
 0x448   :  { %v2371_v35 = vsel %vm2288_vm12, %v2370_v25, %v2369_v5  ;;  %v2541_v45 = vsel %vm2527_vm0, %v2538_v29, %v2540_v28  ;;  %vm5807_vm15 = vcmp.le.f32.partialorder %v2286_v34, 0.7853982  ;;  %v2601_v19 = vand.u32 2139095040, %v5707_v46 }
 0x449   :  { %v5812_v1 = vmul.u32.u64.low %v5745_v30, %v2541_v45  ;;  %v5813_v26 = vmul.u32.u64.high %v5745_v30, %v2541_v45, %v5812_v1  ;;  %v3444_v0 = vmin.u32 %v2456_v59, %v5785_v20  ;;  %v2533_v52 = vsel %vm2527_vm0, %v2530_v27, %v2532_v17 }
 0x44a   :  { %v2605_v21 = vand.u32 8388607, %v2598_v57  ;;  %v5821_v47 = vadd.f32 %v2073_v55, %v1975_v9  ;;  %vm2080_vm7 = vcmp.lt.s32.totalorder %v5538_v51, 0  ;;  %v2374_v34 = vsel %vm5807_vm15, %v5548_v2, %v2371_v35 }
 0x44b   :  { %v2552_v60 = vadd.s32 1, %v5795_v63  ;;  %v2602_v13 = vshrl.u32 %v2601_v19, 23  ;;  %v5833_v48 = vsel %vm2080_vm7, %v2162_v54, %v5709_v42  ;;  %v2266_v6 = vxor.u32 2147483648, %v5798_v16 }
 0x44c   :  { %v2458_v8 = vclz %v3444_v0  ;;  %v2606_v32 = vor.u32 8388608, %v2605_v21  ;;  %v2549_v38 = vmul.u32 %v5745_v30, %v2533_v52  ;;  %vm2551_vm8 = vc.u32 %v5813_v26, %v5794_v44 }
 0x44d   :  { %v3451_v5 = vadd.s32 4294967169, %v2602_v13  ;;  %v2705_v56 = vand.u32 2139095040, %v5821_v47  ;;  %3770 = vcosq.f32 %v2374_v34  ;;  %v2553_v50 = vsel %vm2551_vm8, %v2552_v60, %v5795_v63 }
 0x44e   :  { %v3445_v23 = vadd.s32 4294967294, %v2458_v8  ;;  %v2702_v42 = vand.u32 2147483647, %v5821_v47  ;;  %v2554_v54 = vadd.s32 %v2553_v50, %v2549_v38  ;;  %v5842_v14 = vadd.f32 %v2075_v40, %v1975_v9 }
 0x44f   :  { %v2608_v31 = vadd.s32 1, %v3451_v5  ;;  %v2706_v29 = vshrl.u32 %v2705_v56, 23  ;;  %3772 = vsinq.f32 %v2374_v34  ;;  %v2446_v30 = vadd.s32 %v5738_v61, %v5750_v43 }
 0x450   :  { %vm3446_vm4 = vcmp.lt.s32.totalorder %v3445_v23, 0  ;;  %v5846_v25 = vshll.u32 %v2606_v32, 8  ;;  %v2555_v36 = vadd.s32 536870912, %v2554_v54  ;;  %v5850_v35 = vand.u32 8388607, %v2702_v42 }
 0x451   :  { %v2461_v27 = vsel %vm3446_vm4, 0, %v3445_v23  ;;  %vm2609_vm6 = vcmp.gt.s32.totalorder %v2608_v31, 0  ;;  %v3455_v17 = vadd.s32 4294967169, %v2706_v29  ;;  %v2809_v61 = vand.u32 2139095040, %v5842_v14 }
 0x452   :  { %v2462_v28 = vsub.s32 32, %v2461_v27  ;;  %v2466_v63 = vsub.s32 4294967266, %v2461_v27  ;;  %v2610_v55 = vsel %vm2609_vm6, %v2608_v31, 0  ;;  %v2463_v59 = vshll.u32 %v5785_v20, %v2461_v27 }
 0x453   :  { %v5853_v45 = vshrl.u32 %v2555_v36, 30  ;;  %v2612_v9 = vand.u32 31, %v2610_v55  ;;  %v2611_v19 = vshrl.u32 %v2610_v55, 5  ;;  %v5856_v0 = vadd.s32 1, %v3455_v17 }
 0x454   :  { %v2464_v43 = vshrl.u32 %v2446_v30, %v2462_v28  ;;  %v2467_v1 = vadd.s32 127, %v2466_v63  ;;  %vm2392_vm13 = vcmp.lt.s32.totalorder %v5554_v62, 0  ;;  %vm5875_vm1 = vcmp.le.f32.partialorder %v2390_v15, 0.7853982 }
 0x455   :  { %v2557_v52 = vshll.u32 %v5853_v45, 30  ;;  %v2613_v21 = vsub.s32 32, %v2612_v9  ;;  %v2615_v34 = vshll.u32 %v6572_v49, %v2612_v9  ;;  %v2618_v60 = vshll.u32 %v6573_v37, %v2612_v9 }
 0x456   :  { %v2465_v13 = vor.u32 %v2464_v43, %v2463_v59  ;;  %v2468_v8 = vshll.u32 %v2467_v1, 23  ;;  %v2621_v20 = vshll.u32 %v6574_v22, %v2612_v9  ;;  %v2624_v32 = vshll.u32 %v6575_v3, %v2612_v9 }
 0x457   :  { %v5864_v40 = vsub.s32 %v2554_v54, %v2557_v52  ;;  %v2614_v38 = vshrl.u32 %v6572_v49, %v2613_v21  ;;  %v2616_v5 = vshrl.u32 %v6573_v37, %v2613_v21  ;;  %v2619_v56 = vshrl.u32 %v6574_v22, %v2613_v21 }
 0x458   :  { %v2469_v23 = vor.u32 4788187, %v2468_v8  ;;  %v2472_v50 = vcvt.s32.f32 %v2465_v13  ;;  %v2622_v31 = vshrl.u32 %v6575_v3, %v2613_v21  ;;  %v2625_v29 = vshrl.u32 %v6576_v53, %v2613_v21 }
 0x459   :  { %v2560_v30 = vsub.s32 0, %v5864_v40  ;;  %v2617_v27 = vor.u32 %v2616_v5, %v2615_v34  ;;  %v2620_v36 = vor.u32 %v2619_v56, %v2618_v60  ;;  %v2627_v17 = vshll.u32 %v6576_v53, %v2612_v9 }
 0x45a   :  { %v2470_v28 = vand.u32 2147483647, %v2469_v23  ;;  %v2623_v63 = vor.u32 %v2622_v31, %v2621_v20  ;;  %v2626_v55 = vor.u32 %v2625_v29, %v2624_v32  ;;  %v2628_v59 = vshrl.u32 %v6577_v39, %v2613_v21  ;;  %v5880_v43 = vpop.eup %3770 }
 0x45b   :  { %v3448_v1 = vmin.u32 %v2560_v30, %v5864_v40  ;;  %vm2630_vm3 = vcmp.lt.s32.totalorder %v2611_v19, 1  ;;  %vm2631_vm2 = vcmp.lt.s32.totalorder %v2611_v19, 2  ;;  %vm2632_vm9 = vcmp.lt.s32.totalorder %v2611_v19, 3 }
 0x45c   :  { %v2473_v52 = vmul.f32 %v2472_v50, %v2470_v28  ;;  %v2629_v9 = vor.u32 %v2628_v59, %v2627_v17  ;;  %vm2633_vm11 = vcmp.lt.s32.totalorder %v2611_v19, 4  ;;  %v2634_v34 = vsel %vm2630_vm3, %v2614_v38, %v2617_v27  ;;  %v5883_v15 = vpop.eup %3772 }
 0x45d   :  { %v2562_v60 = vclz %v3448_v1  ;;  %v2635_v13 = vsel %vm2633_vm11, %v2623_v63, 2102212464  ;;  %v2638_v8 = vsel %vm2630_vm3, %v2617_v27, %v2620_v36  ;;  %v2639_v20 = vsel %vm2633_vm11, %v2626_v55, 920167782 }
 0x45e   :  { %v2474_v32 = vxor.u32 2147483648, %v2473_v52  ;;  %v2636_v21 = vsel %vm2632_vm9, %v2620_v36, %v2635_v13  ;;  %v2640_v5 = vsel %vm2632_vm9, %v2623_v63, %v2639_v20  ;;  %v2642_v56 = vsel %vm2630_vm3, %v2620_v36, %v2623_v63 }
 0x45f   :  { %v3449_v23 = vadd.s32 4294967294, %v2562_v60  ;;  %v2637_v31 = vsel %vm2631_vm2, %v2634_v34, %v2636_v21  ;;  %v2641_v50 = vsel %vm2631_vm2, %v2638_v8, %v2640_v5  ;;  %v2643_v29 = vsel %vm2633_vm11, %v2629_v9, 1326507024 }
 0x460   :  { %v2475_v38 = vsel %vm2392_vm13, %v2474_v32, %v2473_v52  ;;  %v2644_v30 = vsel %vm2632_vm9, %v2626_v55, %v2643_v29  ;;  %v5893_v27 = vmul.u32.u64.low %v5846_v25, %v2641_v50  ;;  %v5894_v17 = vmul.u32.u64.high %v5846_v25, %v2641_v50, %v5893_v27 }
 0x461   :  { %v2550_v28 = vadd.s32 %v5794_v44, %v5813_v26  ;;  %vm3450_vm14 = vcmp.lt.s32.totalorder %v3449_v23, 0  ;;  %v2645_v36 = vsel %vm2631_vm2, %v2642_v56, %v2644_v30  ;;  %v2710_v63 = vor.u32 8388608, %v5850_v35 }
 0x462   :  { %v2565_v59 = vsel %vm3450_vm14, 0, %v3449_v23  ;;  %v5902_v1 = vmul.u32.u64.low %v5846_v25, %v2645_v36  ;;  %v5903_v9 = vmul.u32.u64.high %v5846_v25, %v2645_v36, %v5902_v1  ;;  %v2806_v55 = vand.u32 2147483647, %v5842_v14 }
 0x463   :  { %v5909_v52 = vsel %vm5875_vm1, %v5554_v62, %v2475_v38  ;;  %v2566_v34 = vsub.s32 32, %v2565_v59  ;;  %v2570_v60 = vsub.s32 4294967266, %v2565_v59  ;;  %v2653_v44 = vmul.u32 %v5846_v25, %v2637_v31 }
 0x464   :  { %v2567_v26 = vshll.u32 %v5864_v40, %v2565_v59  ;;  %v2656_v35 = vadd.s32 1, %v5894_v17  ;;  %vm2713_vm5 = vcmp.gt.s32.totalorder %v5856_v0, 0  ;;  %v2810_v19 = vshrl.u32 %v2809_v61, 23 }
 0x465   :  { %v2568_v13 = vshrl.u32 %v2550_v28, %v2566_v34  ;;  %v2571_v8 = vadd.s32 127, %v2570_v60  ;;  %v2714_v20 = vsel %vm2713_vm5, %v5856_v0, 0  ;;  %v5918_v32 = vshll.u32 %v2710_v63, 8 }
 0x466   :  { %vm2655_vm0 = vc.u32 %v5903_v9, %v5893_v27  ;;  %v5922_v21 = vshrl.u32 %v2714_v20, 5  ;;  %v2716_v25 = vand.u32 31, %v2714_v20  ;;  %v5926_v40 = vand.u32 8388607, %v2806_v55 }
 0x467   :  { %v2569_v5 = vor.u32 %v2568_v13, %v2567_v26  ;;  %v2572_v56 = vshll.u32 %v2571_v8, 23  ;;  %v2657_v61 = vsel %vm2655_vm0, %v2656_v35, %v5894_v17  ;;  %v3459_v23 = vadd.s32 4294967169, %v2810_v19 }
 0x468   :  { %vm2496_vm8 = vcmp.lt.s32.totalorder %v5644_v10, 0  ;;  %v2658_v0 = vadd.s32 %v2657_v61, %v2653_v44  ;;  %v2717_v31 = vsub.s32 32, %v2716_v25  ;;  %v2719_v50 = vshll.u32 %v6572_v49, %v2716_v25 }
 0x469   :  { %v2722_v29 = vshll.u32 %v6573_v37, %v2716_v25  ;;  %vm2184_vm4 = vcmp.lt.s32.totalorder %v5542_v33, 0  ;;  %v2573_v38 = vor.u32 4788187, %v2572_v56  ;;  %v2576_v30 = vcvt.s32.f32 %v2569_v5 }
 0x46a   :  { %v2725_v28 = vshll.u32 %v6574_v22, %v2716_v25  ;;  %v2728_v36 = vshll.u32 %v6575_v3, %v2716_v25  ;;  %v2659_v63 = vadd.s32 536870912, %v2658_v0  ;;  %v2718_v17 = vshrl.u32 %v6572_v49, %v2717_v31 }
 0x46b   :  { %v2720_v59 = vshrl.u32 %v6573_v37, %v2717_v31  ;;  %v2723_v1 = vshrl.u32 %v6574_v22, %v2717_v31  ;;  %vm5940_vm6 = vcmp.le.f32.partialorder %v2494_v4, 0.7853982  ;;  %v2574_v60 = vand.u32 2147483647, %v2573_v38 }
 0x46c   :  { %v2726_v44 = vshrl.u32 %v6575_v3, %v2717_v31  ;;  %v2729_v26 = vshrl.u32 %v6576_v53, %v2717_v31  ;;  %v2731_v35 = vshll.u32 %v6576_v53, %v2716_v25  ;;  %v5947_v19 = vshrl.u32 %v2659_v63, 30 }
 0x46d   :  { %v2721_v13 = vor.u32 %v2720_v59, %v2719_v50  ;;  %v2724_v8 = vor.u32 %v2723_v1, %v2722_v29  ;;  %v2732_v20 = vshrl.u32 %v6577_v39, %v2717_v31  ;;  %v2577_v5 = vmul.f32 %v2576_v30, %v2574_v60 }
 0x46e   :  { %v2727_v56 = vor.u32 %v2726_v44, %v2725_v28  ;;  %v2730_v61 = vor.u32 %v2729_v26, %v2728_v36  ;;  %vm2734_vm3 = vcmp.lt.s32.totalorder %v5922_v21, 1  ;;  %vm5953_vm2 = vcmp.le.f32.partialorder %v2078_v7, 0.7853982 }
 0x46f   :  { %v2661_v38 = vshll.u32 %v5947_v19, 30  ;;  %v2733_v25 = vor.u32 %v2732_v20, %v2731_v35  ;;  %vm2735_vm9 = vcmp.lt.s32.totalorder %v5922_v21, 2  ;;  %vm2736_vm11 = vcmp.lt.s32.totalorder %v5922_v21, 3 }
 0x470   :  { %v2578_v50 = vxor.u32 2147483648, %v2577_v5  ;;  %vm2737_vm14 = vcmp.lt.s32.totalorder %v5922_v21, 4  ;;  %v2738_v31 = vsel %vm2734_vm3, %v2718_v17, %v2721_v13  ;;  %v2742_v29 = vsel %vm2734_vm3, %v2721_v13, %v2724_v8 }
 0x471   :  { %v5961_v30 = vsub.s32 %v2658_v0, %v2661_v38  ;;  %v2739_v28 = vsel %vm2737_vm14, %v2727_v56, 2102212464  ;;  %v2743_v36 = vsel %vm2737_vm14, %v2730_v61, 920167782  ;;  %v2746_v7 = vsel %vm2734_vm3, %v2724_v8, %v2727_v56 }
 0x472   :  { %v2579_v63 = vsel %vm2496_vm8, %v2578_v50, %v2577_v5  ;;  %v2740_v59 = vsel %vm2736_vm11, %v2724_v8, %v2739_v28  ;;  %v2744_v1 = vsel %vm2736_vm11, %v2727_v56, %v2743_v36  ;;  %v2747_v60 = vsel %vm2737_vm14, %v2733_v25, 1326507024 }
 0x473   :  { %v5974_v0 = vsel %vm2184_vm4, %v2266_v6, %v5798_v16  ;;  %3774 = vcosq.f32 %v5909_v52  ;;  %v2664_v17 = vsub.s32 0, %v5961_v30  ;;  %v2745_v44 = vsel %vm2735_vm9, %v2742_v29, %v2744_v1 }
 0x474   :  { %3776 = vsinq.f32 %v5909_v52  ;;  %v2748_v26 = vsel %vm2736_vm11, %v2730_v61, %v2747_v60  ;;  %v5984_v35 = vmul.u32.u64.low %v5918_v32, %v2745_v44  ;;  %v5985_v13 = vmul.u32.u64.high %v5918_v32, %v2745_v44, %v5984_v35 }
 0x475   :  { %v5991_v16 = vsel %vm5940_vm6, %v5644_v10, %v2579_v63  ;;  %v3452_v6 = vmin.u32 %v2664_v17, %v5961_v30  ;;  %v2741_v8 = vsel %vm2735_vm9, %v2738_v31, %v2740_v59  ;;  %v2749_v52 = vsel %vm2735_vm9, %v2746_v7, %v2748_v26 }
 0x476   :  { %v5999_v20 = vmul.u32.u64.low %v5918_v32, %v2749_v52  ;;  %v6000_v5 = vmul.u32.u64.high %v5918_v32, %v2749_v52, %v5999_v20  ;;  %v2814_v56 = vor.u32 8388608, %v5926_v40  ;;  %v2816_v61 = vadd.s32 1, %v3459_v23 }
 0x477   :  { %v2654_v38 = vadd.s32 %v5893_v27, %v5903_v9  ;;  %v2666_v25 = vclz %v3452_v6  ;;  %v2164_v50 = vsub.s32 4, %v5624_v41  ;;  %v2166_v31 = vsel %vm5953_vm2, %v5538_v51, %v5833_v48 }
 0x478   :  { %3778 = vcosq.f32 %v5991_v16  ;;  %v2757_v21 = vmul.u32 %v5918_v32, %v2741_v8  ;;  %v2760_v29 = vadd.s32 1, %v5985_v13  ;;  %vm2817_vm5 = vcmp.gt.s32.totalorder %v2816_v61, 0 }
 0x479   :  { %v3453_v40 = vadd.s32 4294967294, %v2666_v25  ;;  %v2818_v23 = vsel %vm2817_vm5, %v2816_v61, 0  ;;  %v6016_v27 = vsel %vm2080_vm7, %v2164_v50, %v5624_v41  ;;  %3780 = vcosq.f32 %v2166_v31 }
 0x47a   :  { %vm2759_vm0 = vc.u32 %v6000_v5, %v5984_v35  ;;  %v2820_v9 = vand.u32 31, %v2818_v23  ;;  %v6020_v48 = vshll.u32 %v2814_v56, 8  ;;  %3782 = vsinq.f32 %v2166_v31 }
 0x47b   :  { %vm3454_vm3 = vcmp.lt.s32.totalorder %v3453_v40, 0  ;;  %v2761_v32 = vsel %vm2759_vm0, %v2760_v29, %v5985_v13  ;;  %v6023_v28 = vshrl.u32 %v2818_v23, 5  ;;  %v2167_v36 = vsel %vm5953_vm2, 0, %v6016_v27 }
 0x47c   :  { %v2669_v7 = vsel %vm3454_vm3, 0, %v3453_v40  ;;  %v2762_v41 = vadd.s32 %v2761_v32, %v2757_v21  ;;  %v2821_v63 = vsub.s32 32, %v2820_v9  ;;  %v2268_v59 = vsub.s32 4, %v5666_v12 }
 0x47d   :  { %v2670_v1 = vsub.s32 32, %v2669_v7  ;;  %v2671_v60 = vshll.u32 %v5961_v30, %v2669_v7  ;;  %v2674_v17 = vsub.s32 4294967266, %v2669_v7  ;;  %v2823_v44 = vshll.u32 %v6572_v49, %v2820_v9 }
 0x47e   :  { %v2763_v26 = vadd.s32 536870912, %v2762_v41  ;;  %v2824_v13 = vshrl.u32 %v6573_v37, %v2821_v63  ;;  %v2826_v6 = vshll.u32 %v6573_v37, %v2820_v9  ;;  %v2827_v8 = vshrl.u32 %v6574_v22, %v2821_v63 }
 0x47f   :  { %v2672_v52 = vshrl.u32 %v2654_v38, %v2670_v1  ;;  %v2675_v20 = vadd.s32 127, %v2674_v17  ;;  %v2829_v56 = vshll.u32 %v6574_v22, %v2820_v9  ;;  %v2830_v61 = vshrl.u32 %v6575_v3, %v2821_v63 }
 0x480   :  { %v6036_v25 = vpop.eup %3774  ;;  %v6038_v50 = vshrl.u32 %v2763_v26, 30  ;;  %v2825_v30 = vor.u32 %v2824_v13, %v2823_v44  ;;  %v2828_v31 = vor.u32 %v2827_v8, %v2826_v6  ;;  %v2832_v21 = vshll.u32 %v6575_v3, %v2820_v9 }
 0x481   :  { %v6041_v29 = vpop.eup %3776  ;;  %v2673_v40 = vor.u32 %v2672_v52, %v2671_v60  ;;  %v2676_v37 = vshll.u32 %v2675_v20, 23  ;;  %v2831_v23 = vor.u32 %v2830_v61, %v2829_v56  ;;  %v2833_v38 = vshrl.u32 %v6576_v53, %v2821_v63 }
 0x482   :  { %vm2600_vm7 = vcmp.lt.s32.totalorder %v5707_v46, 0  ;;  %v2765_v22 = vshll.u32 %v6038_v50, 30  ;;  %v2822_v32 = vshrl.u32 %v6572_v49, %v2821_v63  ;;  %v2835_v7 = vshll.u32 %v6576_v53, %v2820_v9 }
 0x483   :  { %v2836_v1 = vshrl.u32 %v6577_v39, %v2821_v63  ;;  %v2677_v17 = vor.u32 4788187, %v2676_v37  ;;  %v2680_v44 = vcvt.s32.f32 %v2673_v40  ;;  %v2834_v3 = vor.u32 %v2833_v38, %v2832_v21 }
 0x484   :  { %vm2838_vm9 = vcmp.lt.s32.totalorder %v6023_v28, 1  ;;  %vm6052_vm11 = vcmp.le.f32.partialorder %v2598_v57, 0.7853982  ;;  %v6056_v26 = vsub.s32 %v2762_v41, %v2765_v22  ;;  %vm2840_vm14 = vcmp.lt.s32.totalorder %v6023_v28, 3 }
 0x485   :  { %v2837_v13 = vor.u32 %v2836_v1, %v2835_v7  ;;  %vm2841_vm5 = vcmp.lt.s32.totalorder %v6023_v28, 4  ;;  %v6060_v49 = vpop.eup %3778  ;;  %v2678_v53 = vand.u32 2147483647, %v2677_v17  ;;  %v2842_v39 = vsel %vm2838_vm9, %v2822_v32, %v2825_v30 }
 0x486   :  { %v2843_v9 = vsel %vm2841_vm5, %v2831_v23, 2102212464  ;;  %v2846_v63 = vsel %vm2838_vm9, %v2825_v30, %v2828_v31  ;;  %v3781_v6 = vpop.eup %3780  ;;  %v2768_v8 = vsub.s32 0, %v6056_v26  ;;  %v2847_v52 = vsel %vm2841_vm5, %v2834_v3, 920167782 }
 0x487   :  { %v2844_v57 = vsel %vm2840_vm14, %v2828_v31, %v2843_v9  ;;  %v2850_v41 = vsel %vm2838_vm9, %v2828_v31, %v2831_v23  ;;  %v3783_v20 = vpop.eup %3782  ;;  %v2681_v56 = vmul.f32 %v2680_v44, %v2678_v53  ;;  %vm2839_vm0 = vcmp.lt.s32.totalorder %v6023_v28, 2 }
 0x488   :  { %v2848_v61 = vsel %vm2840_vm14, %v2831_v23, %v2847_v52  ;;  %v2851_v21 = vsel %vm2841_vm5, %v2837_v13, 1326507024  ;;  %v3456_v40 = vmin.u32 %v2768_v8, %v6056_v26  ;;  %v2845_v37 = vsel %vm2839_vm0, %v2842_v39, %v2844_v57 }
 0x489   :  { %v2849_v30 = vsel %vm2839_vm0, %v2846_v63, %v2848_v61  ;;  %v2852_v38 = vsel %vm2840_vm14, %v2834_v3, %v2851_v21  ;;  %v2682_v22 = vxor.u32 2147483648, %v2681_v56  ;;  %v2171_v23 = vadd.s32 3, %v2167_v36 }
 0x48a   :  { %v2853_v32 = vsel %vm2839_vm0, %v2850_v41, %v2852_v38  ;;  %v6072_v7 = vmul.u32.u64.low %v6020_v48, %v2849_v30  ;;  %v6073_v31 = vmul.u32.u64.high %v6020_v48, %v2849_v30, %v6072_v7  ;;  %v2770_v1 = vclz %v3456_v40 }
 0x48b   :  { %v6076_v17 = vmul.u32.u64.low %v6020_v48, %v2853_v32  ;;  %v6077_v44 = vmul.u32.u64.high %v6020_v48, %v2853_v32, %v6076_v17  ;;  %3784 = vsinq.f32 %v5991_v16  ;;  %v2683_v28 = vsel %vm2600_vm7, %v2682_v22, %v2681_v56 }
 0x48c   :  { %vm6088_vm3 = vcmp.le.f32.partialorder %v2182_v11, 0.7853982  ;;  %v2269_v4 = vsel %vm2184_vm4, %v2268_v59, %v5666_v12  ;;  %v2758_v27 = vadd.s32 %v5984_v35, %v6000_v5  ;;  %v3457_v36 = vadd.s32 4294967294, %v2770_v1 }
 0x48d   :  { %v2861_v16 = vmul.u32 %v6020_v48, %v2845_v37  ;;  %v2172_v13 = vand.u32 3, %v2171_v23  ;;  %v2686_v11 = vsel %vm6052_vm11, %v5707_v46, %v2683_v28  ;;  %v2864_v53 = vadd.s32 1, %v6073_v31 }
 0x48e   :  { %v2175_v39 = vxor.u32 2147483648, %v3783_v20  ;;  %v2178_v9 = vxor.u32 2147483648, %v3781_v6  ;;  %vm3458_vm2 = vcmp.lt.s32.totalorder %v3457_v36, 0  ;;  %vm2863_vm9 = vc.u32 %v6077_v44, %v6072_v7 }
 0x48f   :  { %v2270_v12 = vsel %vm6088_vm3, %v5542_v33, %v5974_v0  ;;  %v2271_v35 = vsel %vm6088_vm3, 0, %v2269_v4  ;;  %v2773_v5 = vsel %vm3458_vm2, 0, %v3457_v36  ;;  %v2865_v48 = vsel %vm2863_vm9, %v2864_v53, %v6073_v31 }
 0x490   :  { %vm2173_vm4 = vcmp.lt.s32.totalorder %v2172_v13, 2  ;;  %vm2174_vm14 = vcmp.eq.s32.totalorder %v2172_v13, 0  ;;  %v2774_v59 = vsub.s32 32, %v2773_v5  ;;  %v2775_v63 = vshll.u32 %v6056_v26, %v2773_v5 }
 0x491   :  { %v2778_v8 = vsub.s32 4294967266, %v2773_v5  ;;  %v2866_v57 = vadd.s32 %v2865_v48, %v2861_v16  ;;  %v2176_v52 = vsel %vm2174_vm14, %v3781_v6, %v2175_v39  ;;  %vm2177_vm5 = vcmp.eq.s32.totalorder %v2172_v13, 2 }
 0x492   :  { %3786 = vcosq.f32 %v2270_v12  ;;  %v2275_v41 = vadd.s32 3, %v2271_v35  ;;  %v2776_v56 = vshrl.u32 %v2758_v27, %v2774_v59  ;;  %v2179_v21 = vsel %vm2177_vm5, %v2178_v9, %v3783_v20 }
 0x493   :  { %v2779_v61 = vadd.s32 127, %v2778_v8  ;;  %v2867_v0 = vadd.s32 536870912, %v2866_v57  ;;  %vm2170_vm0 = vweird.f32 %v5538_v51  ;;  %v2180_v40 = vsel %vm2173_vm4, %v2176_v52, %v2179_v21 }
 0x494   :  { %3788 = vsinq.f32 %v2270_v12  ;;  %v2372_v37 = vsub.s32 4, %v5704_v18  ;;  %v2777_v30 = vor.u32 %v2776_v56, %v2775_v63  ;;  %v2181_v26 = vsel %vm2170_vm0, nan, %v2180_v40 }
 0x495   :  { %v2780_v38 = vshll.u32 %v2779_v61, 23  ;;  %v6115_v22 = vshrl.u32 %v2867_v0, 30  ;;  %3790 = vcosq.f32 %v2686_v11  ;;  %vm2704_vm3 = vcmp.lt.s32.totalorder %v5821_v47, 0  ;;  %2922 = vxpose.xlu0.b32.start [1/4] (short) %v2181_v26, 128 }
 0x496   :  { %v6118_v6 = vand.u32 3, %v2275_v41  ;;  %v2373_v20 = vsel %vm2288_vm12, %v2372_v37, %v5704_v18  ;;  %3792 = vsinq.f32 %v2686_v11  ;;  %vm6125_vm2 = vcmp.le.f32.partialorder %v2702_v42, 0.7853982 }
 0x497   :  { %v2781_v32 = vor.u32 4788187, %v2780_v38  ;;  %v2869_v31 = vshll.u32 %v6115_v22, 30  ;;  %v2375_v1 = vsel %vm5807_vm15, 0, %v2373_v20  ;;  %v2784_v17 = vcvt.s32.f32 %v2777_v30 }
 0x498   :  { %v6133_v23 = vadd.s32 %v6072_v7, %v6077_v44  ;;  %v2379_v28 = vadd.s32 3, %v2375_v1  ;;  %v2383_v18 = vxor.u32 2147483648, %v5883_v15  ;;  %v6136_v3 = vpop.eup %3784  ;;  %v2386_v27 = vxor.u32 2147483648, %v5880_v43 }
 0x499   :  { %v2782_v4 = vand.u32 2147483647, %v2781_v32  ;;  %v6138_v42 = vsub.s32 %v2866_v57, %v2869_v31  ;;  %v2476_v36 = vsub.s32 4, %v5776_v58  ;;  %vm2281_vm12 = vcmp.eq.s32.totalorder %v6118_v6, 2 }
 0x49a   :  { %vm2378_vm15 = vweird.f32 %v5548_v2  ;;  %v2380_v24 = vand.u32 3, %v2379_v28  ;;  %v2580_v7 = vsub.s32 4, %v5853_v45  ;;  %vm2278_vm9 = vcmp.eq.s32.totalorder %v6118_v6, 0 }
 0x49b   :  { %v2785_v44 = vmul.f32 %v2784_v17, %v2782_v4  ;;  %v2872_v16 = vsub.s32 0, %v6138_v42  ;;  %v2477_v13 = vsel %vm2392_vm13, %v2476_v36, %v5776_v58  ;;  %v2487_v11 = vxor.u32 2147483648, %v6041_v29 }
 0x49c   :  { %vm2277_vm4 = vcmp.lt.s32.totalorder %v6118_v6, 2  ;;  %vm2381_vm14 = vcmp.lt.s32.totalorder %v2380_v24, 2  ;;  %vm2382_vm5 = vcmp.eq.s32.totalorder %v2380_v24, 0  ;;  %vm2385_vm0 = vcmp.eq.s32.totalorder %v2380_v24, 2 }
 0x49d   :  { %v2479_v53 = vsel %vm5875_vm1, 0, %v2477_v13  ;;  %v2786_v39 = vxor.u32 2147483648, %v2785_v44  ;;  %v3460_v9 = vmin.u32 %v2872_v16, %v6138_v42  ;;  %v2384_v12 = vsel %vm2382_vm5, %v5880_v43, %v2383_v18  ;;  %v3464_v13 = vld [vmem:[%s6442_s2 + $0x48] sm:$0xff] }
 0x49e   :  { %v2387_v35 = vsel %vm2385_vm0, %v2386_v27, %v5883_v15  ;;  %v2483_v5 = vadd.s32 3, %v2479_v53  ;;  %v2490_v48 = vxor.u32 2147483648, %v6036_v25  ;;  %v2581_v59 = vsel %vm2496_vm8, %v2580_v7, %v5853_v45  ;;  %v3466_v27 = vld [vmem:[%s6442_s2 + $0x58] sm:$0xff] }
 0x49f   :  { %v2388_v58 = vsel %vm2381_vm14, %v2384_v12, %v2387_v35  ;;  %v3787_v63 = vpop.eup %3786  ;;  %v2787_v54 = vsel %vm2704_vm3, %v2786_v39, %v2785_v44  ;;  %v2874_v8 = vclz %v3460_v9  ;;  %v2583_v43 = vsel %vm5940_vm6, 0, %v2581_v59  ;;  %3536 = vmatprep.subr.mxu0 %v3466_v27  ;;  %3592 = vmatprep.subr.mxu1 %v3466_v27 }
 0x4a0   :  { %v2389_v57 = vsel %vm2378_vm15, nan, %v2388_v58  ;;  %v2790_v15 = vsel %vm6125_vm2, %v5821_v47, %v2787_v54  ;;  %v2282_v52 = vxor.u32 2147483648, %v3787_v63  ;;  %v2484_v41 = vand.u32 3, %v2483_v5  ;;  %3537 = vmatpush3.msra.mxu0 %v3466_v27  ;;  %3596 = vmatpush3.msra.mxu1 %v3466_v27 }
 0x4a1   :  { %2923 = vxpose.xlu0.b32.cont [2/4] (short) %v2389_v57, 128  ;;  %v2587_v56 = vadd.s32 3, %v2583_v43  ;;  %v3789_v45 = vpop.eup %3788  ;;  %3794 = vcosq.f32 %v2790_v15  ;;  %v3461_v61 = vadd.s32 4294967294, %v2874_v8  ;;  %v2591_v0 = vxor.u32 2147483648, %v6136_v3 }
 0x4a2   :  { %v2594_v21 = vxor.u32 2147483648, %v6060_v49  ;;  %3796 = vsinq.f32 %v2790_v15  ;;  %v2279_v2 = vxor.u32 2147483648, %v3789_v45  ;;  %v2283_v34 = vsel %vm2281_vm12, %v2282_v52, %v3789_v45  ;;  %v6176_v37 = vpop.eup %3790 }
 0x4a3   :  { %v2684_v40 = vsub.s32 4, %v5947_v19  ;;  %vm3462_vm13 = vcmp.lt.s32.totalorder %v3461_v61, 0  ;;  %vm2486_vm1 = vcmp.eq.s32.totalorder %v2484_v41, 0  ;;  %vm2489_vm8 = vcmp.eq.s32.totalorder %v2484_v41, 2  ;;  %v6178_v38 = vpop.eup %3792 }
 0x4a4   :  { %v2588_v30 = vand.u32 3, %v2587_v56  ;;  %v2877_v26 = vsel %vm3462_vm13, 0, %v3461_v61  ;;  %v2280_v20 = vsel %vm2278_vm9, %v3787_v63, %v2279_v2  ;;  %v2488_v32 = vsel %vm2486_vm1, %v6036_v25, %v2487_v11 }
 0x4a5   :  { %v2491_v31 = vsel %vm2489_vm8, %v2490_v48, %v6041_v29  ;;  %v2878_v1 = vsub.s32 32, %v2877_v26  ;;  %v2882_v17 = vsub.s32 4294967266, %v2877_v26  ;;  %v2284_v28 = vsel %vm2277_vm4, %v2280_v20, %v2283_v34  ;;  %v3463_v48 = vld [vmem:[%s6442_s2 + $0x40] sm:$0xff] }
 0x4a6   :  { %vm2485_vm6 = vcmp.lt.s32.totalorder %v2484_v41, 2  ;;  %v2285_v18 = vsel %vm2274_vm10, nan, %v2284_v28  ;;  %vm2482_vm12 = vweird.f32 %v5554_v62  ;;  %vm2590_vm15 = vcmp.eq.s32.totalorder %v2588_v30, 0 }
 0x4a7   :  { %v2492_v4 = vsel %vm2485_vm6, %v2488_v32, %v2491_v31  ;;  %v2879_v25 = vshll.u32 %v6138_v42, %v2877_v26  ;;  %v2880_v29 = vshrl.u32 %v6133_v23, %v2878_v1  ;;  %v2883_v36 = vadd.s32 127, %v2882_v17  ;;  %2954 = vxpose.xlu1.b32.start [1/4] (short) %v2285_v18, 128 }
 0x4a8   :  { %v2592_v6 = vsel %vm2590_vm15, %v6060_v49, %v2591_v0  ;;  %v2493_v24 = vsel %vm2482_vm12, nan, %v2492_v4  ;;  %vm2589_vm9 = vcmp.lt.s32.totalorder %v2588_v30, 2  ;;  %vm2593_vm10 = vcmp.eq.s32.totalorder %v2588_v30, 2 }
 0x4a9   :  { %v2685_v33 = vsel %vm2600_vm7, %v2684_v40, %v5947_v19  ;;  %v2881_v62 = vor.u32 %v2880_v29, %v2879_v25  ;;  %v2884_v7 = vshll.u32 %v2883_v36, 23  ;;  %v2595_v42 = vsel %vm2593_vm10, %v2594_v21, %v6136_v3  ;;  %v3465_v19 = vld [vmem:[%s6442_s2 + $0x50] sm:$0xff] }
 0x4aa   :  { %v2687_v23 = vsel %vm6052_vm11, 0, %v2685_v33  ;;  %vm2586_vm4 = vweird.f32 %v5644_v10  ;;  %v2596_v49 = vsel %vm2589_vm9, %v2592_v6, %v2595_v42  ;;  %v2788_v16 = vsub.s32 4, %v6038_v50  ;;  %3538 = vmatprep.subr.mxu0 %v3465_v19  ;;  %3593 = vmatprep.subr.mxu1 %v3465_v19 }
 0x4ab   :  { %v2691_v44 = vadd.s32 3, %v2687_v23  ;;  %v2885_v11 = vor.u32 4788187, %v2884_v7  ;;  %2955 = vxpose.xlu1.b32.cont [2/4] (short) %v2493_v24, 128  ;;  %v2597_v3 = vsel %vm2586_vm4, nan, %v2596_v49  ;;  %v2695_v60 = vxor.u32 2147483648, %v6178_v38  ;;  %3539 = vmatpush3.msra.mxu0 %v3465_v19 }
 0x4ac   :  { %v2698_v53 = vxor.u32 2147483648, %v6176_v37  ;;  %2924 = vxpose.xlu0.b32.cont [3/4] (short) %v2597_v3, 128  ;;  %v2789_v39 = vsel %vm2704_vm3, %v2788_v16, %v6038_v50  ;;  %v2888_v12 = vcvt.s32.f32 %v2881_v62  ;;  %3540 = vmatprep.subr.mxu0 %v3464_v13  ;;  %vm2690_vm3 = vweird.f32 %v5707_v46 }
 0x4ad   :  { %v2692_v10 = vand.u32 3, %v2691_v44  ;;  %v2886_v9 = vand.u32 2147483647, %v2885_v11  ;;  %v2791_v35 = vsel %vm6125_vm2, 0, %v2789_v39  ;;  %3541 = vmatpush3.msra.mxu0 %v3464_v13  ;;  %3597 = vmatpush3.msra.mxu1 %v3465_v19  ;;  %vm2808_vm2 = vcmp.lt.s32.totalorder %v5842_v14, 0 }
 0x4ae   :  { %v3795_v58 = vpop.eup %3794  ;;  %v2795_v5 = vadd.s32 3, %v2791_v35  ;;  %3542 = vmatprep.subr.mxu0 %v3463_v48  ;;  %3594 = vmatprep.subr.mxu1 %v3464_v13  ;;  %vm6225_vm5 = vcmp.le.f32.partialorder %v2806_v55, 0.7853982  ;;  %v2892_v46 = vsub.s32 4, %v6115_v22  ;;  %vm2794_vm8 = vweird.f32 %v5821_v47 }
 0x4af   :  { %vm2693_vm7 = vcmp.lt.s32.totalorder %v2692_v10, 2  ;;  %vm2694_vm11 = vcmp.eq.s32.totalorder %v2692_v10, 0  ;;  %vm2697_vm14 = vcmp.eq.s32.totalorder %v2692_v10, 2  ;;  %v3797_v50 = vpop.eup %3796  ;;  %v2889_v59 = vmul.f32 %v2888_v12, %v2886_v9  ;;  %3543 = vmatpush3.msra.mxu0 %v3463_v48  ;;  %3598 = vmatpush3.msra.mxu1 %v3464_v13 }
 0x4b0   :  { %v2696_v63 = vsel %vm2694_vm11, %v6176_v37, %v2695_v60  ;;  %v2699_v51 = vsel %vm2697_vm14, %v2698_v53, %v6178_v38  ;;  %v2802_v54 = vxor.u32 2147483648, %v3795_v58  ;;  %v2796_v57 = vand.u32 3, %v2795_v5  ;;  %3595 = vmatprep.subr.mxu1 %v3463_v48  ;;  %v6277_v5 = vld [vmem:[%s6443_s4] ss:$0 sm:$0xff] }
 0x4b1   :  { %v2700_v8 = vsel %vm2693_vm7, %v2696_v63, %v2699_v51  ;;  %v2799_v43 = vxor.u32 2147483648, %v3797_v50  ;;  %v2890_v15 = vxor.u32 2147483648, %v2889_v59  ;;  %3599 = vmatpush3.msra.mxu1 %v3463_v48  ;;  %v2893_v2 = vsel %vm2808_vm2, %v2892_v46, %v6115_v22 }
 0x4b2   :  { %v2701_v52 = vsel %vm2690_vm3, nan, %v2700_v8  ;;  %vm2798_vm0 = vcmp.eq.s32.totalorder %v2796_v57, 0  ;;  %vm2801_vm13 = vcmp.eq.s32.totalorder %v2796_v57, 2  ;;  %vm2797_vm1 = vcmp.lt.s32.totalorder %v2796_v57, 2 }
 0x4b3   :  { %2956 = vxpose.xlu1.b32.cont [3/4] (short) %v2701_v52, 128  ;;  %v2891_v56 = vsel %vm2808_vm2, %v2890_v15, %v2889_v59  ;;  %v2800_v45 = vsel %vm2798_vm0, %v3795_v58, %v2799_v43  ;;  %v2803_v61 = vsel %vm2801_vm13, %v2802_v54, %v3797_v50  ;;  %v2895_v34 = vsel %vm6225_vm5, 0, %v2893_v2 }
 0x4b4   :  { %v2894_v0 = vsel %vm6225_vm5, %v5842_v14, %v2891_v56  ;;  %v2804_v55 = vsel %vm2797_vm1, %v2800_v45, %v2803_v61  ;;  %v2899_v40 = vadd.s32 3, %v2895_v34  ;;  %vm2898_vm9 = vweird.f32 %v5842_v14 }
 0x4b5   :  { %3798 = vcosq.f32 %v2894_v0  ;;  %v2805_v21 = vsel %vm2794_vm8, nan, %v2804_v55  ;;  %vm6594_vm10 = vcmask 261120  }
 0x4b6   :  { %3800 = vsinq.f32 %v2894_v0  ;;  %2925 = vxpose.xlu0.b32.end [4/4] (short) %v2805_v21, 128  ;;  %v2900_v37 = vand.u32 3, %v2899_v40  ;;  %vm6595_vm4 = vmmov %vm6594_vm10 }
 0x4b7   :  { %vm6596_vm7 = vmmov %vm6595_vm4 }
 0x4b8   :  { %vm2905_vm6 = vcmp.eq.s32.totalorder %v2900_v37, 2  ;;  %vm2902_vm12 = vcmp.eq.s32.totalorder %v2900_v37, 0  ;;  %vm2901_vm15 = vcmp.lt.s32.totalorder %v2900_v37, 2  ;;  %vm6597_vm11 = vmmov %vm6595_vm4 }
 0x4b9   :  { %vm6598_vm14 = vmmov %vm6595_vm4 }
 0x4ba   :  { %vm6599_vm3 = vmmov %vm6595_vm4 }
 0x4bb   :  { %vm6600_vm2 = vmmov %vm6599_vm3 }
 0x4bc   :  { %vm6601_vm5 = vmmov %vm6600_vm2 }
 0x4bd   :  { %vm6602_vm0 = vmmov %vm6600_vm2 }
 0x4be   :  { %vm6603_vm13 = vmmov %vm6602_vm0 }
 0x4bf   :  { %vm6604_vm1 = vmmov %vm6602_vm0 }
 0x4c0   :  { %vm6605_vm8 = vmmov %vm6602_vm0 }
 0x4c2   :  { %v3799_v30 = vpop.eup %3798 }
 0x4c3   :  { %v3801_v38 = vpop.eup %3800  ;;  %v2906_v26 = vxor.u32 2147483648, %v3799_v30 }
 0x4c4   :  { %v2903_v20 = vxor.u32 2147483648, %v3801_v38 }
 0x4c5   :  { %v2907_v47 = vsel %vm2905_vm6, %v2906_v26, %v3801_v38  ;;  %vm6606_vm6 = vmmov %vm6602_vm0 }
 0x4c6   :  { %v2904_v32 = vsel %vm2902_vm12, %v3799_v30, %v2903_v20  ;;  %vm6607_vm12 = vmmov %vm6602_vm0 }
 0x4c7   :  { %v2908_v31 = vsel %vm2901_vm15, %v2904_v32, %v2907_v47  ;;  %vm6608_vm15 = vmmov %vm6602_vm0 }
 0x4c8   :  { %v2909_v1 = vsel %vm2898_vm9, nan, %v2908_v31  ;;  %vm6609_vm9 = vmmov %vm6602_vm0 }
 0x4c9   :  { %2957 = vxpose.xlu1.b32.end [4/4] (short) %v2909_v1, 128 }
 0x526   :  { %v2938_v22 = vpop.trf.xlu0 }
 0x527   :  { %3544 = vmatprep.mubr.msk.f32.mxu0 %vm6594_vm10, %v2938_v22  ;;  %vm6610_vm10 = vmmov %vm6602_vm0 }
 0x52a   :  { %v2939_v17 = vpop.trf.xlu0 }
 0x52b   :  { %3545 = vmatmul.mubr.msk.f32.vlgmr.msra.gmra.mxu0 %vm6595_vm4, %v2939_v17  ;;  %vm6611_vm4 = vmmov %vm6602_vm0 }
 0x52e   :  { %v2940_v28 = vpop.trf.xlu0 }
 0x52f   :  { %3547 = vmatprep.mubr.msk.f32.mxu0 %vm6596_vm7, %v2940_v28  ;;  %vm6612_vm7 = vmmov %vm6602_vm0 }
 0x532   :  { %v2941_v18 = vpop.trf.xlu0 }
 0x533   :  { %3548 = vmatmul.mubr.msk.f32.gmra.mxu0 %vm6597_vm11, %v2941_v18  ;;  %vm6613_vm11 = vmmov %vm6602_vm0 }
 0x536   :  { %v2942_v4 = vpop.trf.xlu0 }
 0x537   :  { %3550 = vmatprep.mubr.msk.f32.mxu0 %vm6598_vm14, %v2942_v4  ;;  %vm6614_vm14 = vmmov %vm6602_vm0 }
 0x539   :  { %v2970_v27 = vpop.trf.xlu1 }
 0x53a   :  { %v2943_v14 = vpop.trf.xlu0 }
 0x53b   :  { %3551 = vmatmul.mubr.msk.f32.gmra.mxu0 %vm6599_vm3, %v2943_v14  ;;  %vm6615_vm3 = vmmov %vm6602_vm0 }
 0x53d   :  { %v2971_v25 = vpop.trf.xlu1 }
 0x53e   :  { %v2944_v29 = vpop.trf.xlu0 }
 0x53f   :  { %3553 = vmatprep.mubr.msk.f32.mxu0 %vm6600_vm2, %v2944_v29  ;;  %vm6616_vm2 = vmmov %vm6602_vm0 }
 0x541   :  { %v2972_v36 = vpop.trf.xlu1 }
 0x542   :  { %v2945_v6 = vpop.trf.xlu0 }
 0x543   :  { %3554 = vmatmul.mubr.msk.f32.gmra.mxu0 %vm6601_vm5, %v2945_v6  ;;  %vm6617_vm5 = vmmov %vm6602_vm0 }
 0x545   :  { %v2973_v24 = vpop.trf.xlu1 }
 0x546   :  { %v2946_v33 = vpop.trf.xlu0 }
 0x547   :  { %3556 = vmatprep.mubr.msk.f32.mxu0 %vm6602_vm0, %v2946_v33 }
 0x549   :  { %v2974_v62 = vpop.trf.xlu1 }
 0x54a   :  { %v2947_v7 = vpop.trf.xlu0 }
 0x54b   :  { %3557 = vmatmul.mubr.msk.f32.gmra.mxu0 %vm6603_vm13, %v2947_v7  ;;  %vm6618_vm13 = vmmov %vm6602_vm0 }
 0x54d   :  { %v2975_v42 = vpop.trf.xlu1 }
 0x54e   :  { %v2948_v23 = vpop.trf.xlu0 }
 0x54f   :  { %3559 = vmatprep.mubr.msk.f32.mxu0 %vm6604_vm1, %v2948_v23  ;;  %vm6619_vm1 = vmmov %vm6602_vm0 }
 0x551   :  { %v2976_v49 = vpop.trf.xlu1 }
 0x552   :  { %v2949_v44 = vpop.trf.xlu0 }
 0x553   :  { %3560 = vmatmul.mubr.msk.f32.gmra.mxu0 %vm6605_vm8, %v2949_v44  ;;  %vm6620_vm8 = vmmov %vm6602_vm0 }
 0x555   :  { %v2977_v16 = vpop.trf.xlu1 }
 0x556   :  { %v2950_v19 = vpop.trf.xlu0 }
 0x557   :  { %3562 = vmatprep.mubr.msk.f32.mxu1 %vm6606_vm6, %v2950_v19  ;;  %vm6621_vm6 = vmmov %vm6602_vm0 }
 0x559   :  { %v2978_v13 = vpop.trf.xlu1 }
 0x55a   :  { %v2951_v11 = vpop.trf.xlu0 }
 0x55b   :  { %3563 = vmatmul.mubr.msk.f32.vlgmr.msra.gmra.mxu1 %vm6607_vm12, %v2951_v11  ;;  %vm6622_vm12 = vmmov %vm6602_vm0 }
 0x55d   :  { %v2979_v3 = vpop.trf.xlu1 }
 0x55e   :  { %v2952_v60 = vpop.trf.xlu0 }
 0x55f   :  { %3565 = vmatprep.mubr.msk.f32.mxu1 %vm6608_vm15, %v2952_v60  ;;  %vm6623_vm15 = vmmov %vm6602_vm0 }
 0x561   :  { %v2980_v10 = vpop.trf.xlu1 }
 0x562   :  { %v2953_v53 = vpop.trf.xlu0 }
 0x563   :  { %3566 = vmatmul.mubr.msk.f32.gmra.mxu1 %vm6609_vm9, %v2953_v53  ;;  %vm6624_vm9 = vmmov %vm6602_vm0 }
 0x564   :  { %3568 = vmatprep.mubr.msk.f32.mxu1 %vm6610_vm10, %v2970_v27  ;;  %vm6625_vm10 = vmmov %vm6602_vm0 }
 0x565   :  { %v2981_v39 = vpop.trf.xlu1 }
 0x567   :  { %3569 = vmatmul.mubr.msk.f32.gmra.mxu1 %vm6611_vm4, %v2971_v25  ;;  %vm6626_vm4 = vmmov %vm6602_vm0 }
 0x568   :  { %3571 = vmatprep.mubr.msk.f32.mxu1 %vm6612_vm7, %v2972_v36  ;;  %vm6627_vm7 = vmmov %vm6602_vm0 }
 0x569   :  { %v2982_v9 = vpop.trf.xlu1 }
 0x56b   :  { %3572 = vmatmul.mubr.msk.f32.gmra.mxu1 %vm6613_vm11, %v2973_v24  ;;  %vm6628_vm11 = vmmov %vm6602_vm0 }
 0x56c   :  { %3574 = vmatprep.mubr.msk.f32.mxu1 %vm6614_vm14, %v2974_v62  ;;  %vm6629_vm14 = vmmov %vm6602_vm0 }
 0x56d   :  { %v2983_v12 = vpop.trf.xlu1 }
 0x56f   :  { %3575 = vmatmul.mubr.msk.f32.gmra.mxu1 %vm6615_vm3, %v2975_v42  ;;  %vm6630_vm3 = vmmov %vm6602_vm0 }
 0x570   :  { %3577 = vmatprep.mubr.msk.f32.mxu1 %vm6616_vm2, %v2976_v49  ;;  %vm6631_vm2 = vmmov %vm6602_vm0 }
 0x571   :  { %v2984_v35 = vpop.trf.xlu1 }
 0x573   :  { %3578 = vmatmul.mubr.msk.f32.gmra.mxu1 %vm6617_vm5, %v2977_v16  ;;  %vm6632_vm5 = vmmov %vm6602_vm0 }
 0x574   :  { %3580 = vmatprep.mubr.msk.f32.mxu1 %vm6602_vm0, %v2978_v13 }
 0x575   :  { %v2985_v58 = vpop.trf.xlu1 }
 0x577   :  { %3581 = vmatmul.mubr.msk.f32.gmra.mxu1 %vm6618_vm13, %v2979_v3  ;;  %vm6633_vm13 = vmmov %vm6602_vm0 }
 0x578   :  { %3583 = vmatprep.mubr.msk.f32.mxu1 %vm6619_vm1, %v2980_v10  ;;  %vm6634_vm1 = vmmov %vm6602_vm0 }
 0x57b   :  { %3584 = vmatmul.mubr.msk.f32.gmra.mxu1 %vm6620_vm8, %v2981_v39  ;;  %vm6635_vm8 = vmmov %vm6602_vm0 }
 0x57c   :  { %3586 = vmatprep.mubr.msk.f32.mxu1 %vm6621_vm6, %v2982_v9  ;;  %vm6636_vm6 = vmmov %vm6602_vm0 }
 0x57f   :  { %3587 = vmatmul.mubr.msk.f32.gmra.mxu1 %vm6622_vm12, %v2983_v12  ;;  %vm6637_vm12 = vmmov %vm6602_vm0 }
 0x580   :  { %3589 = vmatprep.mubr.msk.f32.mxu1 %vm6623_vm15, %v2984_v35  ;;  %vm6638_vm15 = vmmov %vm6602_vm0 }
 0x583   :  { %3590 = vmatmul.mubr.msk.f32.gmra.mxu1 %vm6624_vm9, %v2985_v58  ;;  %vm6639_vm9 = vmmov %vm6602_vm0 }
 0x5eb   :  { %v3546_v48 = vpop.f32.mrf.mxu0 }
 0x5ec   :  { %v3154_v50 = vadd.f32 %v3546_v48, %v6277_v5 }
 0x5ed   :  { %v3148_v59 = vpop.f32.mrf.mxu0 }
 0x5ee   :  { %3308 = vst.msk [vmem:[%s6444_s5 + $0x8] sm:$0xff] %vm6625_vm10, %v3154_v50  ;;  %v3149_v63 = vadd.f32 %v6277_v5, %v3148_v59  ;;  %vm6640_vm10 = vmmov %vm6602_vm0 }
 0x5f0   :  { %3307 = vst.msk [vmem:[%s6444_s5] sm:$0xff] %vm6626_vm4, %v3149_v63  ;;  %vm6641_vm4 = vmmov %vm6602_vm0 }
 0x5f3   :  { %v3549_v51 = vpop.f32.mrf.mxu0 }
 0x5f4   :  { %v3164_v54 = vadd.f32 %v3549_v51, %v6277_v5 }
 0x5f5   :  { %v3158_v8 = vpop.f32.mrf.mxu0 }
 0x5f6   :  { %3310 = vst.msk [vmem:[%s6444_s5 + $0x18] sm:$0xff] %vm6627_vm7, %v3164_v54  ;;  %v3159_v57 = vadd.f32 %v6277_v5, %v3158_v8  ;;  %vm6642_vm7 = vmmov %vm6602_vm0 }
 0x5f8   :  { %3309 = vst.msk [vmem:[%s6444_s5 + $0x10] sm:$0xff] %vm6628_vm11, %v3159_v57  ;;  %vm6643_vm11 = vmmov %vm6602_vm0 }
 0x5fb   :  { %v3552_v43 = vpop.f32.mrf.mxu0 }
 0x5fc   :  { %v3174_v15 = vadd.f32 %v3552_v43, %v6277_v5 }
 0x5fd   :  { %v3168_v52 = vpop.f32.mrf.mxu0 }
 0x5fe   :  { %3312 = vst.msk [vmem:[%s6444_s5 + $0x28] sm:$0xff] %vm6629_vm14, %v3174_v15  ;;  %v3169_v41 = vadd.f32 %v6277_v5, %v3168_v52  ;;  %vm6644_vm14 = vmmov %vm6602_vm0 }
 0x600   :  { %3311 = vst.msk [vmem:[%s6444_s5 + $0x20] sm:$0xff] %vm6630_vm3, %v3169_v41  ;;  %vm6645_vm3 = vmmov %vm6602_vm0 }
 0x603   :  { %v3555_v46 = vpop.f32.mrf.mxu0 }
 0x604   :  { %v3184_v56 = vadd.f32 %v3555_v46, %v6277_v5 }
 0x605   :  { %v3178_v45 = vpop.f32.mrf.mxu0 }
 0x606   :  { %3314 = vst.msk [vmem:[%s6444_s5 + $0x38] sm:$0xff] %vm6631_vm2, %v3184_v56  ;;  %v3179_v61 = vadd.f32 %v6277_v5, %v3178_v45  ;;  %vm6646_vm2 = vmmov %vm6602_vm0 }
 0x608   :  { %3313 = vst.msk [vmem:[%s6444_s5 + $0x30] sm:$0xff] %vm6632_vm5, %v3179_v61  ;;  %vm6647_vm5 = vmmov %vm6602_vm0 }
 0x60b   :  { %v3558_v0 = vpop.f32.mrf.mxu0 }
 0x60c   :  { %v3194_v55 = vadd.f32 %v3558_v0, %v6277_v5 }
 0x60d   :  { %v3188_v21 = vpop.f32.mrf.mxu0 }
 0x60e   :  { %3316 = vst.msk [vmem:[%s6444_s5 + $0x48] sm:$0xff] %vm6602_vm0, %v3194_v55  ;;  %v3189_v2 = vadd.f32 %v6277_v5, %v3188_v21 }
 0x610   :  { %3315 = vst.msk [vmem:[%s6444_s5 + $0x40] sm:$0xff] %vm6633_vm13, %v3189_v2  ;;  %vm6648_vm13 = vmmov %vm6602_vm0 }
 0x613   :  { %v3561_v34 = vpop.f32.mrf.mxu0 }
 0x614   :  { %v3204_v40 = vadd.f32 %v3561_v34, %v6277_v5 }
 0x615   :  { %v3198_v37 = vpop.f32.mrf.mxu0 }
 0x616   :  { %3318 = vst.msk [vmem:[%s6444_s5 + $0x58] sm:$0xff] %vm6634_vm1, %v3204_v40  ;;  %v3199_v30 = vadd.f32 %v6277_v5, %v3198_v37  ;;  %vm6649_vm1 = vmmov %vm6602_vm0 }
 0x618   :  { %3317 = vst.msk [vmem:[%s6444_s5 + $0x50] sm:$0xff] %vm6635_vm8, %v3199_v30  ;;  %vm6650_vm8 = vmmov %vm6602_vm0 }
 0x61b   :  { %v3564_v38 = vpop.f32.mrf.mxu1 }
 0x61c   :  { %v3214_v26 = vadd.f32 %v3564_v38, %v6277_v5 }
 0x61d   :  { %v3208_v20 = vpop.f32.mrf.mxu1 }
 0x61e   :  { %3320 = vst.msk [vmem:[%s6444_s5 + $0x68] sm:$0xff] %vm6636_vm6, %v3214_v26  ;;  %v3209_v47 = vadd.f32 %v6277_v5, %v3208_v20  ;;  %vm6651_vm6 = vmmov %vm6602_vm0 }
 0x620   :  { %3319 = vst.msk [vmem:[%s6444_s5 + $0x60] sm:$0xff] %vm6637_vm12, %v3209_v47  ;;  %vm6652_vm12 = vmmov %vm6602_vm0 }
 0x623   :  { %v3567_v32 = vpop.f32.mrf.mxu1 }
 0x624   :  { %v3224_v31 = vadd.f32 %v3567_v32, %v6277_v5 }
 0x625   :  { %v3218_v1 = vpop.f32.mrf.mxu1 }
 0x626   :  { %3322 = vst.msk [vmem:[%s6444_s5 + $0x78] sm:$0xff] %vm6638_vm15, %v3224_v31  ;;  %v3219_v22 = vadd.f32 %v6277_v5, %v3218_v1  ;;  %vm6653_vm15 = vmmov %vm6602_vm0 }
 0x627   :  { %v3570_v17 = vpop.f32.mrf.mxu1 }
 0x628   :  { %3321 = vst.msk [vmem:[%s6444_s5 + $0x70] sm:$0xff] %vm6639_vm9, %v3219_v22  ;;  %v3234_v28 = vadd.f32 %v3570_v17, %v6277_v5  ;;  %vm6654_vm9 = vmmov %vm6602_vm0 }
 0x629   :  { %v3228_v18 = vpop.f32.mrf.mxu1 }
 0x62a   :  { %3324 = vst.msk [vmem:[%s6444_s5 + $0x88] sm:$0xff] %vm6640_vm10, %v3234_v28  ;;  %v3229_v4 = vadd.f32 %v6277_v5, %v3228_v18 }
 0x62b   :  { %v3573_v27 = vpop.f32.mrf.mxu1 }
 0x62c   :  { %3323 = vst.msk [vmem:[%s6444_s5 + $0x80] sm:$0xff] %vm6641_vm4, %v3229_v4  ;;  %v3244_v14 = vadd.f32 %v3573_v27, %v6277_v5 }
 0x62d   :  { %v3238_v25 = vpop.f32.mrf.mxu1 }
 0x62e   :  { %3326 = vst.msk [vmem:[%s6444_s5 + $0x98] sm:$0xff] %vm6642_vm7, %v3244_v14  ;;  %v3239_v29 = vadd.f32 %v6277_v5, %v3238_v25 }
 0x62f   :  { %v3576_v36 = vpop.f32.mrf.mxu1 }
 0x630   :  { %3325 = vst.msk [vmem:[%s6444_s5 + $0x90] sm:$0xff] %vm6643_vm11, %v3239_v29  ;;  %v3254_v6 = vadd.f32 %v3576_v36, %v6277_v5 }
 0x631   :  { %v3248_v24 = vpop.f32.mrf.mxu1 }
 0x632   :  { %3328 = vst.msk [vmem:[%s6444_s5 + $0xa8] sm:$0xff] %vm6644_vm14, %v3254_v6  ;;  %v3249_v33 = vadd.f32 %v6277_v5, %v3248_v24 }
 0x633   :  { %v3579_v62 = vpop.f32.mrf.mxu1 }
 0x634   :  { %3327 = vst.msk [vmem:[%s6444_s5 + $0xa0] sm:$0xff] %vm6645_vm3, %v3249_v33  ;;  %v3264_v7 = vadd.f32 %v3579_v62, %v6277_v5 }
 0x635   :  { %v3258_v42 = vpop.f32.mrf.mxu1 }
 0x636   :  { %3330 = vst.msk [vmem:[%s6444_s5 + $0xb8] sm:$0xff] %vm6646_vm2, %v3264_v7  ;;  %v3259_v23 = vadd.f32 %v6277_v5, %v3258_v42 }
 0x637   :  { %v3582_v49 = vpop.f32.mrf.mxu1 }
 0x638   :  { %3329 = vst.msk [vmem:[%s6444_s5 + $0xb0] sm:$0xff] %vm6647_vm5, %v3259_v23  ;;  %v3274_v44 = vadd.f32 %v3582_v49, %v6277_v5 }
 0x639   :  { %v3268_v16 = vpop.f32.mrf.mxu1 }
 0x63a   :  { %3332 = vst.msk [vmem:[%s6444_s5 + $0xc8] sm:$0xff] %vm6602_vm0, %v3274_v44  ;;  %v3269_v19 = vadd.f32 %v6277_v5, %v3268_v16 }
 0x63b   :  { %v3585_v13 = vpop.f32.mrf.mxu1 }
 0x63c   :  { %3331 = vst.msk [vmem:[%s6444_s5 + $0xc0] sm:$0xff] %vm6648_vm13, %v3269_v19  ;;  %v3284_v11 = vadd.f32 %v3585_v13, %v6277_v5 }
 0x63d   :  { %v3278_v3 = vpop.f32.mrf.mxu1 }
 0x63e   :  { %3334 = vst.msk [vmem:[%s6444_s5 + $0xd8] sm:$0xff] %vm6649_vm1, %v3284_v11  ;;  %v3279_v60 = vadd.f32 %v6277_v5, %v3278_v3 }
 0x63f   :  { %v3588_v53 = vpop.f32.mrf.mxu1 }
 0x640   :  { %3333 = vst.msk [vmem:[%s6444_s5 + $0xd0] sm:$0xff] %vm6650_vm8, %v3279_v60  ;;  %v3294_v10 = vadd.f32 %v3588_v53, %v6277_v5 }
 0x641   :  { %v3288_v39 = vpop.f32.mrf.mxu1 }
 0x642   :  { %3336 = vst.msk [vmem:[%s6444_s5 + $0xe8] sm:$0xff] %vm6651_vm6, %v3294_v10  ;;  %v3289_v9 = vadd.f32 %v6277_v5, %v3288_v39 }
 0x643   :  { %v3591_v12 = vpop.f32.mrf.mxu1 }
 0x644   :  { %3335 = vst.msk [vmem:[%s6444_s5 + $0xe0] sm:$0xff] %vm6652_vm12, %v3289_v9  ;;  %v3304_v35 = vadd.f32 %v3591_v12, %v6277_v5 }
 0x645   :  { %v3298_v58 = vpop.f32.mrf.mxu1 }
 0x646   :  { %3338 = vst.msk [vmem:[%s6444_s5 + $0xf8] sm:$0xff] %vm6653_vm15, %v3304_v35  ;;  %v3299_v48 = vadd.f32 %v6277_v5, %v3298_v58 }
 0x648   :  { %3337 = vst.msk [vmem:[%s6444_s5 + $0xf0] sm:$0xff] %vm6654_vm9, %v3299_v48 }

</bundles_post_ra>
